<compile_context>
chip_gen: v5e
topology: v5e:2x2
jax: 0.10.0
libtpu: 0.0.40
codegen_flags: <defaults>
</compile_context>

<pallas_src>
import functools

import jax
import jax.numpy as jnp
from jax.experimental import pallas as pl
from jax.experimental.pallas import tpu as pltpu

G_IN = 25
G_IN_PAD = 32          # 25 zero-padded to a clean contraction dim
G_OUT = 64
HIDDEN = 512
N_COEFF = 15           # sum over i in range(5) of (5 - i)
N_COEFF_PAD = 16       # 15 zero-padded
IMG = G_OUT * G_OUT    # 4096


def _g_kernel(x_ref, w1_ref, b1_ref, w2_ref, b2_ref, w3_ref, basis_ref,
              bias_img_ref, o_ref, *, bf16_epilogue):
    """fc1 -> relu -> fc2 -> relu -> fc3 -> basis matmul -> sigmoid (bf16 out)."""
    x = x_ref[...].astype(jnp.bfloat16)                       # (tb, 32)
    h1 = jnp.dot(x, w1_ref[...],
                 preferred_element_type=jnp.float32) + b1_ref[...]
    h1 = jnp.maximum(h1, 0.0).astype(jnp.bfloat16)            # (tb, 512)
    h2 = jnp.dot(h1, w2_ref[...],
                 preferred_element_type=jnp.float32) + b2_ref[...]
    h2 = jnp.maximum(h2, 0.0).astype(jnp.bfloat16)            # (tb, 512)
    # fc3 bias is folded into bias_img (= b3 @ basis), so no +b3 here.
    coeffs = jnp.dot(h2, w3_ref[...],
                     preferred_element_type=jnp.float32)      # (tb, 16)
    img = jnp.dot(coeffs.astype(jnp.bfloat16), basis_ref[...],
                  preferred_element_type=jnp.float32) + bias_img_ref[...]
    if bf16_epilogue:
        # v6e/v7x: bf16 EUP/VPU -> packed bf16 vregs halve EUP pushes + adds.
        img = img.astype(jnp.bfloat16)
    # sigmoid(x) = 0.5 * (tanh(0.5 x) + 1): single EUP op (tanh) instead of
    # exp + reciprocal (two EUP ops).
    o_ref[...] = (0.5 * (jnp.tanh(0.5 * img) + 1.0)).astype(jnp.bfloat16)


def make_basis():
    """basis[n, k, l] with n enumerating (i, j): x**i * y**j on the meshgrid."""
    lin = jnp.linspace(-2.0, 2.0, G_OUT, dtype=jnp.float32)
    # torch.meshgrid default 'ij' indexing: x[k, l] = lin[k], y[k, l] = -lin[l]
    xg = jnp.broadcast_to(lin[:, None], (G_OUT, G_OUT))
    yg = jnp.broadcast_to(-lin[None, :], (G_OUT, G_OUT))
    terms = [xg ** i * yg ** j for i in range(5) for j in range(5 - i)]
    basis = jnp.stack(terms)                   # (15, 64, 64)
    return basis.reshape(N_COEFF, IMG)         # (15, 4096) f32


def init_params(key):
    """Deterministic init matching torch.nn.Linear shapes (weights transposed)."""
    ks = jax.random.split(key, 6)

    def lin_init(kw, kb, fan_in, fan_out):
        bound = 1.0 / jnp.sqrt(float(fan_in))
        w = jax.random.uniform(kw, (fan_in, fan_out), jnp.float32, -bound, bound)
        b = jax.random.uniform(kb, (1, fan_out), jnp.float32, -bound, bound)
        return w, b

    w1, b1 = lin_init(ks[0], ks[1], G_IN, HIDDEN)
    w2, b2 = lin_init(ks[2], ks[3], HIDDEN, HIDDEN)
    w3, b3 = lin_init(ks[4], ks[5], HIDDEN, N_COEFF)
    return dict(w1=w1, b1=b1, w2=w2, b2=b2, w3=w3, b3=b3)


def prepare_params(params, basis_flat):
    """Pad contraction dims, fold b3 into a bias image, cast matmul operands to bf16."""
    w1p = jnp.zeros((G_IN_PAD, HIDDEN), jnp.float32).at[:G_IN].set(params["w1"])
    w3p = jnp.zeros((HIDDEN, N_COEFF_PAD), jnp.float32)
    w3p = w3p.at[:, :N_COEFF].set(params["w3"])
    basis_p = jnp.zeros((N_COEFF_PAD, IMG), jnp.float32).at[:N_COEFF].set(basis_flat)
    bias_img = params["b3"] @ basis_flat       # (1, 4096), exact f32 fold of b3
    return dict(
        w1=w1p.astype(jnp.bfloat16),
        b1=params["b1"].astype(jnp.float32),
        w2=params["w2"].astype(jnp.bfloat16),
        b2=params["b2"].astype(jnp.float32),
        w3=w3p.astype(jnp.bfloat16),
        basis=basis_p.astype(jnp.bfloat16),
        bias_img=bias_img.astype(jnp.float32),
    )


def _round_up(n, m):
    return (n + m - 1) // m * m


def _device_kind():
    try:
        return jax.devices()[0].device_kind.lower()
    except Exception:
        return ""


@functools.partial(
    jax.jit,
    static_argnames=("tb", "split_two_cores", "bf16_epilogue",
                     "single_buffer_invariants"))
def _g_forward_jit(x, kparams, *, tb, split_two_cores, bf16_epilogue,
                   single_buffer_invariants):
    x2 = x.reshape(-1, G_IN).astype(jnp.float32)
    B = x2.shape[0]

    # Effective batch tile:
    #  - cap at the (16-rounded) batch so tiny batches don't over-pad,
    #  - on 2-TC chips (v7x) split mid-size batches into two grid steps so
    #    both TensorCores get a 'parallel' step; skipped on 1-TC v5e/v6e.
    tb_eff = min(tb, _round_up(B, 16))
    if split_two_cores and 2 * 16 <= B < 2 * tb_eff:
        tb_eff = _round_up(pl.cdiv(B, 2), 16)

    Bp = _round_up(B, tb_eff)
    xp = jnp.pad(x2, ((0, Bp - B), (0, G_IN_PAD - G_IN)))     # zero-pad batch + K
    grid = (Bp // tb_eff,)

    def rep(shape):
        # Grid-invariant full-array block (weights / biases / basis): never
        # re-fetched (constant index_map), so one pipeline buffer is enough.
        if single_buffer_invariants:
            return pl.BlockSpec(shape, lambda i: (0,) * len(shape),
                                pipeline_mode=pl.Buffered(1))
        return pl.BlockSpec(shape, lambda i: (0,) * len(shape))

    out = pl.pallas_call(
        functools.partial(_g_kernel, bf16_epilogue=bf16_epilogue),
        out_shape=jax.ShapeDtypeStruct((Bp, IMG), jnp.bfloat16),
        grid_spec=pltpu.PrefetchScalarGridSpec(
            num_scalar_prefetch=0,
            grid=grid,
            in_specs=[
                pl.BlockSpec((tb_eff, G_IN_PAD), lambda i: (i, 0)),  # x tile
                rep((G_IN_PAD, HIDDEN)),        # w1 (bf16)
                rep((1, HIDDEN)),               # b1 (f32)
                rep((HIDDEN, HIDDEN)),          # w2 (bf16)
                rep((1, HIDDEN)),               # b2 (f32)
                rep((HIDDEN, N_COEFF_PAD)),     # w3 (bf16)
                rep((N_COEFF_PAD, IMG)),        # basis (bf16, 16x4096)
                rep((1, IMG)),                  # bias_img = b3 @ basis (f32)
            ],
            out_specs=pl.BlockSpec((tb_eff, IMG), lambda i: (i, 0)),
        ),
        compiler_params=pltpu.CompilerParams(
            dimension_semantics=("parallel",),
            vmem_limit_bytes=56 * 1024 * 1024,   # under v7x's 64 MiB physical
        ),
    )(xp, kparams["w1"], kparams["b1"], kparams["w2"], kparams["b2"],
      kparams["w3"], kparams["basis"], kparams["bias_img"])
    return out[:B]


def g_forward(x, kparams, *, tb=512):
    kind = _device_kind()
    is_v7x = ("v7" in kind) or ("7x" in kind)       # 2 TensorCores per chip
    bf16_epilogue = "v5" not in kind                # v5e has no bf16 EUP/VPU
    try:
        return _g_forward_jit(x, kparams, tb=tb, split_two_cores=is_v7x,
                              bf16_epilogue=bf16_epilogue,
                              single_buffer_invariants=True)
    except Exception:
        # Fallback if pl.Buffered(1) is rejected by this Pallas build.
        return _g_forward_jit(x, kparams, tb=tb, split_two_cores=is_v7x,
                              bf16_epilogue=bf16_epilogue,
                              single_buffer_invariants=False)


def g_forward_ref(x, params, basis_flat):
    """Pure-JAX f32 reference of the PyTorch forward."""
    x2 = x.reshape(-1, G_IN).astype(jnp.float32)
    h1 = jnp.maximum(x2 @ params["w1"] + params["b1"], 0.0)
    h2 = jnp.maximum(h1 @ params["w2"] + params["b2"], 0.0)
    c = h2 @ params["w3"] + params["b3"]
    return jax.nn.sigmoid(c @ basis_flat)


if __name__ == "__main__":
    key = jax.random.PRNGKey(0)
    k_param, k_x = jax.random.split(key)

    params = init_params(k_param)
    basis_flat = make_basis()
    kparams = prepare_params(params, basis_flat)

    B = 8
    x = jax.random.normal(k_x, (B, G_IN), dtype=jnp.float32)

    out = jax.block_until_ready(g_forward(x, kparams))
    ref = g_forward_ref(x, params, basis_flat)

    assert out.shape == (B, IMG), out.shape
    assert out.dtype == jnp.bfloat16, out.dtype
    err = float(jnp.max(jnp.abs(out.astype(jnp.float32) - ref)))
    # bf16 MXU operands + bf16 output (and bf16 epilogue on v6e/v7x) with f32
    # accumulation -> relaxed tolerance vs the pure-f32 reference.
    assert err < 5e-2, err
    print("KERNEL_OK")
</pallas_src>

<mosaic_0001>
module attributes {stable_mosaic.version = 11 : i64} {
  func.func @_g_kernel(%arg0: i32, %arg1: memref<16x32xf32, #tpu.memory_space<vmem>>, %arg2: memref<32x512xbf16, #tpu.memory_space<vmem>>, %arg3: memref<1x512xf32, #tpu.memory_space<vmem>>, %arg4: memref<512x512xbf16, #tpu.memory_space<vmem>>, %arg5: memref<1x512xf32, #tpu.memory_space<vmem>>, %arg6: memref<512x16xbf16, #tpu.memory_space<vmem>>, %arg7: memref<16x4096xbf16, #tpu.memory_space<vmem>>, %arg8: memref<1x4096xf32, #tpu.memory_space<vmem>>, %arg9: memref<16x4096xbf16, #tpu.memory_space<vmem>>) attributes {dimension_semantics = [#tpu.dimension_semantics<parallel>], iteration_bounds = array<i64: 1>, scalar_prefetch = 0 : i64, scratch_operands = 0 : i64, tpu.core_type = #tpu.core_type<tc>, window_params = [{transform_indices = @transform_0, window_bounds = array<i64: 16, 32>}, {pipeline_mode = #tpu.pipeline_mode<synchronous>, transform_indices = @transform_1, window_bounds = array<i64: 32, 512>}, {pipeline_mode = #tpu.pipeline_mode<synchronous>, transform_indices = @transform_2, window_bounds = array<i64: 1, 512>}, {pipeline_mode = #tpu.pipeline_mode<synchronous>, transform_indices = @transform_3, window_bounds = array<i64: 512, 512>}, {pipeline_mode = #tpu.pipeline_mode<synchronous>, transform_indices = @transform_4, window_bounds = array<i64: 1, 512>}, {pipeline_mode = #tpu.pipeline_mode<synchronous>, transform_indices = @transform_5, window_bounds = array<i64: 512, 16>}, {pipeline_mode = #tpu.pipeline_mode<synchronous>, transform_indices = @transform_6, window_bounds = array<i64: 16, 4096>}, {pipeline_mode = #tpu.pipeline_mode<synchronous>, transform_indices = @transform_7, window_bounds = array<i64: 1, 4096>}, {transform_indices = @transform_8, window_bounds = array<i64: 16, 4096>}]} {
    %c0 = arith.constant 0 : index
    %c0_0 = arith.constant 0 : index
    %0 = vector.load %arg1[%c0, %c0_0] : memref<16x32xf32, #tpu.memory_space<vmem>>, vector<16x32xf32>
    %1 = arith.truncf %0 : vector<16x32xf32> to vector<16x32xbf16>
    %c0_1 = arith.constant 0 : index
    %c0_2 = arith.constant 0 : index
    %2 = vector.load %arg2[%c0_1, %c0_2] : memref<32x512xbf16, #tpu.memory_space<vmem>>, vector<32x512xbf16>
    %cst = arith.constant dense<0.000000e+00> : vector<16x512xf32>
    %3 = tpu.matmul %1, %2, %cst {dimension_numbers = #tpu.dot_dimension_numbers<[1], [0], [0], [1], [0, 0, 1, 1], [], []>} : vector<16x32xbf16>, vector<32x512xbf16>, vector<16x512xf32> -> vector<16x512xf32>
    %c0_3 = arith.constant 0 : index
    %c0_4 = arith.constant 0 : index
    %4 = vector.load %arg3[%c0_3, %c0_4] : memref<1x512xf32, #tpu.memory_space<vmem>>, vector<1x512xf32>
    %5 = vector.broadcast %4 : vector<1x512xf32> to vector<16x512xf32>
    %6 = arith.addf %3, %5 : vector<16x512xf32>
    %cst_5 = arith.constant 0.000000e+00 : f32
    %7 = vector.broadcast %cst_5 : f32 to vector<16x512xf32>
    %8 = arith.maximumf %6, %7 : vector<16x512xf32>
    %9 = arith.truncf %8 : vector<16x512xf32> to vector<16x512xbf16>
    %c0_6 = arith.constant 0 : index
    %c0_7 = arith.constant 0 : index
    %10 = vector.load %arg4[%c0_6, %c0_7] : memref<512x512xbf16, #tpu.memory_space<vmem>>, vector<512x512xbf16>
    %cst_8 = arith.constant dense<0.000000e+00> : vector<16x512xf32>
    %11 = tpu.matmul %9, %10, %cst_8 {dimension_numbers = #tpu.dot_dimension_numbers<[1], [0], [0], [1], [0, 0, 1, 1], [], []>} : vector<16x512xbf16>, vector<512x512xbf16>, vector<16x512xf32> -> vector<16x512xf32>
    %c0_9 = arith.constant 0 : index
    %c0_10 = arith.constant 0 : index
    %12 = vector.load %arg5[%c0_9, %c0_10] : memref<1x512xf32, #tpu.memory_space<vmem>>, vector<1x512xf32>
    %13 = vector.broadcast %12 : vector<1x512xf32> to vector<16x512xf32>
    %14 = arith.addf %11, %13 : vector<16x512xf32>
    %cst_11 = arith.constant 0.000000e+00 : f32
    %15 = vector.broadcast %cst_11 : f32 to vector<16x512xf32>
    %16 = arith.maximumf %14, %15 : vector<16x512xf32>
    %17 = arith.truncf %16 : vector<16x512xf32> to vector<16x512xbf16>
    %c0_12 = arith.constant 0 : index
    %c0_13 = arith.constant 0 : index
    %18 = vector.load %arg6[%c0_12, %c0_13] : memref<512x16xbf16, #tpu.memory_space<vmem>>, vector<512x16xbf16>
    %cst_14 = arith.constant dense<0.000000e+00> : vector<16x16xf32>
    %19 = tpu.matmul %17, %18, %cst_14 {dimension_numbers = #tpu.dot_dimension_numbers<[1], [0], [0], [1], [0, 0, 1, 1], [], []>} : vector<16x512xbf16>, vector<512x16xbf16>, vector<16x16xf32> -> vector<16x16xf32>
    %20 = arith.truncf %19 : vector<16x16xf32> to vector<16x16xbf16>
    %c0_15 = arith.constant 0 : index
    %c0_16 = arith.constant 0 : index
    %21 = vector.load %arg7[%c0_15, %c0_16] : memref<16x4096xbf16, #tpu.memory_space<vmem>>, vector<16x4096xbf16>
    %cst_17 = arith.constant dense<0.000000e+00> : vector<16x4096xf32>
    %22 = tpu.matmul %20, %21, %cst_17 {dimension_numbers = #tpu.dot_dimension_numbers<[1], [0], [0], [1], [0, 0, 1, 1], [], []>} : vector<16x16xbf16>, vector<16x4096xbf16>, vector<16x4096xf32> -> vector<16x4096xf32>
    %c0_18 = arith.constant 0 : index
    %c0_19 = arith.constant 0 : index
    %23 = vector.load %arg8[%c0_18, %c0_19] : memref<1x4096xf32, #tpu.memory_space<vmem>>, vector<1x4096xf32>
    %24 = vector.broadcast %23 : vector<1x4096xf32> to vector<16x4096xf32>
    %25 = arith.addf %22, %24 : vector<16x4096xf32>
    %26 = arith.truncf %25 : vector<16x4096xf32> to vector<16x4096xbf16>
    %cst_20 = arith.constant 5.000000e-01 : bf16
    %27 = vector.broadcast %cst_20 : bf16 to vector<16x4096xbf16>
    %28 = arith.mulf %27, %26 : vector<16x4096xbf16>
    %29 = math.tanh %28 : vector<16x4096xbf16>
    %cst_21 = arith.constant 1.000000e+00 : bf16
    %30 = vector.broadcast %cst_21 : bf16 to vector<16x4096xbf16>
    %31 = arith.addf %29, %30 : vector<16x4096xbf16>
    %cst_22 = arith.constant 5.000000e-01 : bf16
    %32 = vector.broadcast %cst_22 : bf16 to vector<16x4096xbf16>
    %33 = arith.mulf %32, %31 : vector<16x4096xbf16>
    %c0_23 = arith.constant 0 : index
    %c0_24 = arith.constant 0 : index
    %34 = vector.load %arg9[%c0_23, %c0_24] : memref<16x4096xbf16, #tpu.memory_space<vmem>>, vector<16x4096xbf16>
    tpu.vector_store %arg9[%c0_23, %c0_24], %33 {strides = array<i32>} : memref<16x4096xbf16, #tpu.memory_space<vmem>>, vector<16x4096xbf16>,
    return
  }
  func.func @transform_0(%arg0: i32) -> (i32, i32) {
    %c0_i32 = arith.constant 0 : i32
    %c0_i32_0 = arith.constant 0 : i32
    return %arg0, %c0_i32 : i32, i32
  }
  func.func @transform_1(%arg0: i32) -> (i32, i32) {
    %c0_i32 = arith.constant 0 : i32
    %c0_i32_0 = arith.constant 0 : i32
    %c0_i32_1 = arith.constant 0 : i32
    return %c0_i32, %c0_i32_0 : i32, i32
  }
  func.func @transform_2(%arg0: i32) -> (i32, i32) {
    %c0_i32 = arith.constant 0 : i32
    %c0_i32_0 = arith.constant 0 : i32
    %c0_i32_1 = arith.constant 0 : i32
    return %c0_i32, %c0_i32_0 : i32, i32
  }
  func.func @transform_3(%arg0: i32) -> (i32, i32) {
    %c0_i32 = arith.constant 0 : i32
    %c0_i32_0 = arith.constant 0 : i32
    %c0_i32_1 = arith.constant 0 : i32
    return %c0_i32, %c0_i32_0 : i32, i32
  }
  func.func @transform_4(%arg0: i32) -> (i32, i32) {
    %c0_i32 = arith.constant 0 : i32
    %c0_i32_0 = arith.constant 0 : i32
    %c0_i32_1 = arith.constant 0 : i32
    return %c0_i32, %c0_i32_0 : i32, i32
  }
  func.func @transform_5(%arg0: i32) -> (i32, i32) {
    %c0_i32 = arith.constant 0 : i32
    %c0_i32_0 = arith.constant 0 : i32
    %c0_i32_1 = arith.constant 0 : i32
    return %c0_i32, %c0_i32_0 : i32, i32
  }
  func.func @transform_6(%arg0: i32) -> (i32, i32) {
    %c0_i32 = arith.constant 0 : i32
    %c0_i32_0 = arith.constant 0 : i32
    %c0_i32_1 = arith.constant 0 : i32
    return %c0_i32, %c0_i32_0 : i32, i32
  }
  func.func @transform_7(%arg0: i32) -> (i32, i32) {
    %c0_i32 = arith.constant 0 : i32
    %c0_i32_0 = arith.constant 0 : i32
    %c0_i32_1 = arith.constant 0 : i32
    return %c0_i32, %c0_i32_0 : i32, i32
  }
  func.func @transform_8(%arg0: i32) -> (i32, i32) {
    %c0_i32 = arith.constant 0 : i32
    %c0_i32_0 = arith.constant 0 : i32
    return %arg0, %c0_i32 : i32, i32
  }
}

module attributes {stable_mosaic.version = 11 : i64} {
  func.func @_g_kernel(%arg0: i32, %arg1: memref<16x32xf32, #tpu.memory_space<vmem>>, %arg2: memref<32x512xbf16, #tpu.memory_space<vmem>>, %arg3: memref<1x512xf32, #tpu.memory_space<vmem>>, %arg4: memref<512x512xbf16, #tpu.memory_space<vmem>>, %arg5: memref<1x512xf32, #tpu.memory_space<vmem>>, %arg6: memref<512x16xbf16, #tpu.memory_space<vmem>>, %arg7: memref<16x4096xbf16, #tpu.memory_space<vmem>>, %arg8: memref<1x4096xf32, #tpu.memory_space<vmem>>, %arg9: memref<16x4096xbf16, #tpu.memory_space<vmem>>) attributes {dimension_semantics = [#tpu.dimension_semantics<parallel>], iteration_bounds = array<i64: 1>, scalar_prefetch = 0 : i64, scratch_operands = 0 : i64, tpu.core_type = #tpu.core_type<tc>, window_params = [{transform_indices = @transform_0, window_bounds = array<i64: 16, 32>}, {pipeline_mode = #tpu.pipeline_mode<synchronous>, transform_indices = @transform_1, window_bounds = array<i64: 32, 512>}, {pipeline_mode = #tpu.pipeline_mode<synchronous>, transform_indices = @transform_2, window_bounds = array<i64: 1, 512>}, {pipeline_mode = #tpu.pipeline_mode<synchronous>, transform_indices = @transform_3, window_bounds = array<i64: 512, 512>}, {pipeline_mode = #tpu.pipeline_mode<synchronous>, transform_indices = @transform_4, window_bounds = array<i64: 1, 512>}, {pipeline_mode = #tpu.pipeline_mode<synchronous>, transform_indices = @transform_5, window_bounds = array<i64: 512, 16>}, {pipeline_mode = #tpu.pipeline_mode<synchronous>, transform_indices = @transform_6, window_bounds = array<i64: 16, 4096>}, {pipeline_mode = #tpu.pipeline_mode<synchronous>, transform_indices = @transform_7, window_bounds = array<i64: 1, 4096>}, {transform_indices = @transform_8, window_bounds = array<i64: 16, 4096>}]} {
    %c0 = arith.constant 0 : index
    %c0_0 = arith.constant 0 : index
    %0 = vector.load %arg1[%c0, %c0_0] : memref<16x32xf32, #tpu.memory_space<vmem>>, vector<16x32xf32>
    %1 = arith.truncf %0 : vector<16x32xf32> to vector<16x32xbf16>
    %c0_1 = arith.constant 0 : index
    %c0_2 = arith.constant 0 : index
    %2 = vector.load %arg2[%c0_1, %c0_2] : memref<32x512xbf16, #tpu.memory_space<vmem>>, vector<32x512xbf16>
    %cst = arith.constant dense<0.000000e+00> : vector<16x512xf32>
    %3 = tpu.matmul %1, %2, %cst {dimension_numbers = #tpu.dot_dimension_numbers<[1], [0], [0], [1], [0, 0, 1, 1], [], []>} : vector<16x32xbf16>, vector<32x512xbf16>, vector<16x512xf32> -> vector<16x512xf32>
    %c0_3 = arith.constant 0 : index
    %c0_4 = arith.constant 0 : index
    %4 = vector.load %arg3[%c0_3, %c0_4] : memref<1x512xf32, #tpu.memory_space<vmem>>, vector<1x512xf32>
    %5 = vector.broadcast %4 : vector<1x512xf32> to vector<16x512xf32>
    %6 = arith.addf %3, %5 : vector<16x512xf32>
    %cst_5 = arith.constant 0.000000e+00 : f32
    %7 = vector.broadcast %cst_5 : f32 to vector<16x512xf32>
    %8 = arith.maximumf %6, %7 : vector<16x512xf32>
    %9 = arith.truncf %8 : vector<16x512xf32> to vector<16x512xbf16>
    %c0_6 = arith.constant 0 : index
    %c0_7 = arith.constant 0 : index
    %10 = vector.load %arg4[%c0_6, %c0_7] : memref<512x512xbf16, #tpu.memory_space<vmem>>, vector<512x512xbf16>
    %cst_8 = arith.constant dense<0.000000e+00> : vector<16x512xf32>
    %11 = tpu.matmul %9, %10, %cst_8 {dimension_numbers = #tpu.dot_dimension_numbers<[1], [0], [0], [1], [0, 0, 1, 1], [], []>} : vector<16x512xbf16>, vector<512x512xbf16>, vector<16x512xf32> -> vector<16x512xf32>
    %c0_9 = arith.constant 0 : index
    %c0_10 = arith.constant 0 : index
    %12 = vector.load %arg5[%c0_9, %c0_10] : memref<1x512xf32, #tpu.memory_space<vmem>>, vector<1x512xf32>
    %13 = vector.broadcast %12 : vector<1x512xf32> to vector<16x512xf32>
    %14 = arith.addf %11, %13 : vector<16x512xf32>
    %cst_11 = arith.constant 0.000000e+00 : f32
    %15 = vector.broadcast %cst_11 : f32 to vector<16x512xf32>
    %16 = arith.maximumf %14, %15 : vector<16x512xf32>
    %17 = arith.truncf %16 : vector<16x512xf32> to vector<16x512xbf16>
    %c0_12 = arith.constant 0 : index
    %c0_13 = arith.constant 0 : index
    %18 = vector.load %arg6[%c0_12, %c0_13] : memref<512x16xbf16, #tpu.memory_space<vmem>>, vector<512x16xbf16>
    %cst_14 = arith.constant dense<0.000000e+00> : vector<16x16xf32>
    %19 = tpu.matmul %17, %18, %cst_14 {dimension_numbers = #tpu.dot_dimension_numbers<[1], [0], [0], [1], [0, 0, 1, 1], [], []>} : vector<16x512xbf16>, vector<512x16xbf16>, vector<16x16xf32> -> vector<16x16xf32>
    %20 = arith.truncf %19 : vector<16x16xf32> to vector<16x16xbf16>
    %c0_15 = arith.constant 0 : index
    %c0_16 = arith.constant 0 : index
    %21 = vector.load %arg7[%c0_15, %c0_16] : memref<16x4096xbf16, #tpu.memory_space<vmem>>, vector<16x4096xbf16>
    %cst_17 = arith.constant dense<0.000000e+00> : vector<16x4096xf32>
    %22 = tpu.matmul %20, %21, %cst_17 {dimension_numbers = #tpu.dot_dimension_numbers<[1], [0], [0], [1], [0, 0, 1, 1], [], []>} : vector<16x16xbf16>, vector<16x4096xbf16>, vector<16x4096xf32> -> vector<16x4096xf32>
    %c0_18 = arith.constant 0 : index
    %c0_19 = arith.constant 0 : index
    %23 = vector.load %arg8[%c0_18, %c0_19] : memref<1x4096xf32, #tpu.memory_space<vmem>>, vector<1x4096xf32>
    %24 = vector.broadcast %23 : vector<1x4096xf32> to vector<16x4096xf32>
    %25 = arith.addf %22, %24 : vector<16x4096xf32>
    %26 = arith.truncf %25 : vector<16x4096xf32> to vector<16x4096xbf16>
    %cst_20 = arith.constant 5.000000e-01 : bf16
    %27 = vector.broadcast %cst_20 : bf16 to vector<16x4096xbf16>
    %28 = arith.mulf %27, %26 : vector<16x4096xbf16>
    %29 = math.tanh %28 : vector<16x4096xbf16>
    %cst_21 = arith.constant 1.000000e+00 : bf16
    %30 = vector.broadcast %cst_21 : bf16 to vector<16x4096xbf16>
    %31 = arith.addf %29, %30 : vector<16x4096xbf16>
    %cst_22 = arith.constant 5.000000e-01 : bf16
    %32 = vector.broadcast %cst_22 : bf16 to vector<16x4096xbf16>
    %33 = arith.mulf %32, %31 : vector<16x4096xbf16>
    %c0_23 = arith.constant 0 : index
    %c0_24 = arith.constant 0 : index
    %34 = vector.load %arg9[%c0_23, %c0_24] : memref<16x4096xbf16, #tpu.memory_space<vmem>>, vector<16x4096xbf16>
    tpu.vector_store %arg9[%c0_23, %c0_24], %33 {strides = array<i32>} : memref<16x4096xbf16, #tpu.memory_space<vmem>>, vector<16x4096xbf16>,
    return
  }
  func.func @transform_0(%arg0: i32) -> (i32, i32) {
    %c0_i32 = arith.constant 0 : i32
    %c0_i32_0 = arith.constant 0 : i32
    return %arg0, %c0_i32 : i32, i32
  }
  func.func @transform_1(%arg0: i32) -> (i32, i32) {
    %c0_i32 = arith.constant 0 : i32
    %c0_i32_0 = arith.constant 0 : i32
    %c0_i32_1 = arith.constant 0 : i32
    return %c0_i32, %c0_i32_0 : i32, i32
  }
  func.func @transform_2(%arg0: i32) -> (i32, i32) {
    %c0_i32 = arith.constant 0 : i32
    %c0_i32_0 = arith.constant 0 : i32
    %c0_i32_1 = arith.constant 0 : i32
    return %c0_i32, %c0_i32_0 : i32, i32
  }
  func.func @transform_3(%arg0: i32) -> (i32, i32) {
    %c0_i32 = arith.constant 0 : i32
    %c0_i32_0 = arith.constant 0 : i32
    %c0_i32_1 = arith.constant 0 : i32
    return %c0_i32, %c0_i32_0 : i32, i32
  }
  func.func @transform_4(%arg0: i32) -> (i32, i32) {
    %c0_i32 = arith.constant 0 : i32
    %c0_i32_0 = arith.constant 0 : i32
    %c0_i32_1 = arith.constant 0 : i32
    return %c0_i32, %c0_i32_0 : i32, i32
  }
  func.func @transform_5(%arg0: i32) -> (i32, i32) {
    %c0_i32 = arith.constant 0 : i32
    %c0_i32_0 = arith.constant 0 : i32
    %c0_i32_1 = arith.constant 0 : i32
    return %c0_i32, %c0_i32_0 : i32, i32
  }
  func.func @transform_6(%arg0: i32) -> (i32, i32) {
    %c0_i32 = arith.constant 0 : i32
    %c0_i32_0 = arith.constant 0 : i32
    %c0_i32_1 = arith.constant 0 : i32
    return %c0_i32, %c0_i32_0 : i32, i32
  }
  func.func @transform_7(%arg0: i32) -> (i32, i32) {
    %c0_i32 = arith.constant 0 : i32
    %c0_i32_0 = arith.constant 0 : i32
    %c0_i32_1 = arith.constant 0 : i32
    return %c0_i32, %c0_i32_0 : i32, i32
  }
  func.func @transform_8(%arg0: i32) -> (i32, i32) {
    %c0_i32 = arith.constant 0 : i32
    %c0_i32_0 = arith.constant 0 : i32
    return %arg0, %c0_i32 : i32, i32
  }
}

</mosaic_0001>

<bundles_post_ra>
// kernel: _g_forward_jit.1
= control target key start
LH: loop header
LB: loop body
LE: loop exit
PB: predicated region body
PF: predicated region fallthrough
CT: control target
= control target key end

     0   :  { %13 = vsyncpa [#allocation3], 0  ;;  %s4841_s0 = inlined_call_operand.vmem [shape: f32[16,32], index: 0, kind: input, shape index: {}]   ;;  %s4842_s1 = inlined_call_operand.hbm [shape: bf16[32,512], index: 1, kind: input, shape index: {}]   ;;  %s4843_s2 = inlined_call_operand.vmem [shape: f32[1,512], index: 2, kind: input, shape index: {}]   ;;  %s4844_s3 = inlined_call_operand.hbm [shape: bf16[512,512], index: 3, kind: input, shape index: {}]   ;;  %s4845_s4 = inlined_call_operand.vmem [shape: f32[1,512], index: 4, kind: input, shape index: {}]   ;;  %s4846_s5 = inlined_call_operand.vmem [shape: bf16[512,16], index: 5, kind: input, shape index: {}]   ;;  %s4847_s6 = inlined_call_operand.vmem [shape: bf16[16,4096], index: 6, kind: input, shape index: {}]   ;;  %s4848_s7 = inlined_call_operand.vmem [shape: f32[1,4096], index: 7, kind: input, shape index: {}]   ;;  %s4849_s8 = inlined_call_operand.vmem [shape: bf16[16,4096], index: 8, kind: output, shape index: {}]  }
   0x1   :  { %s21_s29 = sshll.u32 %s4842_s1, 4  ;;  %s22_s29 = int_to_ptr.hbm [resolvable:$true] %s21_s29 }
   0x2   :  { %14 = vsyncpa [#allocation5], 0  ;;  %s4168_s30 = smov [#allocation2]   ;;  %s36_s12 = sshll.u32 %s4844_s3, 4  ;;  %s37_s12 = int_to_ptr.hbm [resolvable:$true] %s36_s12 }
   0x3   :  { %s23_s9 = sshll.u32 %s4168_s30, 4  ;;  %s4169_s13 = smov 256   ;;  %s24_s9 = int_to_ptr.vmem [resolvable:$true] %s23_s9 }
   0x4   :  { %s4170_s14 = smov 16   ;;  %s4171_s15 = smov [#allocation4]  }
   0x5   :  { %29 = dma.hbm_to_vmem [thread:$0]  %s22_s29, 1024, %s24_s9, [#allocation3], %s4169_s13, %s4169_s13, %s4170_s14  }
   0x6   :  { %s38_s16 = sshll.u32 %s4171_s15, 4  ;;  %s39_s16 = int_to_ptr.vmem [resolvable:$true] %s38_s16 }
   0x7   :  { %44 = dma.hbm_to_vmem [thread:$0]  %s37_s12, 16384, %s39_s16, [#allocation5], %s4169_s13, %s4169_s13, %s4170_s14  }
   0x8   :  { %4164 = dma.done.wait [#allocation3], 1024  }
   0x9   :  { %4165 = vsyncadd [#allocation3], 4294966272 }
   0xa   :  { %4166 = dma.done.wait [#allocation5], 16384  }
   0xb   :  { %4167 = vsyncadd [#allocation5], 4294950912  ;;  %v2966_v0 = vld [vmem:[#allocation2 + $0x20] sm:$0xf]  ;;  %v3790_v1 = vld [vmem:[#allocation2 + $0x2c] sm:$0xf0] }
   0xc   :  { %v3788_v2 = vld [vmem:[#allocation2 + $0x24] sm:$0xf]  ;;  %v2967_v3 = vor.u32 %v3790_v1, %v2966_v0  ;;  %v2968_v4 = vld [vmem:[#allocation2 + $0x30] sm:$0xf0]  ;;  %v2974_v5 = vld [vmem:[#allocation2 + $0x28] sm:$0xf] }
   0xd   :  { %v3791_v6 = vld [vmem:[#allocation2 + $0x34] sm:$0xf0]  ;;  %v2971_v7 = vor.u32 %v3788_v2, %v2968_v4  ;;  %v3789_v9 = vld [vmem:[#allocation2 + $0x2c] sm:$0xf]  ;;  %v2976_v10 = vld [vmem:[#allocation2 + $0x38] sm:$0xf0] }
   0xe   :  { %v2975_v8 = vor.u32 %v3791_v6, %v2974_v5  ;;  %v2950_v11 = vld [vmem:[#allocation2] sm:$0xf]  ;;  %133 = vmatpush.bf16.msra.mxu0 %v2967_v3  ;;  %v2979_v12 = vor.u32 %v3789_v9, %v2976_v10  ;;  %v3786_v13 = vld [vmem:[#allocation2 + $0xc] sm:$0xf0]  ;;  %v3784_v14 = vld [vmem:[#allocation2 + $0x4] sm:$0xf] }
   0xf   :  { %v2952_v15 = vld [vmem:[#allocation2 + $0x10] sm:$0xf0]  ;;  %147 = vmatpush.bf16.msra.mxu1 %v2971_v7  ;;  %v2951_v16 = vor.u32 %v3786_v13, %v2950_v11  ;;  %v2958_v18 = vld [vmem:[#allocation2 + $0x8] sm:$0xf]  ;;  %v3787_v19 = vld [vmem:[#allocation2 + $0x14] sm:$0xf0] }
  0x10   :  { %161 = vmatpush.bf16.msra.mxu2 %v2975_v8  ;;  %v2955_v17 = vor.u32 %v3784_v14, %v2952_v15  ;;  %v3785_v20 = vld [vmem:[#allocation2 + $0xc] sm:$0xf]  ;;  %175 = vmatpush.bf16.msra.mxu3 %v2979_v12  ;;  %v2959_v21 = vor.u32 %v3787_v19, %v2958_v18  ;;  %v2960_v22 = vld [vmem:[#allocation2 + $0x18] sm:$0xf0]  ;;  %v62_v23 = vld [vmem:[%s4841_s0] sm:$0xff]  ;;  %vm123_vm0 = vcmask 261120  }
  0x11   :  { %v63_v24 = vld [vmem:[%s4841_s0 + $0x8] sm:$0xff]  ;;  %v2963_v25 = vor.u32 %v3785_v20, %v2960_v22  ;;  %v3098_v27 = vld [vmem:[#allocation4 + $0xe0] sm:$0xf]  ;;  %v3822_v28 = vld [vmem:[#allocation4 + $0xec] sm:$0xf0]  ;;  %vm1786_vm1 = vcmask 130048  }
  0x12   :  { %v64_v26 = vpack.c.bf16 %v63_v24, %v62_v23  ;;  %v3226_v29 = vld [vmem:[#allocation4 + $0x1e0] sm:$0xf]  ;;  %134 = vmatpush.bf16.msra.mxu0 %v2951_v16  ;;  %v3099_v30 = vor.u32 %v3822_v28, %v3098_v27  ;;  %v3854_v31 = vld [vmem:[#allocation4 + $0x1ec] sm:$0xf0] }
  0x13   :  { %v3082_v32 = vld [vmem:[#allocation4 + $0xc0] sm:$0xf]  ;;  %v3818_v33 = vld [vmem:[#allocation4 + $0xcc] sm:$0xf0]  ;;  %148 = vmatpush.bf16.msra.mxu1 %v2955_v17  ;;  %v3227_v34 = vor.u32 %v3854_v31, %v3226_v29 }
  0x14   :  { %162 = vmatpush.bf16.msra.mxu2 %v2959_v21  ;;  %v3210_v35 = vld [vmem:[#allocation4 + $0x1c0] sm:$0xf]  ;;  %v3850_v36 = vld [vmem:[#allocation4 + $0x1cc] sm:$0xf0]  ;;  %176 = vmatpush.bf16.msra.mxu3 %v2963_v25  ;;  %v3083_v38 = vor.u32 %v3818_v33, %v3082_v32 }
  0x15   :  { %v3354_v37 = vld [vmem:[#allocation4 + $0x2e0] sm:$0xf]  ;;  %v3886_v39 = vld [vmem:[#allocation4 + $0x2ec] sm:$0xf0]  ;;  %2980 = vmatmul.msk.bf16.vlgmr.msra.gmra.mxu0 %vm123_vm0, %v64_v26  ;;  %v3211_v42 = vor.u32 %v3850_v36, %v3210_v35 }
  0x16   :  { %973 = vmatpush.bf16.msrb.mxu0 %v3099_v30  ;;  %v3482_v40 = vld [vmem:[#allocation4 + $0x3e0] sm:$0xf]  ;;  %v3918_v41 = vld [vmem:[#allocation4 + $0x3ec] sm:$0xf0]  ;;  %v3355_v43 = vor.u32 %v3886_v39, %v3354_v37  ;;  %2981 = vmatmul.msk.bf16.vlgmr.msra.gmra.mxu1 %vm123_vm0, %v64_v26 }
  0x17   :  { %987 = vmatpush.bf16.msrb.mxu1 %v3227_v34  ;;  %v3483_v44 = vor.u32 %v3918_v41, %v3482_v40  ;;  %v3066_v45 = vld [vmem:[#allocation4 + $0xa0] sm:$0xf]  ;;  %v3814_v46 = vld [vmem:[#allocation4 + $0xac] sm:$0xf0]  ;;  %2982 = vmatmul.msk.bf16.vlgmr.msra.gmra.mxu2 %vm123_vm0, %v64_v26 }
  0x18   :  { %v3194_v47 = vld [vmem:[#allocation4 + $0x1a0] sm:$0xf]  ;;  %v3846_v48 = vld [vmem:[#allocation4 + $0x1ac] sm:$0xf0]  ;;  %2983 = vmatmul.msk.bf16.vlgmr.msra.gmra.mxu3 %vm123_vm0, %v64_v26  ;;  %1001 = vmatpush.bf16.msrb.mxu2 %v3355_v43  ;;  %v3067_v54 = vor.u32 %v3814_v46, %v3066_v45 }
  0x19   :  { %v3338_v49 = vld [vmem:[#allocation4 + $0x2c0] sm:$0xf]  ;;  %v3882_v50 = vld [vmem:[#allocation4 + $0x2cc] sm:$0xf0]  ;;  %1015 = vmatpush.bf16.msrb.mxu3 %v3483_v44  ;;  %v3195_v58 = vor.u32 %v3846_v48, %v3194_v47 }
  0x1a   :  { %v3339_v51 = vor.u32 %v3882_v50, %v3338_v49  ;;  %v3466_v52 = vld [vmem:[#allocation4 + $0x3c0] sm:$0xf]  ;;  %v3914_v53 = vld [vmem:[#allocation4 + $0x3cc] sm:$0xf0]  ;;  %974 = vmatpush.bf16.msrb.mxu0 %v3083_v38  ;;  %v3820_v49 = vld [vmem:[#allocation4 + $0xe4] sm:$0xf] }
  0x1b   :  { %v3467_v55 = vor.u32 %v3914_v53, %v3466_v52  ;;  %v3050_v56 = vld [vmem:[#allocation4 + $0x80] sm:$0xf]  ;;  %v3810_v57 = vld [vmem:[#allocation4 + $0x8c] sm:$0xf0]  ;;  %988 = vmatpush.bf16.msrb.mxu1 %v3211_v42  ;;  %v3100_v50 = vld [vmem:[#allocation4 + $0xf0] sm:$0xf0] }
  0x1c   :  { %v3322_v59 = vld [vmem:[#allocation4 + $0x2a0] sm:$0xf]  ;;  %v3878_v60 = vld [vmem:[#allocation4 + $0x2ac] sm:$0xf0]  ;;  %1002 = vmatpush.bf16.msrb.mxu2 %v3339_v51  ;;  %v3051_v2 = vor.u32 %v3810_v57, %v3050_v56  ;;  %v3852_v51 = vld [vmem:[#allocation4 + $0x1e4] sm:$0xf] }
  0x1d   :  { %v3450_v61 = vld [vmem:[#allocation4 + $0x3a0] sm:$0xf]  ;;  %v3842_v63 = vld [vmem:[#allocation4 + $0x18c] sm:$0xf0]  ;;  %v3323_v1 = vor.u32 %v3878_v60, %v3322_v59  ;;  %1016 = vmatpush.bf16.msrb.mxu3 %v3467_v55  ;;  %v3228_v52 = vld [vmem:[#allocation4 + $0x1f0] sm:$0xf0] }
  0x1e   :  { %v3178_v62 = vld [vmem:[#allocation4 + $0x180] sm:$0xf]  ;;  %v3910_v0 = vld [vmem:[#allocation4 + $0x3ac] sm:$0xf0]  ;;  %975 = vmatpush.bf16.msrb.mxu0 %v3067_v54  ;;  %v3816_v56 = vld [vmem:[#allocation4 + $0xc4] sm:$0xf] }
  0x1f   :  { %v3451_v3 = vor.u32 %v3910_v0, %v3450_v61  ;;  %v3034_v4 = vld [vmem:[#allocation4 + $0x60] sm:$0xf]  ;;  %v3874_v6 = vld [vmem:[#allocation4 + $0x28c] sm:$0xf0]  ;;  %989 = vmatpush.bf16.msrb.mxu1 %v3195_v58  ;;  %v3179_v7 = vor.u32 %v3842_v63, %v3178_v62  ;;  %v3103_v61 = vor.u32 %v3820_v49, %v3100_v50  ;;  %v3884_v63 = vld [vmem:[#allocation4 + $0x2e4] sm:$0xf] }
  0x20   :  { %v3306_v5 = vld [vmem:[#allocation4 + $0x280] sm:$0xf]  ;;  %v3806_v8 = vld [vmem:[#allocation4 + $0x6c] sm:$0xf0]  ;;  %1003 = vmatpush.bf16.msrb.mxu2 %v3323_v1  ;;  %v3356_v0 = vld [vmem:[#allocation4 + $0x2f0] sm:$0xf0]  ;;  %v3231_v1 = vor.u32 %v3852_v51, %v3228_v52 }
  0x21   :  { %v3434_v9 = vld [vmem:[#allocation4 + $0x380] sm:$0xf]  ;;  %v3906_v10 = vld [vmem:[#allocation4 + $0x38c] sm:$0xf0]  ;;  %v3307_v13 = vor.u32 %v3874_v6, %v3306_v5  ;;  %1017 = vmatpush.bf16.msrb.mxu3 %v3451_v3  ;;  %v3035_v14 = vor.u32 %v3806_v8, %v3034_v4  ;;  %v3916_v3 = vld [vmem:[#allocation4 + $0x3e4] sm:$0xf] }
  0x22   :  { %v3162_v11 = vld [vmem:[#allocation4 + $0x160] sm:$0xf]  ;;  %v3838_v12 = vld [vmem:[#allocation4 + $0x16c] sm:$0xf0]  ;;  %976 = vmatpush.bf16.msrb.mxu0 %v3051_v2  ;;  %v3435_v15 = vor.u32 %v3906_v10, %v3434_v9  ;;  %v3084_v2 = vld [vmem:[#allocation4 + $0xd0] sm:$0xf0]  ;;  %v3359_v9 = vor.u32 %v3884_v63, %v3356_v0 }
  0x23   :  { %v3018_v16 = vld [vmem:[#allocation4 + $0x40] sm:$0xf]  ;;  %v3870_v18 = vld [vmem:[#allocation4 + $0x26c] sm:$0xf0]  ;;  %990 = vmatpush.bf16.msrb.mxu1 %v3179_v7  ;;  %v3163_v19 = vor.u32 %v3838_v12, %v3162_v11  ;;  %v3484_v4 = vld [vmem:[#allocation4 + $0x3f0] sm:$0xf0]  ;;  %v3087_v10 = vor.u32 %v3816_v56, %v3084_v2 }
  0x24   :  { %v3290_v17 = vld [vmem:[#allocation4 + $0x260] sm:$0xf]  ;;  %v3802_v20 = vld [vmem:[#allocation4 + $0x4c] sm:$0xf0]  ;;  %1004 = vmatpush.bf16.msrb.mxu2 %v3307_v13  ;;  %v3848_v5 = vld [vmem:[#allocation4 + $0x1c4] sm:$0xf]  ;;  %v3487_v11 = vor.u32 %v3916_v3, %v3484_v4 }
  0x25   :  { %v3418_v21 = vld [vmem:[#allocation4 + $0x360] sm:$0xf]  ;;  %v3902_v22 = vld [vmem:[#allocation4 + $0x36c] sm:$0xf0]  ;;  %v3291_v25 = vor.u32 %v3870_v18, %v3290_v17  ;;  %1018 = vmatpush.bf16.msrb.mxu3 %v3435_v15  ;;  %v3019_v26 = vor.u32 %v3802_v20, %v3018_v16  ;;  %v3212_v6 = vld [vmem:[#allocation4 + $0x1d0] sm:$0xf0] }
  0x26   :  { %v3146_v23 = vld [vmem:[#allocation4 + $0x140] sm:$0xf]  ;;  %v3834_v24 = vld [vmem:[#allocation4 + $0x14c] sm:$0xf0]  ;;  %977 = vmatpush.bf16.msrb.mxu0 %v3035_v14  ;;  %v3419_v27 = vor.u32 %v3902_v22, %v3418_v21  ;;  %v3812_v12 = vld [vmem:[#allocation4 + $0xa4] sm:$0xf]  ;;  %v3215_v15 = vor.u32 %v3848_v5, %v3212_v6 }
  0x27   :  { %v3002_v28 = vld [vmem:[#allocation4 + $0x20] sm:$0xf]  ;;  %v3866_v30 = vld [vmem:[#allocation4 + $0x24c] sm:$0xf0]  ;;  %991 = vmatpush.bf16.msrb.mxu1 %v3163_v19  ;;  %v3147_v31 = vor.u32 %v3834_v24, %v3146_v23  ;;  %v3880_v13 = vld [vmem:[#allocation4 + $0x2c4] sm:$0xf] }
  0x28   :  { %v3274_v29 = vld [vmem:[#allocation4 + $0x240] sm:$0xf]  ;;  %v3798_v32 = vld [vmem:[#allocation4 + $0x2c] sm:$0xf0]  ;;  %1005 = vmatpush.bf16.msrb.mxu2 %v3291_v25  ;;  %v3340_v14 = vld [vmem:[#allocation4 + $0x2d0] sm:$0xf0] }
  0x29   :  { %v3402_v33 = vld [vmem:[#allocation4 + $0x340] sm:$0xf]  ;;  %v3898_v34 = vld [vmem:[#allocation4 + $0x34c] sm:$0xf0]  ;;  %v3275_v37 = vor.u32 %v3866_v30, %v3274_v29  ;;  %1019 = vmatpush.bf16.msrb.mxu3 %v3419_v27  ;;  %v3003_v39 = vor.u32 %v3798_v32, %v3002_v28  ;;  %v3068_v16 = vld [vmem:[#allocation4 + $0xb0] sm:$0xf0]  ;;  %v3343_v21 = vor.u32 %v3880_v13, %v3340_v14 }
  0x2a   :  { %v3130_v35 = vld [vmem:[#allocation4 + $0x120] sm:$0xf]  ;;  %v3830_v36 = vld [vmem:[#allocation4 + $0x12c] sm:$0xf0]  ;;  %978 = vmatpush.bf16.msrb.mxu0 %v3019_v26  ;;  %v3403_v40 = vor.u32 %v3898_v34, %v3402_v33  ;;  %v3912_v17 = vld [vmem:[#allocation4 + $0x3c4] sm:$0xf]  ;;  %v3071_v22 = vor.u32 %v3812_v12, %v3068_v16 }
  0x2b   :  { %v2986_v38 = vld [vmem:[#allocation4] sm:$0xf]  ;;  %v3794_v41 = vld [vmem:[#allocation4 + $0xc] sm:$0xf0]  ;;  %992 = vmatpush.bf16.msrb.mxu1 %v3147_v31  ;;  %v3131_v44 = vor.u32 %v3830_v36, %v3130_v35  ;;  %v3468_v18 = vld [vmem:[#allocation4 + $0x3d0] sm:$0xf0] }
  0x2c   :  { %v3258_v42 = vld [vmem:[#allocation4 + $0x220] sm:$0xf]  ;;  %v3862_v43 = vld [vmem:[#allocation4 + $0x22c] sm:$0xf0]  ;;  %1006 = vmatpush.bf16.msrb.mxu2 %v3275_v37  ;;  %v2987_v54 = vor.u32 %v3794_v41, %v2986_v38  ;;  %v3844_v19 = vld [vmem:[#allocation4 + $0x1a4] sm:$0xf]  ;;  %v3471_v23 = vor.u32 %v3912_v17, %v3468_v18 }
  0x2d   :  { %v3114_v45 = vld [vmem:[#allocation4 + $0x100] sm:$0xf]  ;;  %v3894_v47 = vld [vmem:[#allocation4 + $0x32c] sm:$0xf0]  ;;  %v3259_v53 = vor.u32 %v3862_v43, %v3258_v42  ;;  %1020 = vmatpush.bf16.msrb.mxu3 %v3403_v40  ;;  %v3196_v20 = vld [vmem:[#allocation4 + $0x1b0] sm:$0xf0] }
  0x2e   :  { %v3386_v46 = vld [vmem:[#allocation4 + $0x320] sm:$0xf]  ;;  %v3826_v48 = vld [vmem:[#allocation4 + $0x10c] sm:$0xf0]  ;;  %979 = vmatpush.bf16.msrb.mxu0 %v3003_v39  ;;  %v3199_v24 = vor.u32 %v3844_v19, %v3196_v20  ;;  %v3808_v25 = vld [vmem:[#allocation4 + $0x84] sm:$0xf] }
  0x2f   :  { %v3387_v55 = vor.u32 %v3894_v47, %v3386_v46  ;;  %v3242_v57 = vld [vmem:[#allocation4 + $0x200] sm:$0xf]  ;;  %v3858_v58 = vld [vmem:[#allocation4 + $0x20c] sm:$0xf0]  ;;  %993 = vmatpush.bf16.msrb.mxu1 %v3131_v44  ;;  %v3115_v60 = vor.u32 %v3826_v48, %v3114_v45  ;;  %v3052_v26 = vld [vmem:[#allocation4 + $0x90] sm:$0xf0] }
  0x30   :  { %v3370_v59 = vld [vmem:[#allocation4 + $0x300] sm:$0xf]  ;;  %v3890_v62 = vld [vmem:[#allocation4 + $0x30c] sm:$0xf0]  ;;  %1007 = vmatpush.bf16.msrb.mxu2 %v3259_v53  ;;  %v3243_v7 = vor.u32 %v3858_v58, %v3242_v57  ;;  %v3840_v27 = vld [vmem:[#allocation4 + $0x184] sm:$0xf]  ;;  %v3055_v29 = vor.u32 %v3808_v25, %v3052_v26 }
  0x31   :  { %1021 = vmatpush.bf16.msrb.mxu3 %v3387_v55  ;;  %v3371_v8 = vor.u32 %v3890_v62, %v3370_v59  ;;  %v3180_v28 = vld [vmem:[#allocation4 + $0x190] sm:$0xf0]  ;;  %v3876_v31 = vld [vmem:[#allocation4 + $0x2a4] sm:$0xf] }
  0x32   :  { %980 = vmatpush.bf16.msrb.mxu0 %v2987_v54  ;;  %v3183_v30 = vor.u32 %v3840_v27, %v3180_v28  ;;  %v3324_v32 = vld [vmem:[#allocation4 + $0x2b0] sm:$0xf0]  ;;  %v3908_v33 = vld [vmem:[#allocation4 + $0x3a4] sm:$0xf]  ;;  %v73_v27 = vld [vmem:[%s4843_s2] sm:$0xf] }
  0x33   :  { %994 = vmatpush.bf16.msrb.mxu1 %v3115_v60  ;;  %v3327_v34 = vor.u32 %v3876_v31, %v3324_v32  ;;  %v3452_v35 = vld [vmem:[#allocation4 + $0x3b0] sm:$0xf0]  ;;  %v3804_v37 = vld [vmem:[#allocation4 + $0x64] sm:$0xf]  ;;  %v76_v31 = vperm.slane %v73_v27, 1 }
  0x34   :  { %1008 = vmatpush.bf16.msrb.mxu2 %v3243_v7  ;;  %v3455_v36 = vor.u32 %v3908_v33, %v3452_v35  ;;  %v3036_v38 = vld [vmem:[#allocation4 + $0x70] sm:$0xf0]  ;;  %v3836_v39 = vld [vmem:[#allocation4 + $0x164] sm:$0xf] }
  0x35   :  { %1022 = vmatpush.bf16.msrb.mxu3 %v3371_v8  ;;  %v3039_v40 = vor.u32 %v3804_v37, %v3036_v38  ;;  %v3164_v41 = vld [vmem:[#allocation4 + $0x170] sm:$0xf0]  ;;  %v3872_v43 = vld [vmem:[#allocation4 + $0x284] sm:$0xf] }
  0x36   :  { %1029 = vmatpush.bf16.msra.mxu0 %v3103_v61  ;;  %v3167_v42 = vor.u32 %v3836_v39, %v3164_v41  ;;  %v3308_v44 = vld [vmem:[#allocation4 + $0x290] sm:$0xf0]  ;;  %v3904_v46 = vld [vmem:[#allocation4 + $0x384] sm:$0xf]  ;;  %v3823_v41 = vld [vmem:[#allocation4 + $0xf4] sm:$0xf0] }
  0x37   :  { %1043 = vmatpush.bf16.msra.mxu1 %v3231_v1  ;;  %v3311_v45 = vor.u32 %v3872_v43, %v3308_v44  ;;  %v3436_v47 = vld [vmem:[#allocation4 + $0x390] sm:$0xf0]  ;;  %v3800_v49 = vld [vmem:[#allocation4 + $0x44] sm:$0xf]  ;;  %v77_v43 = vperm.slane %v73_v27, 2 }
  0x38   :  { %1057 = vmatpush.bf16.msra.mxu2 %v3359_v9  ;;  %v3439_v48 = vor.u32 %v3904_v46, %v3436_v47  ;;  %v3020_v50 = vld [vmem:[#allocation4 + $0x50] sm:$0xf0]  ;;  %v3832_v51 = vld [vmem:[#allocation4 + $0x144] sm:$0xf]  ;;  %v3855_v46 = vld [vmem:[#allocation4 + $0x1f4] sm:$0xf0] }
  0x39   :  { %1071 = vmatpush.bf16.msra.mxu3 %v3487_v11  ;;  %v3023_v52 = vor.u32 %v3800_v49, %v3020_v50  ;;  %v3148_v53 = vld [vmem:[#allocation4 + $0x150] sm:$0xf0]  ;;  %v3868_v55 = vld [vmem:[#allocation4 + $0x264] sm:$0xf]  ;;  %v78_v47 = vperm.slane %v73_v27, 3 }
  0x3a   :  { %1030 = vmatpush.bf16.msra.mxu0 %v3087_v10  ;;  %v3151_v54 = vor.u32 %v3832_v51, %v3148_v53  ;;  %v3292_v56 = vld [vmem:[#allocation4 + $0x270] sm:$0xf0]  ;;  %v3900_v57 = vld [vmem:[#allocation4 + $0x364] sm:$0xf]  ;;  %v3090_v53 = vld [vmem:[#allocation4 + $0xc8] sm:$0xf] }
  0x3b   :  { %1044 = vmatpush.bf16.msra.mxu1 %v3215_v15  ;;  %v3295_v58 = vor.u32 %v3868_v55, %v3292_v56  ;;  %v3420_v59 = vld [vmem:[#allocation4 + $0x370] sm:$0xf0]  ;;  %v3796_v61 = vld [vmem:[#allocation4 + $0x24] sm:$0xf] }
  0x3c   :  { %1058 = vmatpush.bf16.msra.mxu2 %v3343_v21  ;;  %v3423_v60 = vor.u32 %v3900_v57, %v3420_v59  ;;  %v3004_v62 = vld [vmem:[#allocation4 + $0x30] sm:$0xf0]  ;;  %v3828_v0 = vld [vmem:[#allocation4 + $0x124] sm:$0xf]  ;;  %v3218_v57 = vld [vmem:[#allocation4 + $0x1c8] sm:$0xf] }
  0x3d   :  { %1072 = vmatpush.bf16.msra.mxu3 %v3471_v23  ;;  %v3007_v63 = vor.u32 %v3796_v61, %v3004_v62  ;;  %v3132_v1 = vld [vmem:[#allocation4 + $0x130] sm:$0xf0]  ;;  %v3864_v3 = vld [vmem:[#allocation4 + $0x244] sm:$0xf] }
  0x3e   :  { %1031 = vmatpush.bf16.msra.mxu0 %v3071_v22  ;;  %v3135_v2 = vor.u32 %v3828_v0, %v3132_v1  ;;  %v3276_v4 = vld [vmem:[#allocation4 + $0x250] sm:$0xf0]  ;;  %v3896_v5 = vld [vmem:[#allocation4 + $0x344] sm:$0xf]  ;;  %v3362_v0 = vld [vmem:[#allocation4 + $0x2e8] sm:$0xf] }
  0x3f   :  { %1045 = vmatpush.bf16.msra.mxu1 %v3199_v24  ;;  %v3279_v6 = vor.u32 %v3864_v3, %v3276_v4  ;;  %v3404_v7 = vld [vmem:[#allocation4 + $0x350] sm:$0xf0]  ;;  %v3792_v9 = vld [vmem:[#allocation4 + $0x4] sm:$0xf]  ;;  %v3887_v1 = vld [vmem:[#allocation4 + $0x2f4] sm:$0xf0] }
  0x40   :  { %1059 = vmatpush.bf16.msra.mxu2 %v3327_v34  ;;  %v3407_v8 = vor.u32 %v3896_v5, %v3404_v7  ;;  %v2988_v10 = vld [vmem:[#allocation4 + $0x10] sm:$0xf0]  ;;  %v3824_v11 = vld [vmem:[#allocation4 + $0x104] sm:$0xf]  ;;  %v3919_v5 = vld [vmem:[#allocation4 + $0x3f4] sm:$0xf0] }
  0x41   :  { %1073 = vmatpush.bf16.msra.mxu3 %v3455_v36  ;;  %v2991_v12 = vor.u32 %v3792_v9, %v2988_v10  ;;  %v3116_v13 = vld [vmem:[#allocation4 + $0x110] sm:$0xf0]  ;;  %v3860_v15 = vld [vmem:[#allocation4 + $0x224] sm:$0xf]  ;;  %v3815_v7 = vld [vmem:[#allocation4 + $0xb4] sm:$0xf0] }
  0x42   :  { %1032 = vmatpush.bf16.msra.mxu0 %v3055_v29  ;;  %v3119_v14 = vor.u32 %v3824_v11, %v3116_v13  ;;  %v3260_v16 = vld [vmem:[#allocation4 + $0x230] sm:$0xf0]  ;;  %v3892_v17 = vld [vmem:[#allocation4 + $0x324] sm:$0xf]  ;;  %v75_v29 = vperm.slane %v73_v27, 0 }
  0x43   :  { %1046 = vmatpush.bf16.msra.mxu1 %v3183_v30  ;;  %v3388_v18 = vld [vmem:[#allocation4 + $0x330] sm:$0xf0]  ;;  %v3263_v19 = vor.u32 %v3860_v15, %v3260_v16  ;;  %v3856_v21 = vld [vmem:[#allocation4 + $0x204] sm:$0xf]  ;;  %v3202_v10 = vld [vmem:[#allocation4 + $0x1a8] sm:$0xf] }
  0x44   :  { %1060 = vmatpush.bf16.msra.mxu2 %v3311_v45  ;;  %v3391_v20 = vor.u32 %v3892_v17, %v3388_v18  ;;  %v3244_v22 = vld [vmem:[#allocation4 + $0x210] sm:$0xf0]  ;;  %v3888_v24 = vld [vmem:[#allocation4 + $0x304] sm:$0xf]  ;;  %v3234_v45 = vld [vmem:[#allocation4 + $0x1e8] sm:$0xf] }
  0x45   :  { %1074 = vmatpush.bf16.msra.mxu3 %v3439_v48  ;;  %v3247_v23 = vor.u32 %v3856_v21, %v3244_v22  ;;  %v3372_v25 = vld [vmem:[#allocation4 + $0x310] sm:$0xf0]  ;;  %v3847_v11 = vld [vmem:[#allocation4 + $0x1b4] sm:$0xf0]  ;;  %v3346_v18 = vld [vmem:[#allocation4 + $0x2c8] sm:$0xf] }
  0x46   :  { %1033 = vmatpush.bf16.msra.mxu0 %v3039_v40  ;;  %v3375_v26 = vor.u32 %v3888_v24, %v3372_v25  ;;  %v3106_v40 = vld [vmem:[#allocation4 + $0xe8] sm:$0xf]  ;;  %v3203_v22 = vor.u32 %v3847_v11, %v3202_v10  ;;  %v3811_v25 = vld [vmem:[#allocation4 + $0x94] sm:$0xf0] }
  0x47   :  { %1047 = vmatpush.bf16.msra.mxu1 %v3167_v42  ;;  %v3107_v50 = vor.u32 %v3823_v41, %v3106_v40  ;;  %v3058_v24 = vld [vmem:[#allocation4 + $0x88] sm:$0xf]  ;;  %v3843_v27 = vld [vmem:[#allocation4 + $0x194] sm:$0xf0] }
  0x48   :  { %1061 = vmatpush.bf16.msra.mxu2 %v3295_v58  ;;  %v3851_v58 = vld [vmem:[#allocation4 + $0x1d4] sm:$0xf0]  ;;  %v2994_v10 = vld [vmem:[#allocation4 + $0x8] sm:$0xf] }
  0x49   :  { %1075 = vmatpush.bf16.msra.mxu3 %v3423_v60  ;;  %v3219_v4 = vor.u32 %v3851_v58, %v3218_v57  ;;  %v3871_v57 = vld [vmem:[#allocation4 + $0x274] sm:$0xf0] }
  0x4a   :  { %1034 = vmatpush.bf16.msra.mxu0 %v3023_v52  ;;  %v3235_v52 = vor.u32 %v3855_v46, %v3234_v45  ;;  %v3442_v46 = vld [vmem:[#allocation4 + $0x388] sm:$0xf]  ;;  %v3795_v11 = vld [vmem:[#allocation4 + $0x14] sm:$0xf0] }
  0x4b   :  { %1048 = vmatpush.bf16.msra.mxu1 %v3151_v54  ;;  %v3819_v54 = vld [vmem:[#allocation4 + $0xd4] sm:$0xf0] }
  0x4c   :  { %1062 = vmatpush.bf16.msra.mxu2 %v3279_v6  ;;  %v3074_v6 = vld [vmem:[#allocation4 + $0xa8] sm:$0xf] }
  0x4d   :  { %1076 = vmatpush.bf16.msra.mxu3 %v3407_v8  ;;  %v3075_v17 = vor.u32 %v3815_v7, %v3074_v6  ;;  %v3410_v6 = vld [vmem:[#allocation4 + $0x348] sm:$0xf] }
  0x4e   :  { %1035 = vmatpush.bf16.msra.mxu0 %v3007_v63  ;;  %v3091_v63 = vor.u32 %v3819_v54, %v3090_v53 }
  0x4f   :  { %1049 = vmatpush.bf16.msra.mxu1 %v3135_v2  ;;  %v3490_v2 = vld [vmem:[#allocation4 + $0x3e8] sm:$0xf] }
  0x50   :  { %1063 = vmatpush.bf16.msra.mxu2 %v3263_v19  ;;  %v3491_v16 = vor.u32 %v3919_v5, %v3490_v2  ;;  %v3883_v19 = vld [vmem:[#allocation4 + $0x2d4] sm:$0xf0] }
  0x51   :  { %1077 = vmatpush.bf16.msra.mxu3 %v3391_v20  ;;  %v3474_v20 = vld [vmem:[#allocation4 + $0x3c8] sm:$0xf]  ;;  %v3867_v5 = vld [vmem:[#allocation4 + $0x254] sm:$0xf0] }
  0x52   :  { %1036 = vmatpush.bf16.msra.mxu0 %v2991_v12 }
  0x53   :  { %1050 = vmatpush.bf16.msra.mxu1 %v3119_v14  ;;  %v3363_v14 = vor.u32 %v3887_v1, %v3362_v0  ;;  %v3138_v0 = vld [vmem:[#allocation4 + $0x128] sm:$0xf]  ;;  %v3831_v1 = vld [vmem:[#allocation4 + $0x134] sm:$0xf0] }
  0x54   :  { %1064 = vmatpush.bf16.msra.mxu2 %v3247_v23  ;;  %v3915_v23 = vld [vmem:[#allocation4 + $0x3d4] sm:$0xf0] }
  0x55   :  { %1078 = vmatpush.bf16.msra.mxu3 %v3375_v26  ;;  %v3186_v26 = vld [vmem:[#allocation4 + $0x188] sm:$0xf] }
  0x92   :  { %v136_v28 = vpop.f32.mrf.mxu0 }
  0x93   :  { %v150_v30 = vpop.f32.mrf.mxu1  ;;  %v137_v32 = vadd.f32 %v136_v28, %v75_v29  ;;  %v3347_v28 = vor.u32 %v3883_v19, %v3346_v18  ;;  %v3853_v18 = vld [vmem:[#allocation4 + $0x1ec] sm:$0xf]  ;;  %v3236_v19 = vld [vmem:[#allocation4 + $0x1f8] sm:$0xf0] }
  0x94   :  { %v151_v33 = vadd.f32 %v150_v30, %v76_v31  ;;  %v3059_v30 = vor.u32 %v3811_v25, %v3058_v24  ;;  %v2995_v24 = vor.u32 %v3795_v11, %v2994_v10  ;;  %v3805_v10 = vld [vmem:[#allocation4 + $0x6c] sm:$0xf]  ;;  %v3044_v11 = vld [vmem:[#allocation4 + $0x78] sm:$0xf0] }
  0x95   :  { %v183_v37 = vmax.f32 %v137_v32, 0.0  ;;  %v3879_v32 = vld [vmem:[#allocation4 + $0x2b4] sm:$0xf0] }
  0x96   :  { %v184_v42 = vmax.f32 %v151_v33, 0.0  ;;  %v3187_v33 = vor.u32 %v3843_v27, %v3186_v26  ;;  %v3394_v26 = vld [vmem:[#allocation4 + $0x328] sm:$0xf]  ;;  %v3895_v27 = vld [vmem:[#allocation4 + $0x334] sm:$0xf0] }
  0x9a   :  { %v164_v34 = vpop.f32.mrf.mxu2  ;;  %v138_v36 = vpop.f32.mrf.mxu0 }
  0x9b   :  { %v178_v35 = vpop.f32.mrf.mxu3  ;;  %v139_v38 = vadd.f32 %v138_v36, %v75_v29  ;;  %v152_v39 = vpop.f32.mrf.mxu1  ;;  %v165_v55 = vadd.f32 %v164_v34, %v77_v43  ;;  %v3475_v29 = vor.u32 %v3915_v23, %v3474_v20  ;;  %v3458_v34 = vld [vmem:[#allocation4 + $0x3a8] sm:$0xf]  ;;  %v3863_v23 = vld [vmem:[#allocation4 + $0x234] sm:$0xf0] }
  0x9c   :  { %v153_v44 = vadd.f32 %v152_v39, %v76_v31  ;;  %v179_v59 = vadd.f32 %v178_v35, %v78_v47  ;;  %v3330_v31 = vld [vmem:[#allocation4 + $0x2a8] sm:$0xf]  ;;  %v3911_v35 = vld [vmem:[#allocation4 + $0x3b4] sm:$0xf0] }
  0x9d   :  { %v187_v48 = vmax.f32 %v139_v38, 0.0  ;;  %v185_v8 = vmax.f32 %v165_v55, 0.0  ;;  %v3042_v36 = vld [vmem:[#allocation4 + $0x68] sm:$0xf]  ;;  %v3839_v39 = vld [vmem:[#allocation4 + $0x174] sm:$0xf0]  ;;  %v3331_v40 = vor.u32 %v3879_v32, %v3330_v31  ;;  %v3459_v41 = vor.u32 %v3911_v35, %v3458_v34 }
  0x9e   :  { %v188_v49 = vmax.f32 %v153_v44, 0.0  ;;  %v186_v12 = vmax.f32 %v179_v59, 0.0  ;;  %v3170_v38 = vld [vmem:[#allocation4 + $0x168] sm:$0xf]  ;;  %v3092_v32 = vld [vmem:[#allocation4 + $0xd8] sm:$0xf0]  ;;  %v3395_v35 = vor.u32 %v3895_v27, %v3394_v26 }
  0x9f   :  { %v4236_v51 = vpack.c.bf16 %v187_v48, %v183_v37  ;;  %v3807_v37 = vld [vmem:[#allocation4 + $0x74] sm:$0xf0]  ;;  %v3171_v45 = vor.u32 %v3839_v39, %v3170_v38  ;;  %v3026_v48 = vld [vmem:[#allocation4 + $0x48] sm:$0xf]  ;;  %v3220_v34 = vld [vmem:[#allocation4 + $0x1d8] sm:$0xf0] }
  0xa0   :  { %v4238_v56 = vpack.c.bf16 %v188_v49, %v184_v42  ;;  %v3314_v42 = vld [vmem:[#allocation4 + $0x288] sm:$0xf]  ;;  %v3043_v44 = vor.u32 %v3807_v37, %v3042_v36  ;;  %v3803_v49 = vld [vmem:[#allocation4 + $0x54] sm:$0xf0]  ;;  %v3833_v26 = vld [vmem:[#allocation4 + $0x14c] sm:$0xf] }
  0xa1   :  { %981 = vmatmul.bf16.vlgmr.msrb.gmra.mxu0 %v4236_v51  ;;  %v3298_v55 = vld [vmem:[#allocation4 + $0x268] sm:$0xf]  ;;  %v3027_v58 = vor.u32 %v3803_v49, %v3026_v48  ;;  %v3859_v37 = vld [vmem:[#allocation4 + $0x214] sm:$0xf0]  ;;  %v3076_v48 = vld [vmem:[#allocation4 + $0xb8] sm:$0xf0] }
  0xa2   :  { %v166_v60 = vpop.f32.mrf.mxu2  ;;  %995 = vmatmul.bf16.vlgmr.msrb.gmra.mxu1 %v4238_v56  ;;  %1085 = vmatpush.bf16.msrb.mxu0 %v3107_v50  ;;  %v3154_v50 = vld [vmem:[#allocation4 + $0x148] sm:$0xf]  ;;  %v3299_v2 = vor.u32 %v3871_v57, %v3298_v55  ;;  %v3891_v39 = vld [vmem:[#allocation4 + $0x314] sm:$0xf0]  ;;  %v3845_v49 = vld [vmem:[#allocation4 + $0x1ac] sm:$0xf] }
  0xa3   :  { %v167_v61 = vadd.f32 %v166_v60, %v77_v43  ;;  %v180_v62 = vpop.f32.mrf.mxu3  ;;  %1099 = vmatpush.bf16.msrb.mxu1 %v3235_v52  ;;  %v3875_v43 = vld [vmem:[#allocation4 + $0x294] sm:$0xf0]  ;;  %v3426_v60 = vld [vmem:[#allocation4 + $0x368] sm:$0xf]  ;;  %v3881_v55 = vld [vmem:[#allocation4 + $0x2cc] sm:$0xf] }
  0xa4   :  { %v181_v3 = vadd.f32 %v180_v62, %v78_v47  ;;  %v3907_v47 = vld [vmem:[#allocation4 + $0x394] sm:$0xf0]  ;;  %v3315_v53 = vor.u32 %v3875_v43, %v3314_v42  ;;  %v3010_v62 = vld [vmem:[#allocation4 + $0x28] sm:$0xf]  ;;  %v3348_v57 = vld [vmem:[#allocation4 + $0x2d8] sm:$0xf0] }
  0xa5   :  { %v189_v9 = vmax.f32 %v167_v61, 0.0  ;;  %v3835_v52 = vld [vmem:[#allocation4 + $0x154] sm:$0xf0]  ;;  %v3443_v54 = vor.u32 %v3907_v47, %v3442_v46  ;;  %v3250_v36 = vld [vmem:[#allocation4 + $0x208] sm:$0xf] }
  0xa6   :  { %v190_v13 = vmax.f32 %v181_v3, 0.0  ;;  %1086 = vmatpush.bf16.msrb.mxu0 %v3091_v63  ;;  %v3155_v59 = vor.u32 %v3835_v52, %v3154_v50  ;;  %v3903_v61 = vld [vmem:[#allocation4 + $0x374] sm:$0xf0]  ;;  %v3378_v38 = vld [vmem:[#allocation4 + $0x308] sm:$0xf]  ;;  %v3251_v47 = vor.u32 %v3859_v37, %v3250_v36 }
  0xa7   :  { %v4242_v15 = vpack.c.bf16 %v189_v9, %v185_v8  ;;  %1100 = vmatpush.bf16.msrb.mxu1 %v3219_v4  ;;  %v3799_v63 = vld [vmem:[#allocation4 + $0x34] sm:$0xf0]  ;;  %v3427_v3 = vor.u32 %v3903_v61, %v3426_v60  ;;  %v3282_v4 = vld [vmem:[#allocation4 + $0x248] sm:$0xf]  ;;  %v3139_v8 = vor.u32 %v3831_v1, %v3138_v0  ;;  %v3813_v46 = vld [vmem:[#allocation4 + $0xac] sm:$0xf]  ;;  %v3379_v52 = vor.u32 %v3891_v39, %v3378_v38 }
  0xa8   :  { %v4244_v21 = vpack.c.bf16 %v190_v13, %v186_v12  ;;  %v3011_v7 = vor.u32 %v3799_v63, %v3010_v62  ;;  %v3899_v9 = vld [vmem:[#allocation4 + $0x354] sm:$0xf0]  ;;  %v3122_v12 = vld [vmem:[#allocation4 + $0x108] sm:$0xf]  ;;  %v3204_v50 = vld [vmem:[#allocation4 + $0x1b8] sm:$0xf0] }
  0xa9   :  { %1009 = vmatmul.bf16.vlgmr.msrb.gmra.mxu2 %v4242_v15  ;;  %v3827_v13 = vld [vmem:[#allocation4 + $0x114] sm:$0xf0]  ;;  %v3411_v20 = vor.u32 %v3899_v9, %v3410_v6  ;;  %v3913_v60 = vld [vmem:[#allocation4 + $0x3cc] sm:$0xf]  ;;  %v3476_v61 = vld [vmem:[#allocation4 + $0x3d8] sm:$0xf0] }
  0xaa   :  { %1023 = vmatmul.bf16.vlgmr.msrb.gmra.mxu3 %v4244_v21  ;;  %1113 = vmatpush.bf16.msrb.mxu2 %v3363_v14  ;;  %v3821_v14 = vld [vmem:[#allocation4 + $0xec] sm:$0xf]  ;;  %v3123_v25 = vor.u32 %v3827_v13, %v3122_v12  ;;  %v3060_v63 = vld [vmem:[#allocation4 + $0x98] sm:$0xf0] }
  0xab   :  { %1127 = vmatpush.bf16.msrb.mxu3 %v3491_v16  ;;  %1087 = vmatpush.bf16.msrb.mxu0 %v3075_v17  ;;  %v3283_v16 = vor.u32 %v3867_v5, %v3282_v4  ;;  %v3108_v17 = vld [vmem:[#allocation4 + $0xf8] sm:$0xf0]  ;;  %v3809_v62 = vld [vmem:[#allocation4 + $0x8c] sm:$0xf] }
  0xac   :  { %1101 = vmatpush.bf16.msrb.mxu1 %v3203_v22  ;;  %v3266_v22 = vld [vmem:[#allocation4 + $0x228] sm:$0xf]  ;;  %v3841_v0 = vld [vmem:[#allocation4 + $0x18c] sm:$0xf]  ;;  %v3188_v1 = vld [vmem:[#allocation4 + $0x198] sm:$0xf0]  ;;  %v3063_v6 = vor.u32 %v3809_v62, %v3060_v63 }
  0xad   :  { %v3267_v31 = vor.u32 %v3863_v23, %v3266_v22  ;;  %v3877_v4 = vld [vmem:[#allocation4 + $0x2ac] sm:$0xf]  ;;  %v3332_v5 = vld [vmem:[#allocation4 + $0x2b8] sm:$0xf0] }
  0xae   :  { %1114 = vmatpush.bf16.msrb.mxu2 %v3347_v28  ;;  %v3111_v28 = vor.u32 %v3821_v14, %v3108_v17  ;;  %v3460_v9 = vld [vmem:[#allocation4 + $0x3b8] sm:$0xf0]  ;;  %v3837_v12 = vld [vmem:[#allocation4 + $0x16c] sm:$0xf]  ;;  %v3335_v14 = vor.u32 %v3877_v4, %v3332_v5 }
  0xaf   :  { %1128 = vmatpush.bf16.msrb.mxu3 %v3475_v29  ;;  %1088 = vmatpush.bf16.msrb.mxu0 %v3059_v30  ;;  %v3239_v29 = vor.u32 %v3853_v18, %v3236_v19  ;;  %v3817_v30 = vld [vmem:[#allocation4 + $0xcc] sm:$0xf]  ;;  %v3172_v13 = vld [vmem:[#allocation4 + $0x178] sm:$0xf0]  ;;  %v3047_v19 = vor.u32 %v3805_v10, %v3044_v11 }
  0xb0   :  { %1102 = vmatpush.bf16.msrb.mxu1 %v3187_v33  ;;  %v3849_v33 = vld [vmem:[#allocation4 + $0x1cc] sm:$0xf]  ;;  %v3095_v42 = vor.u32 %v3817_v30, %v3092_v32  ;;  %v3316_v18 = vld [vmem:[#allocation4 + $0x298] sm:$0xf0] }
  0xb1   :  { %1037 = vmatmul.bf16.vlgmr.msra.gmra.mxu0 %v4236_v51  ;;  %v3223_v43 = vor.u32 %v3849_v33, %v3220_v34  ;;  %v3873_v17 = vld [vmem:[#allocation4 + $0x28c] sm:$0xf]  ;;  %v3444_v23 = vld [vmem:[#allocation4 + $0x398] sm:$0xf0] }
  0xb2   :  { %1115 = vmatpush.bf16.msrb.mxu2 %v3331_v40  ;;  %1051 = vmatmul.bf16.vlgmr.msra.gmra.mxu1 %v4238_v56  ;;  %v3885_v40 = vld [vmem:[#allocation4 + $0x2ec] sm:$0xf]  ;;  %v3156_v27 = vld [vmem:[#allocation4 + $0x158] sm:$0xf0] }
  0xb3   :  { %1129 = vmatpush.bf16.msrb.mxu3 %v3459_v41  ;;  %1089 = vmatpush.bf16.msrb.mxu0 %v3043_v44  ;;  %v3364_v41 = vld [vmem:[#allocation4 + $0x2f8] sm:$0xf0]  ;;  %v3917_v44 = vld [vmem:[#allocation4 + $0x3ec] sm:$0xf]  ;;  %v3159_v33 = vor.u32 %v3833_v26, %v3156_v27  ;;  %v3928_v27 = vld [vmem:[%s4846_s5 + $0x40] sm:$0xff] }
  0xb4   :  { %1103 = vmatpush.bf16.msrb.mxu1 %v3171_v45  ;;  %v3492_v45 = vld [vmem:[#allocation4 + $0x3f8] sm:$0xf0]  ;;  %v3905_v22 = vld [vmem:[#allocation4 + $0x38c] sm:$0xf] }
  0xb5   :  { %v3869_v30 = vld [vmem:[#allocation4 + $0x26c] sm:$0xf]  ;;  %v3012_v37 = vld [vmem:[#allocation4 + $0x38] sm:$0xf0] }
  0xb6   :  { %1116 = vmatpush.bf16.msrb.mxu2 %v3315_v53  ;;  %v3367_v53 = vor.u32 %v3885_v40, %v3364_v41  ;;  %v3901_v34 = vld [vmem:[#allocation4 + $0x36c] sm:$0xf]  ;;  %v3140_v39 = vld [vmem:[#allocation4 + $0x138] sm:$0xf0] }
  0xb7   :  { %1130 = vmatpush.bf16.msrb.mxu3 %v3443_v54  ;;  %1090 = vmatpush.bf16.msrb.mxu0 %v3027_v58  ;;  %v3495_v54 = vor.u32 %v3917_v44, %v3492_v45  ;;  %v3079_v58 = vor.u32 %v3813_v46, %v3076_v48  ;;  %v3797_v36 = vld [vmem:[#allocation4 + $0x2c] sm:$0xf]  ;;  %v3927_v62 = vld [vmem:[%s4846_s5 + $0x38] sm:$0xff] }
  0xb8   :  { %1104 = vmatpush.bf16.msrb.mxu1 %v3155_v59  ;;  %v3207_v59 = vor.u32 %v3845_v49, %v3204_v50  ;;  %v3829_v38 = vld [vmem:[#allocation4 + $0x12c] sm:$0xf]  ;;  %v3015_v44 = vor.u32 %v3797_v36, %v3012_v37  ;;  %v2996_v49 = vld [vmem:[#allocation4 + $0x18] sm:$0xf0] }
  0xb9   :  { %1065 = vmatmul.bf16.vlgmr.msra.gmra.mxu2 %v4242_v15  ;;  %v3143_v45 = vor.u32 %v3829_v38, %v3140_v39  ;;  %v3897_v46 = vld [vmem:[#allocation4 + $0x34c] sm:$0xf]  ;;  %v3380_v4 = vld [vmem:[#allocation4 + $0x318] sm:$0xf0]  ;;  %v3938_v38 = vld [vmem:[%s4846_s5 + $0x90] sm:$0xff] }
  0xba   :  { %1079 = vmatmul.bf16.vlgmr.msra.gmra.mxu3 %v4244_v21  ;;  %1117 = vmatpush.bf16.msrb.mxu2 %v3299_v2  ;;  %v3351_v2 = vor.u32 %v3881_v55, %v3348_v57  ;;  %v3793_v48 = vld [vmem:[#allocation4 + $0xc] sm:$0xf]  ;;  %v3268_v57 = vld [vmem:[#allocation4 + $0x238] sm:$0xf0] }
  0xbb   :  { %1131 = vmatpush.bf16.msrb.mxu3 %v3427_v3  ;;  %1091 = vmatpush.bf16.msrb.mxu0 %v3011_v7  ;;  %v3479_v3 = vor.u32 %v3913_v60, %v3476_v61  ;;  %v3191_v7 = vor.u32 %v3841_v0, %v3188_v1  ;;  %v3825_v50 = vld [vmem:[#allocation4 + $0x10c] sm:$0xf]  ;;  %v3396_v61 = vld [vmem:[#allocation4 + $0x338] sm:$0xf0] }
  0xbc   :  { %1105 = vmatpush.bf16.msrb.mxu1 %v3139_v8  ;;  %v3909_v8 = vld [vmem:[#allocation4 + $0x3ac] sm:$0xf] }
  0xbd   :  { %v3861_v55 = vld [vmem:[#allocation4 + $0x22c] sm:$0xf] }
  0xbe   :  { %1118 = vmatpush.bf16.msrb.mxu2 %v3283_v16  ;;  %v3463_v16 = vor.u32 %v3909_v8, %v3460_v9  ;;  %v3893_v60 = vld [vmem:[#allocation4 + $0x32c] sm:$0xf]  ;;  %v3271_v63 = vor.u32 %v3861_v55, %v3268_v57  ;;  %v3934_v9 = vld [vmem:[%s4846_s5 + $0x70] sm:$0xff] }
  0xbf   :  { %1132 = vmatpush.bf16.msrb.mxu3 %v3411_v20  ;;  %1092 = vmatpush.bf16.msrb.mxu0 %v2995_v24  ;;  %v3175_v20 = vor.u32 %v3837_v12, %v3172_v13  ;;  %v3801_v24 = vld [vmem:[#allocation4 + $0x4c] sm:$0xf]  ;;  %v3399_v0 = vor.u32 %v3893_v60, %v3396_v61  ;;  %v3920_v12 = vld [vmem:[%s4846_s5] sm:$0xff] }
  0xc0   :  { %1106 = vmatpush.bf16.msrb.mxu1 %v3123_v25  ;;  %v3028_v25 = vld [vmem:[#allocation4 + $0x58] sm:$0xf0]  ;;  %v3857_v1 = vld [vmem:[#allocation4 + $0x20c] sm:$0xf]  ;;  %v3932_v13 = vld [vmem:[%s4846_s5 + $0x60] sm:$0xff] }
  0xc1   :  { %v3031_v32 = vor.u32 %v3801_v24, %v3028_v25  ;;  %v3925_v8 = vld [vmem:[%s4846_s5 + $0x28] sm:$0xff] }
  0xc2   :  { %1119 = vmatpush.bf16.msrb.mxu2 %v3267_v31  ;;  %1093 = vmatmul.bf16.vlgmr.msrb.gmra.mxu0 %v4236_v51  ;;  %v3300_v31 = vld [vmem:[#allocation4 + $0x278] sm:$0xf0]  ;;  %v3921_v10 = vld [vmem:[%s4846_s5 + $0x8] sm:$0xff] }
  0xc3   :  { %1141 = vmatpush.bf16.msra.mxu0 %v3111_v28  ;;  %1133 = vmatpush.bf16.msrb.mxu3 %v3395_v35  ;;  %v3319_v28 = vor.u32 %v3873_v17, %v3316_v18  ;;  %v3428_v35 = vld [vmem:[#allocation4 + $0x378] sm:$0xf0]  ;;  %v3303_v40 = vor.u32 %v3869_v30, %v3300_v31  ;;  %v3933_v11 = vld [vmem:[%s4846_s5 + $0x68] sm:$0xff] }
  0xc4   :  { %1155 = vmatpush.bf16.msra.mxu1 %v3239_v29  ;;  %v3447_v29 = vor.u32 %v3905_v22, %v3444_v23  ;;  %v3431_v41 = vor.u32 %v3901_v34, %v3428_v35  ;;  %v4311_v22 = vld [vmem:[%s4845_s4] sm:$0xf]  ;;  %v3929_v23 = vld [vmem:[%s4846_s5 + $0x48] sm:$0xff] }
  0xc5   :  { %1107 = vmatmul.bf16.vlgmr.msrb.gmra.mxu1 %v4238_v56  ;;  %v3941_v24 = vld [vmem:[%s4846_s5 + $0xa8] sm:$0xff]  ;;  %v325_v25 = vperm.slane %v4311_v22, 0 }
  0xc6   :  { %1120 = vmatpush.bf16.msrb.mxu2 %v3251_v47  ;;  %v3412_v47 = vld [vmem:[#allocation4 + $0x358] sm:$0xf0] }
  0xc7   :  { %1142 = vmatpush.bf16.msra.mxu0 %v3095_v42  ;;  %1134 = vmatpush.bf16.msrb.mxu3 %v3379_v52  ;;  %v3865_v42 = vld [vmem:[#allocation4 + $0x24c] sm:$0xf]  ;;  %v3124_v52 = vld [vmem:[#allocation4 + $0x118] sm:$0xf0] }
  0xc8   :  { %1156 = vmatpush.bf16.msra.mxu1 %v3223_v43  ;;  %v3284_v43 = vld [vmem:[#allocation4 + $0x258] sm:$0xf0] }
  0xc9   :  { %1121 = vmatmul.bf16.vlgmr.msrb.gmra.mxu2 %v4242_v15 }
  0xca   :  { %1169 = vmatpush.bf16.msra.mxu2 %v3367_v53  ;;  %1135 = vmatmul.bf16.vlgmr.msrb.gmra.mxu3 %v4244_v21  ;;  %v3287_v53 = vor.u32 %v3865_v42, %v3284_v43 }
  0xcb   :  { %1183 = vmatpush.bf16.msra.mxu3 %v3495_v54  ;;  %1143 = vmatpush.bf16.msra.mxu0 %v3079_v58  ;;  %v3415_v54 = vor.u32 %v3897_v46, %v3412_v47  ;;  %v2999_v58 = vor.u32 %v3793_v48, %v2996_v49  ;;  %v326_v46 = vperm.slane %v4311_v22, 1 }
  0xcc   :  { %1157 = vmatpush.bf16.msra.mxu1 %v3207_v59  ;;  %v3127_v59 = vor.u32 %v3825_v50, %v3124_v52  ;;  %v3936_v52 = vld [vmem:[%s4846_s5 + $0x80] sm:$0xff] }
  0xce   :  { %1170 = vmatpush.bf16.msra.mxu2 %v3351_v2  ;;  %v3252_v2 = vld [vmem:[#allocation4 + $0x218] sm:$0xf0] }
  0xcf   :  { %1184 = vmatpush.bf16.msra.mxu3 %v3479_v3  ;;  %1144 = vmatpush.bf16.msra.mxu0 %v3063_v6  ;;  %v3889_v3 = vld [vmem:[#allocation4 + $0x30c] sm:$0xf]  ;;  %v3255_v5 = vor.u32 %v3857_v1, %v3252_v2 }
  0xd0   :  { %1158 = vmatpush.bf16.msra.mxu1 %v3191_v7  ;;  %v3383_v6 = vor.u32 %v3889_v3, %v3380_v4  ;;  %v3926_v7 = vld [vmem:[%s4846_s5 + $0x30] sm:$0xff] }
  0xd2   :  { %1171 = vmatpush.bf16.msra.mxu2 %v3335_v14  ;;  %v3931_v14 = vld [vmem:[%s4846_s5 + $0x58] sm:$0xff] }
  0xd3   :  { %1185 = vmatpush.bf16.msra.mxu3 %v3463_v16  ;;  %1145 = vmatpush.bf16.msra.mxu0 %v3047_v19  ;;  %v3943_v16 = vld [vmem:[%s4846_s5 + $0xb8] sm:$0xff]  ;;  %v3930_v19 = vld [vmem:[%s4846_s5 + $0x50] sm:$0xff] }
  0xd4   :  { %1159 = vmatpush.bf16.msra.mxu1 %v3175_v20  ;;  %v3942_v20 = vld [vmem:[%s4846_s5 + $0xb0] sm:$0xff] }
  0xd6   :  { %1172 = vmatpush.bf16.msra.mxu2 %v3319_v28  ;;  %v3940_v28 = vld [vmem:[%s4846_s5 + $0xa0] sm:$0xff] }
  0xd7   :  { %1186 = vmatpush.bf16.msra.mxu3 %v3447_v29  ;;  %1146 = vmatpush.bf16.msra.mxu0 %v3031_v32 }
  0xd8   :  { %1160 = vmatpush.bf16.msra.mxu1 %v3159_v33  ;;  %v3939_v33 = vld [vmem:[%s4846_s5 + $0x98] sm:$0xff] }
  0xda   :  { %1173 = vmatpush.bf16.msra.mxu2 %v3303_v40 }
  0xdb   :  { %1187 = vmatpush.bf16.msra.mxu3 %v3431_v41  ;;  %1147 = vmatpush.bf16.msra.mxu0 %v3015_v44 }
  0xdc   :  { %1161 = vmatpush.bf16.msra.mxu1 %v3143_v45  ;;  %v3937_v45 = vld [vmem:[%s4846_s5 + $0x88] sm:$0xff] }
  0xde   :  { %1174 = vmatpush.bf16.msra.mxu2 %v3287_v53  ;;  %v3951_v53 = vld [vmem:[%s4846_s5 + $0xf8] sm:$0xff] }
  0xdf   :  { %1188 = vmatpush.bf16.msra.mxu3 %v3415_v54  ;;  %1148 = vmatpush.bf16.msra.mxu0 %v2999_v58 }
  0xe0   :  { %1162 = vmatpush.bf16.msra.mxu1 %v3127_v59  ;;  %v3950_v59 = vld [vmem:[%s4846_s5 + $0xf0] sm:$0xff] }
  0xe2   :  { %1175 = vmatpush.bf16.msra.mxu2 %v3271_v63  ;;  %1149 = vmatmul.bf16.vlgmr.msra.gmra.mxu0 %v4236_v51  ;;  %v3924_v51 = vld [vmem:[%s4846_s5 + $0x20] sm:$0xff]  ;;  %v3949_v63 = vld [vmem:[%s4846_s5 + $0xe8] sm:$0xff] }
  0xe3   :  { %1465 = vmatpush.bf16.msrb.mxu0 %v3927_v62  ;;  %1189 = vmatpush.bf16.msra.mxu3 %v3399_v0 }
  0xe4   :  { %1163 = vmatmul.bf16.vlgmr.msra.gmra.mxu1 %v4238_v56  ;;  %v3923_v56 = vld [vmem:[%s4846_s5 + $0x18] sm:$0xff] }
  0xe6   :  { %1176 = vmatpush.bf16.msra.mxu2 %v3255_v5 }
  0xe7   :  { %1190 = vmatpush.bf16.msra.mxu3 %v3383_v6  ;;  %1466 = vmatpush.bf16.msrb.mxu0 %v3926_v7  ;;  %v3948_v7 = vld [vmem:[%s4846_s5 + $0xe0] sm:$0xff] }
  0xe9   :  { %1177 = vmatmul.bf16.vlgmr.msra.gmra.mxu2 %v4242_v15  ;;  %v3935_v15 = vld [vmem:[%s4846_s5 + $0x78] sm:$0xff] }
  0xea   :  { %1191 = vmatmul.bf16.vlgmr.msra.gmra.mxu3 %v4244_v21  ;;  %1479 = vmatpush.bf16.msrb.mxu1 %v3935_v15  ;;  %v3922_v21 = vld [vmem:[%s4846_s5 + $0x10] sm:$0xff] }
  0xeb   :  { %1467 = vmatpush.bf16.msrb.mxu0 %v3925_v8  ;;  %1493 = vmatpush.bf16.msrb.mxu2 %v3943_v16  ;;  %v3946_v16 = vld [vmem:[%s4846_s5 + $0xd0] sm:$0xff] }
  0xec   :  { %1507 = vmatpush.bf16.msrb.mxu3 %v3951_v53 }
  0xee   :  { %1480 = vmatpush.bf16.msrb.mxu1 %v3934_v9  ;;  %v3947_v9 = vld [vmem:[%s4846_s5 + $0xd8] sm:$0xff] }
  0xef   :  { %1468 = vmatpush.bf16.msrb.mxu0 %v3924_v51  ;;  %1494 = vmatpush.bf16.msrb.mxu2 %v3942_v20  ;;  %v327_v51 = vperm.slane %v4311_v22, 2  ;;  %v3945_v20 = vld [vmem:[%s4846_s5 + $0xc8] sm:$0xff] }
  0xf0   :  { %1508 = vmatpush.bf16.msrb.mxu3 %v3950_v59  ;;  %v3636_v59 = vld [vmem:[%s4847_s6 + $0x88] sm:$0xf0] }
  0xf2   :  { %1481 = vmatpush.bf16.msrb.mxu1 %v3933_v11 }
  0xf3   :  { %1469 = vmatpush.bf16.msrb.mxu0 %v3923_v56  ;;  %1495 = vmatpush.bf16.msrb.mxu2 %v3941_v24 }
  0xf4   :  { %1509 = vmatpush.bf16.msrb.mxu3 %v3949_v63  ;;  %v3952_v63 = vld [vmem:[%s4847_s6 + $0x4] sm:$0xf] }
  0xf6   :  { %1482 = vmatpush.bf16.msrb.mxu1 %v3932_v13 }
  0xf7   :  { %1470 = vmatpush.bf16.msrb.mxu0 %v3922_v21  ;;  %1496 = vmatpush.bf16.msrb.mxu2 %v3940_v28  ;;  %v3944_v28 = vld [vmem:[%s4846_s5 + $0xc0] sm:$0xff] }
  0xf8   :  { %1510 = vmatpush.bf16.msrb.mxu3 %v3948_v7  ;;  %v3652_v7 = vld [vmem:[%s4847_s6 + $0x98] sm:$0xf0] }
  0xfa   :  { %1483 = vmatpush.bf16.msrb.mxu1 %v3931_v14 }
  0xfb   :  { %1471 = vmatpush.bf16.msrb.mxu0 %v3921_v10  ;;  %1497 = vmatpush.bf16.msrb.mxu2 %v3939_v33 }
  0xfc   :  { %1511 = vmatpush.bf16.msrb.mxu3 %v3947_v9  ;;  %v3644_v9 = vld [vmem:[%s4847_s6 + $0x90] sm:$0xf0] }
  0xfe   :  { %1484 = vmatpush.bf16.msrb.mxu1 %v3930_v19 }
  0xff   :  { %1472 = vmatpush.bf16.msrb.mxu0 %v3920_v12  ;;  %1498 = vmatpush.bf16.msrb.mxu2 %v3938_v38 }
 0x100   :  { %1512 = vmatpush.bf16.msrb.mxu3 %v3946_v16 }
 0x102   :  { %1485 = vmatpush.bf16.msrb.mxu1 %v3929_v23 }
 0x103   :  { %1499 = vmatpush.bf16.msrb.mxu2 %v3937_v45 }
 0x104   :  { %1513 = vmatpush.bf16.msrb.mxu3 %v3945_v20 }
 0x106   :  { %1486 = vmatpush.bf16.msrb.mxu1 %v3928_v27 }
 0x107   :  { %1500 = vmatpush.bf16.msrb.mxu2 %v3936_v52 }
 0x108   :  { %1514 = vmatpush.bf16.msrb.mxu3 %v3944_v28  ;;  %v3957_v28 = vld [vmem:[%s4847_s6 + $0x2c] sm:$0xf] }
 0x11e   :  { %v982_v17 = vpop.f32.mrf.mxu0 }
 0x11f   :  { %v996_v18 = vpop.f32.mrf.mxu1  ;;  %v983_v29 = vadd.f32 %v982_v17, %v325_v25 }
 0x121   :  { %v997_v34 = vadd.f32 %v996_v18, %v983_v29 }
 0x126   :  { %v984_v26 = vpop.f32.mrf.mxu0 }
 0x127   :  { %v998_v30 = vpop.f32.mrf.mxu1  ;;  %v985_v35 = vadd.f32 %v984_v26, %v325_v25 }
 0x129   :  { %v999_v39 = vadd.f32 %v998_v30, %v985_v35  ;;  %v328_v35 = vperm.slane %v4311_v22, 3  ;;  %v3634_v22 = vld [vmem:[%s4847_s6 + $0x8] sm:$0xf] }
 0x12c   :  { %v1010_v31 = vpop.f32.mrf.mxu2 }
 0x12d   :  { %v1024_v32 = vpop.f32.mrf.mxu3  ;;  %v1011_v37 = vadd.f32 %v1010_v31, %v997_v34 }
 0x12e   :  { %v1038_v36 = vpop.f32.mrf.mxu0 }
 0x12f   :  { %v1025_v41 = vadd.f32 %v1024_v32, %v1011_v37  ;;  %v1052_v42 = vpop.f32.mrf.mxu1  ;;  %v1039_v54 = vadd.f32 %v1038_v36, %v326_v46 }
 0x131   :  { %v1197_v49 = vmax.f32 %v1025_v41, 0.0  ;;  %v1053_v60 = vadd.f32 %v1052_v42, %v1039_v54 }
 0x134   :  { %v1012_v40 = vpop.f32.mrf.mxu2 }
 0x135   :  { %v1013_v43 = vadd.f32 %v1012_v40, %v999_v39  ;;  %v1026_v44 = vpop.f32.mrf.mxu3 }
 0x136   :  { %v1040_v48 = vpop.f32.mrf.mxu0 }
 0x137   :  { %v1027_v47 = vadd.f32 %v1026_v44, %v1013_v43  ;;  %v1041_v61 = vadd.f32 %v1040_v48, %v326_v46  ;;  %v1054_v62 = vpop.f32.mrf.mxu1 }
 0x139   :  { %v1201_v50 = vmax.f32 %v1027_v47, 0.0  ;;  %v1055_v2 = vadd.f32 %v1054_v62, %v1041_v61  ;;  %v3626_v61 = vld [vmem:[%s4847_s6] sm:$0xf] }
 0x13a   :  { %v3968_v62 = vld [vmem:[%s4847_s6 + $0x7c] sm:$0xf0] }
 0x13b   :  { %v1205_v55 = vpack.c.bf16 %v1201_v50, %v1197_v49 }
 0x13c   :  { %v1066_v57 = vpop.f32.mrf.mxu2 }
 0x13d   :  { %v1080_v58 = vpop.f32.mrf.mxu3  ;;  %1473 = vmatmul.bf16.vlgmr.msrb.gmra.mxu0 %v1205_v55  ;;  %v1067_v0 = vadd.f32 %v1066_v57, %v1053_v60  ;;  %v3969_v55 = vld [vmem:[%s4847_s6 + $0x84] sm:$0xf0]  ;;  %v3953_v57 = vld [vmem:[%s4847_s6 + $0xc] sm:$0xf] }
 0x13e   :  { %v3639_v60 = vor.u32 %v3953_v57, %v3636_v59  ;;  %v3700_v57 = vld [vmem:[%s4847_s6 + $0xc8] sm:$0xf0]  ;;  %v3976_v59 = vld [vmem:[%s4847_s6 + $0xbc] sm:$0xf0] }
 0x13f   :  { %v1094_v1 = vpop.f32.mrf.mxu0  ;;  %v1081_v4 = vadd.f32 %v1080_v58, %v1067_v0  ;;  %v3635_v58 = vor.u32 %v3969_v55, %v3634_v22  ;;  %v3627_v0 = vor.u32 %v3968_v62, %v3626_v61  ;;  %v3977_v22 = vld [vmem:[%s4847_s6 + $0xc4] sm:$0xf0]  ;;  %v3961_v55 = vld [vmem:[%s4847_s6 + $0x4c] sm:$0xf]  ;;  %v3692_v61 = vld [vmem:[%s4847_s6 + $0xc0] sm:$0xf0] }
 0x140   :  { %v1095_v11 = vadd.f32 %v1094_v1, %v327_v51  ;;  %1839 = vmatpush.bf16.msra.mxu3 %v3639_v60  ;;  %v3628_v1 = vld [vmem:[%s4847_s6 + $0x80] sm:$0xf0] }
 0x141   :  { %v1198_v56 = vmax.f32 %v1081_v4, 0.0  ;;  %1825 = vmatpush.bf16.msra.mxu2 %v3635_v58  ;;  %1797 = vmatpush.bf16.msra.mxu0 %v3627_v0  ;;  %v3971_v4 = vld [vmem:[%s4847_s6 + $0x94] sm:$0xf0]  ;;  %v3690_v58 = vld [vmem:[%s4847_s6 + $0x40] sm:$0xf] }
 0x142   :  { %v1108_v15 = vpop.f32.mrf.mxu1  ;;  %v3960_v60 = vld [vmem:[%s4847_s6 + $0x44] sm:$0xf]  ;;  %v3691_v0 = vor.u32 %v3976_v59, %v3690_v58 }
 0x143   :  { %v1109_v17 = vadd.f32 %v1108_v15, %v1095_v11 }
 0x144   :  { %v1068_v3 = vpop.f32.mrf.mxu2 }
 0x145   :  { %v1069_v5 = vadd.f32 %v1068_v3, %v1055_v2  ;;  %v1082_v6 = vpop.f32.mrf.mxu3  ;;  %v3631_v2 = vor.u32 %v3952_v63, %v3628_v1  ;;  %v3650_v3 = vld [vmem:[%s4847_s6 + $0x18] sm:$0xf]  ;;  %v3703_v63 = vor.u32 %v3961_v55, %v3700_v57  ;;  %v3695_v1 = vor.u32 %v3960_v60, %v3692_v61 }
 0x147   :  { %v1083_v8 = vadd.f32 %v1082_v6, %v1069_v5  ;;  %v1096_v12 = vpop.f32.mrf.mxu0  ;;  %1811 = vmatpush.bf16.msra.mxu1 %v3631_v2  ;;  %v3955_v5 = vld [vmem:[%s4847_s6 + $0x1c] sm:$0xf]  ;;  %v3651_v6 = vor.u32 %v3971_v4, %v3650_v3  ;;  %v3714_v2 = vld [vmem:[%s4847_s6 + $0x58] sm:$0xf] }
 0x148   :  { %v1097_v18 = vadd.f32 %v1096_v12, %v327_v51  ;;  %v3970_v51 = vld [vmem:[%s4847_s6 + $0x8c] sm:$0xf0]  ;;  %v3979_v3 = vld [vmem:[%s4847_s6 + $0xd4] sm:$0xf0]  ;;  %v3963_v4 = vld [vmem:[%s4847_s6 + $0x5c] sm:$0xf] }
 0x149   :  { %v1202_v21 = vmax.f32 %v1083_v8, 0.0  ;;  %v3642_v8 = vld [vmem:[%s4847_s6 + $0x10] sm:$0xf] }
 0x14a   :  { %v1110_v23 = vpop.f32.mrf.mxu1  ;;  %v3643_v15 = vor.u32 %v3970_v51, %v3642_v8  ;;  %v3962_v8 = vld [vmem:[%s4847_s6 + $0x54] sm:$0xf] }
 0x14b   :  { %v1206_v10 = vpack.c.bf16 %v1202_v21, %v1198_v56  ;;  %v1111_v24 = vadd.f32 %v1110_v23, %v1097_v18  ;;  %v3655_v56 = vor.u32 %v3955_v5, %v3652_v7  ;;  %v3954_v21 = vld [vmem:[%s4847_s6 + $0x14] sm:$0xf]  ;;  %v3716_v5 = vld [vmem:[%s4847_s6 + $0xd8] sm:$0xf0]  ;;  %v3978_v7 = vld [vmem:[%s4847_s6 + $0xcc] sm:$0xf0] }
 0x14c   :  { %v1122_v13 = vpop.f32.mrf.mxu2  ;;  %1853 = vmatpush.bf16.msrb.mxu0 %v3643_v15  ;;  %v3708_v51 = vld [vmem:[%s4847_s6 + $0xd0] sm:$0xf0]  ;;  %v3719_v15 = vor.u32 %v3963_v4, %v3716_v5 }
 0x14d   :  { %v1136_v14 = vpop.f32.mrf.mxu3  ;;  %1487 = vmatmul.bf16.vlgmr.msrb.gmra.mxu1 %v1206_v10  ;;  %v1123_v19 = vadd.f32 %v1122_v13, %v1109_v17  ;;  %v3647_v10 = vor.u32 %v3954_v21, %v3644_v9  ;;  %v3711_v9 = vor.u32 %v3962_v8, %v3708_v51 }
 0x14f   :  { %v1137_v26 = vadd.f32 %v1136_v14, %v1123_v19  ;;  %1867 = vmatpush.bf16.msrb.mxu1 %v3647_v10  ;;  %v3730_v10 = vld [vmem:[%s4847_s6 + $0x68] sm:$0xf] }
 0x151   :  { %v1199_v31 = vmax.f32 %v1137_v26, 0.0  ;;  %v3973_v26 = vld [vmem:[%s4847_s6 + $0xa4] sm:$0xf0] }
 0x154   :  { %v1124_v25 = vpop.f32.mrf.mxu2 }
 0x155   :  { %v1125_v27 = vadd.f32 %v1124_v25, %v1111_v24  ;;  %v1138_v29 = vpop.f32.mrf.mxu3  ;;  %v3666_v25 = vld [vmem:[%s4847_s6 + $0x28] sm:$0xf] }
 0x157   :  { %v1139_v30 = vadd.f32 %v1138_v29, %v1125_v27  ;;  %v3668_v29 = vld [vmem:[%s4847_s6 + $0xa8] sm:$0xf0] }
 0x159   :  { %v1203_v32 = vmax.f32 %v1139_v30, 0.0  ;;  %v3658_v30 = vld [vmem:[%s4847_s6 + $0x20] sm:$0xf] }
 0x15b   :  { %v1207_v33 = vpack.c.bf16 %v1203_v32, %v1199_v31 }
 0x15d   :  { %1501 = vmatmul.bf16.vlgmr.msrb.gmra.mxu2 %v1207_v33  ;;  %v3972_v33 = vld [vmem:[%s4847_s6 + $0x9c] sm:$0xf0] }
 0x15e   :  { %1881 = vmatpush.bf16.msrb.mxu2 %v3651_v6  ;;  %v3706_v6 = vld [vmem:[%s4847_s6 + $0x50] sm:$0xf] }
 0x15f   :  { %v1150_v34 = vpop.f32.mrf.mxu0  ;;  %v3707_v21 = vor.u32 %v3978_v7, %v3706_v6 }
 0x160   :  { %v1151_v37 = vadd.f32 %v1150_v34, %v328_v35  ;;  %v3956_v34 = vld [vmem:[%s4847_s6 + $0x24] sm:$0xf] }
 0x161   :  { %v1164_v36 = vpop.f32.mrf.mxu1 }
 0x162   :  { %v1165_v41 = vadd.f32 %v1164_v36, %v1151_v37  ;;  %v3667_v37 = vor.u32 %v3973_v26, %v3666_v25  ;;  %v3746_v25 = vld [vmem:[%s4847_s6 + $0x78] sm:$0xf] }
 0x163   :  { %v3983_v26 = vld [vmem:[%s4847_s6 + $0xf4] sm:$0xf0] }
 0x167   :  { %v1152_v38 = vpop.f32.mrf.mxu0 }
 0x168   :  { %v1153_v42 = vadd.f32 %v1152_v38, %v328_v35  ;;  %v3660_v35 = vld [vmem:[%s4847_s6 + $0xa0] sm:$0xf0]  ;;  %v3671_v38 = vor.u32 %v3957_v28, %v3668_v29  ;;  %v3748_v28 = vld [vmem:[%s4847_s6 + $0xf8] sm:$0xf0]  ;;  %v3738_v29 = vld [vmem:[%s4847_s6 + $0x70] sm:$0xf] }
 0x169   :  { %v1166_v44 = vpop.f32.mrf.mxu1 }
 0x16a   :  { %v1167_v45 = vadd.f32 %v1166_v44, %v1153_v42  ;;  %v3975_v42 = vld [vmem:[%s4847_s6 + $0xb4] sm:$0xf0]  ;;  %v3684_v44 = vld [vmem:[%s4847_s6 + $0xb8] sm:$0xf0] }
 0x16c   :  { %v1178_v39 = vpop.f32.mrf.mxu2 }
 0x16d   :  { %v1192_v40 = vpop.f32.mrf.mxu3  ;;  %v1179_v43 = vadd.f32 %v1178_v39, %v1165_v41  ;;  %v3659_v39 = vor.u32 %v3972_v33, %v3658_v30  ;;  %v3682_v41 = vld [vmem:[%s4847_s6 + $0x38] sm:$0xf]  ;;  %v3982_v30 = vld [vmem:[%s4847_s6 + $0xec] sm:$0xf0]  ;;  %v3747_v33 = vor.u32 %v3983_v26, %v3746_v25 }
 0x16f   :  { %v1193_v47 = vadd.f32 %v1192_v40, %v1179_v43  ;;  %v3663_v40 = vor.u32 %v3956_v34, %v3660_v35  ;;  %v3959_v43 = vld [vmem:[%s4847_s6 + $0x3c] sm:$0xf]  ;;  %v3739_v35 = vor.u32 %v3982_v30, %v3738_v29 }
 0x171   :  { %v1200_v52 = vmax.f32 %v1193_v47, 0.0  ;;  %v3958_v47 = vld [vmem:[%s4847_s6 + $0x34] sm:$0xf] }
 0x174   :  { %v1180_v46 = vpop.f32.mrf.mxu2 }
 0x175   :  { %v1181_v48 = vadd.f32 %v1180_v46, %v1167_v45  ;;  %v1194_v49 = vpop.f32.mrf.mxu3  ;;  %v3674_v45 = vld [vmem:[%s4847_s6 + $0x30] sm:$0xf] }
 0x176   :  { %v3974_v46 = vld [vmem:[%s4847_s6 + $0xac] sm:$0xf0] }
 0x177   :  { %v1195_v50 = vadd.f32 %v1194_v49, %v1181_v48  ;;  %v3676_v48 = vld [vmem:[%s4847_s6 + $0xb0] sm:$0xf0]  ;;  %v3683_v49 = vor.u32 %v3975_v42, %v3682_v41 }
 0x179   :  { %v1204_v53 = vmax.f32 %v1195_v50, 0.0  ;;  %v3687_v50 = vor.u32 %v3959_v43, %v3684_v44 }
 0x17b   :  { %v1208_v54 = vpack.c.bf16 %v1204_v53, %v1200_v52  ;;  %v3675_v52 = vor.u32 %v3974_v46, %v3674_v45  ;;  %v3679_v53 = vor.u32 %v3958_v47, %v3676_v48 }
 0x17d   :  { %1515 = vmatmul.bf16.vlgmr.msrb.gmra.mxu3 %v1208_v54  ;;  %v3698_v54 = vld [vmem:[%s4847_s6 + $0x48] sm:$0xf] }
 0x17e   :  { %1895 = vmatpush.bf16.msrb.mxu3 %v3655_v56  ;;  %v3699_v62 = vor.u32 %v3977_v22, %v3698_v54  ;;  %v3715_v56 = vor.u32 %v3979_v3, %v3714_v2 }
 0x1ba   :  { %v1474_v12 = vpop.f32.mrf.mxu0 }
 0x1c2   :  { %v1476_v17 = vpop.f32.mrf.mxu0 }
 0x1ca   :  { %v1488_v11 = vpop.f32.mrf.mxu1 }
 0x1cb   :  { %v1489_v19 = vadd.f32 %v1488_v11, %v1474_v12  ;;  %v3981_v11 = vld [vmem:[%s4847_s6 + $0xe4] sm:$0xf0]  ;;  %v3965_v12 = vld [vmem:[%s4847_s6 + $0x6c] sm:$0xf] }
 0x1d2   :  { %v1490_v16 = vpop.f32.mrf.mxu1 }
 0x1d3   :  { %v1491_v20 = vadd.f32 %v1490_v16, %v1476_v17  ;;  %v3980_v16 = vld [vmem:[%s4847_s6 + $0xdc] sm:$0xf0]  ;;  %v3964_v17 = vld [vmem:[%s4847_s6 + $0x64] sm:$0xf] }
 0x1e0   :  { %v1502_v13 = vpop.f32.mrf.mxu2 }
 0x1e1   :  { %v1503_v23 = vadd.f32 %v1502_v13, %v1489_v19  ;;  %v3732_v13 = vld [vmem:[%s4847_s6 + $0xe8] sm:$0xf0]  ;;  %v3731_v19 = vor.u32 %v3981_v11, %v3730_v10 }
 0x1e8   :  { %v1504_v18 = vpop.f32.mrf.mxu2 }
 0x1e9   :  { %v1505_v24 = vadd.f32 %v1504_v18, %v1491_v20  ;;  %v3724_v18 = vld [vmem:[%s4847_s6 + $0xe0] sm:$0xf0]  ;;  %v3735_v20 = vor.u32 %v3965_v12, %v3732_v13 }
 0x200   :  { %v1516_v14 = vpop.f32.mrf.mxu3 }
 0x201   :  { %v1517_v31 = vadd.f32 %v1516_v14, %v1503_v23  ;;  %v3722_v14 = vld [vmem:[%s4847_s6 + $0x60] sm:$0xf] }
 0x202   :  { %v3723_v23 = vor.u32 %v3980_v16, %v3722_v14 }
 0x208   :  { %v1518_v27 = vpop.f32.mrf.mxu3 }
 0x209   :  { %v1519_v32 = vadd.f32 %v1518_v27, %v1505_v24  ;;  %v3727_v24 = vor.u32 %v3964_v17, %v3724_v18  ;;  %v3967_v27 = vld [vmem:[%s4847_s6 + $0x7c] sm:$0xf]  ;;  %v4637_v18 = vld [vmem:[%s4848_s7 + $0x8] sm:$0xff] }
 0x20a   :  { %v3751_v34 = vor.u32 %v3967_v27, %v3748_v28 }
 0x20b   :  { %v4437_v36 = vpack.c.bf16 %v1519_v32, %v1517_v31  ;;  %v3966_v31 = vld [vmem:[%s4847_s6 + $0x74] sm:$0xf] }
 0x20c   :  { %v3740_v32 = vld [vmem:[%s4847_s6 + $0xf0] sm:$0xf0] }
 0x20d   :  { %3752 = vmatmul.msk.bf16.vlgmr.msra.gmra.mxu0 %vm1786_vm1, %v4437_v36  ;;  %3753 = vmatmul.msk.bf16.vlgmr.msra.gmra.mxu1 %vm1786_vm1, %v4437_v36 }
 0x20e   :  { %3754 = vmatmul.msk.bf16.vlgmr.msra.gmra.mxu2 %vm1786_vm1, %v4437_v36  ;;  %3755 = vmatmul.msk.bf16.vlgmr.msra.gmra.mxu3 %vm1786_vm1, %v4437_v36 }
 0x20f   :  { %1937 = vmatpush.bf16.msra.mxu2 %v3667_v37  ;;  %1951 = vmatpush.bf16.msra.mxu3 %v3671_v38  ;;  %v3743_v37 = vor.u32 %v3966_v31, %v3740_v32  ;;  %v4626_v38 = vld [vmem:[%s4848_s7] sm:$0xff] }
 0x210   :  { %1909 = vmatpush.bf16.msra.mxu0 %v3659_v39  ;;  %1923 = vmatpush.bf16.msra.mxu1 %v3663_v40  ;;  %v1562_v39 = vperm.slane %v4626_v38, 0  ;;  %v1563_v40 = vperm.slane %v4626_v38, 1  ;;  %v1564_v46 = vperm.slane %v4626_v38, 2  ;;  %v1565_v47 = vperm.slane %v4626_v38, 3 }
 0x211   :  { %v1566_v3 = vperm.slane %v4626_v38, 4  ;;  %v1567_v6 = vperm.slane %v4626_v38, 5  ;;  %v1569_v29 = vperm.slane %v4626_v38, 7 }
 0x21d   :  { %3756 = vmatmul.msk.bf16.vlgmr.msrb.gmra.mxu0 %vm1786_vm1, %v4437_v36  ;;  %3757 = vmatmul.msk.bf16.vlgmr.msrb.gmra.mxu1 %vm1786_vm1, %v4437_v36 }
 0x21e   :  { %3758 = vmatmul.msk.bf16.vlgmr.msrb.gmra.mxu2 %vm1786_vm1, %v4437_v36  ;;  %3759 = vmatmul.msk.bf16.vlgmr.msrb.gmra.mxu3 %vm1786_vm1, %v4437_v36 }
 0x21f   :  { %1993 = vmatpush.bf16.msrb.mxu2 %v3683_v49  ;;  %2007 = vmatpush.bf16.msrb.mxu3 %v3687_v50 }
 0x220   :  { %1965 = vmatpush.bf16.msrb.mxu0 %v3675_v52  ;;  %1979 = vmatpush.bf16.msrb.mxu1 %v3679_v53 }
 0x22d   :  { %3760 = vmatmul.msk.bf16.vlgmr.msra.gmra.mxu0 %vm1786_vm1, %v4437_v36  ;;  %3761 = vmatmul.msk.bf16.vlgmr.msra.gmra.mxu1 %vm1786_vm1, %v4437_v36 }
 0x22e   :  { %3762 = vmatmul.msk.bf16.vlgmr.msra.gmra.mxu2 %vm1786_vm1, %v4437_v36  ;;  %3763 = vmatmul.msk.bf16.vlgmr.msra.gmra.mxu3 %vm1786_vm1, %v4437_v36 }
 0x22f   :  { %2049 = vmatpush.bf16.msra.mxu2 %v3699_v62  ;;  %2063 = vmatpush.bf16.msra.mxu3 %v3703_v63 }
 0x230   :  { %2021 = vmatpush.bf16.msra.mxu0 %v3691_v0  ;;  %2035 = vmatpush.bf16.msra.mxu1 %v3695_v1 }
 0x23d   :  { %3764 = vmatmul.msk.bf16.vlgmr.msrb.gmra.mxu0 %vm1786_vm1, %v4437_v36  ;;  %3765 = vmatmul.msk.bf16.vlgmr.msrb.gmra.mxu1 %vm1786_vm1, %v4437_v36 }
 0x23e   :  { %3766 = vmatmul.msk.bf16.vlgmr.msrb.gmra.mxu2 %vm1786_vm1, %v4437_v36  ;;  %3767 = vmatmul.msk.bf16.vlgmr.msrb.gmra.mxu3 %vm1786_vm1, %v4437_v36 }
 0x23f   :  { %2105 = vmatpush.bf16.msrb.mxu2 %v3715_v56  ;;  %2119 = vmatpush.bf16.msrb.mxu3 %v3719_v15 }
 0x240   :  { %2077 = vmatpush.bf16.msrb.mxu0 %v3707_v21  ;;  %2091 = vmatpush.bf16.msrb.mxu1 %v3711_v9 }
 0x24d   :  { %3768 = vmatmul.msk.bf16.vlgmr.msra.gmra.mxu0 %vm1786_vm1, %v4437_v36  ;;  %3769 = vmatmul.msk.bf16.vlgmr.msra.gmra.mxu1 %vm1786_vm1, %v4437_v36 }
 0x24e   :  { %3770 = vmatmul.msk.bf16.vlgmr.msra.gmra.mxu2 %vm1786_vm1, %v4437_v36  ;;  %3771 = vmatmul.msk.bf16.vlgmr.msra.gmra.mxu3 %vm1786_vm1, %v4437_v36 }
 0x24f   :  { %2161 = vmatpush.bf16.msra.mxu2 %v3731_v19  ;;  %2175 = vmatpush.bf16.msra.mxu3 %v3735_v20 }
 0x250   :  { %2133 = vmatpush.bf16.msra.mxu0 %v3723_v23  ;;  %2147 = vmatpush.bf16.msra.mxu1 %v3727_v24  ;;  %v1568_v24 = vperm.slane %v4626_v38, 6 }
 0x25d   :  { %3772 = vmatmul.msk.bf16.vlgmr.msrb.gmra.mxu0 %vm1786_vm1, %v4437_v36  ;;  %3773 = vmatmul.msk.bf16.vlgmr.msrb.gmra.mxu1 %vm1786_vm1, %v4437_v36 }
 0x25e   :  { %3774 = vmatmul.msk.bf16.vlgmr.msrb.gmra.mxu2 %vm1786_vm1, %v4437_v36  ;;  %3775 = vmatmul.msk.bf16.vlgmr.msrb.gmra.mxu3 %vm1786_vm1, %v4437_v36 }
 0x25f   :  { %2217 = vmatpush.bf16.msrb.mxu2 %v3747_v33  ;;  %2231 = vmatpush.bf16.msrb.mxu3 %v3751_v34  ;;  %v1570_v33 = vperm.slane %v4637_v18, 0 }
 0x260   :  { %2189 = vmatpush.bf16.msrb.mxu0 %v3739_v35  ;;  %2203 = vmatpush.bf16.msrb.mxu1 %v3743_v37 }
 0x26d   :  { %3776 = vmatmul.msk.bf16.vlgmr.msra.gmra.mxu0 %vm1786_vm1, %v4437_v36  ;;  %3777 = vmatmul.msk.bf16.vlgmr.msra.gmra.mxu1 %vm1786_vm1, %v4437_v36 }
 0x26e   :  { %3778 = vmatmul.msk.bf16.vlgmr.msra.gmra.mxu2 %vm1786_vm1, %v4437_v36  ;;  %3779 = vmatmul.msk.bf16.vlgmr.msra.gmra.mxu3 %vm1786_vm1, %v4437_v36 }
 0x27d   :  { %3780 = vmatmul.msk.bf16.vlgmr.msrb.gmra.mxu0 %vm1786_vm1, %v4437_v36  ;;  %3781 = vmatmul.msk.bf16.vlgmr.msrb.gmra.mxu1 %vm1786_vm1, %v4437_v36 }
 0x27e   :  { %3782 = vmatmul.msk.bf16.vlgmr.msrb.gmra.mxu2 %vm1786_vm1, %v4437_v36  ;;  %3783 = vmatmul.msk.bf16.vlgmr.msrb.gmra.mxu3 %vm1786_vm1, %v4437_v36 }
 0x28a   :  { %v1799_v41 = vpop.f32.mrf.mxu0  ;;  %v1813_v42 = vpop.f32.mrf.mxu1 }
 0x28b   :  { %v1800_v43 = vadd.f32 %v1799_v41, %v1562_v39  ;;  %v1814_v44 = vadd.f32 %v1813_v42, %v1563_v40  ;;  %v1571_v41 = vperm.slane %v4637_v18, 1 }
 0x28d   :  { %v2238_v45 = vpack.c.bf16 %v1814_v44, %v1800_v43 }
 0x28f   :  { %v2270_v48 = vunpack.c.l.bf16 %v2238_v45  ;;  %v2271_v36 = vunpack.c.h.bf16 %v2238_v45 }
 0x291   :  { %v2334_v49 = vmul.f32 0.5, %v2270_v48  ;;  %v2335_v50 = vmul.f32 0.5, %v2271_v36  ;;  %v1827_v52 = vpop.f32.mrf.mxu2  ;;  %v1841_v53 = vpop.f32.mrf.mxu3 }
 0x292   :  { %v1828_v54 = vadd.f32 %v1827_v52, %v1564_v46  ;;  %v1842_v22 = vadd.f32 %v1841_v53, %v1565_v47  ;;  %v1801_v55 = vpop.f32.mrf.mxu0  ;;  %v1815_v57 = vpop.f32.mrf.mxu1 }
 0x293   :  { %v2398_v58 = vpack.c.bf16 %v2335_v50, %v2334_v49  ;;  %v1802_v59 = vadd.f32 %v1801_v55, %v1562_v39  ;;  %v1816_v60 = vadd.f32 %v1815_v57, %v1563_v40 }
 0x294   :  { %v2239_v61 = vpack.c.bf16 %v1842_v22, %v1828_v54 }
 0x295   :  { %v2430_v62 = vunpack.c.l.bf16 %v2398_v58  ;;  %v2431_v63 = vunpack.c.h.bf16 %v2398_v58  ;;  %v2254_v0 = vpack.c.bf16 %v1816_v60, %v1802_v59 }
 0x296   :  { %v2272_v1 = vunpack.c.l.bf16 %v2239_v61  ;;  %v2273_v2 = vunpack.c.h.bf16 %v2239_v61 }
 0x297   :  { %3988 = vtanh.f32 %v2430_v62  ;;  %v2302_v4 = vunpack.c.l.bf16 %v2254_v0  ;;  %v2303_v5 = vunpack.c.h.bf16 %v2254_v0 }
 0x298   :  { %3990 = vtanh.f32 %v2431_v63  ;;  %v2336_v7 = vmul.f32 0.5, %v2272_v1  ;;  %v2337_v8 = vmul.f32 0.5, %v2273_v2  ;;  %v1572_v1 = vperm.slane %v4637_v18, 2 }
 0x299   :  { %v2366_v51 = vmul.f32 0.5, %v2302_v4  ;;  %v2367_v56 = vmul.f32 0.5, %v2303_v5  ;;  %v1829_v15 = vpop.f32.mrf.mxu2  ;;  %v1843_v21 = vpop.f32.mrf.mxu3  ;;  %v1573_v2 = vperm.slane %v4637_v18, 3 }
 0x29a   :  { %v2399_v9 = vpack.c.bf16 %v2337_v8, %v2336_v7  ;;  %v1830_v10 = vadd.f32 %v1829_v15, %v1564_v46  ;;  %v1844_v11 = vadd.f32 %v1843_v21, %v1565_v47  ;;  %v1855_v12 = vpop.f32.mrf.mxu0  ;;  %v1869_v13 = vpop.f32.mrf.mxu1 }
 0x29b   :  { %v2414_v14 = vpack.c.bf16 %v2367_v56, %v2366_v51  ;;  %v1856_v16 = vadd.f32 %v1855_v12, %v1566_v3  ;;  %v1870_v17 = vadd.f32 %v1869_v13, %v1567_v6 }
 0x29c   :  { %v2432_v19 = vunpack.c.l.bf16 %v2399_v9  ;;  %v2433_v20 = vunpack.c.h.bf16 %v2399_v9  ;;  %v2255_v23 = vpack.c.bf16 %v1844_v11, %v1830_v10 }
 0x29d   :  { %v3989_v25 = vpop.eup %3988  ;;  %v2462_v26 = vunpack.c.l.bf16 %v2414_v14  ;;  %v2463_v27 = vunpack.c.h.bf16 %v2414_v14  ;;  %v2240_v28 = vpack.c.bf16 %v1870_v17, %v1856_v16 }
 0x29e   :  { %v3991_v30 = vpop.eup %3990  ;;  %3992 = vtanh.f32 %v2432_v19  ;;  %v2304_v31 = vunpack.c.l.bf16 %v2255_v23  ;;  %v2305_v32 = vunpack.c.h.bf16 %v2255_v23 }
 0x29f   :  { %v2558_v34 = vpack.c.bf16 %v3991_v30, %v3989_v25  ;;  %3994 = vtanh.f32 %v2433_v20  ;;  %v2274_v35 = vunpack.c.l.bf16 %v2240_v28  ;;  %v2275_v37 = vunpack.c.h.bf16 %v2240_v28 }
 0x2a0   :  { %3996 = vtanh.f32 %v2462_v26  ;;  %v2368_v39 = vmul.f32 0.5, %v2304_v31  ;;  %v2369_v40 = vmul.f32 0.5, %v2305_v32 }
 0x2a1   :  { %v2590_v42 = vunpack.c.l.bf16 %v2558_v34  ;;  %v2591_v43 = vunpack.c.h.bf16 %v2558_v34  ;;  %3998 = vtanh.f32 %v2463_v27  ;;  %v2338_v44 = vmul.f32 0.5, %v2274_v35  ;;  %v1883_v45 = vpop.f32.mrf.mxu2  ;;  %v1897_v46 = vpop.f32.mrf.mxu3 }
 0x2a2   :  { %v2415_v47 = vpack.c.bf16 %v2369_v40, %v2368_v39  ;;  %v2339_v48 = vmul.f32 0.5, %v2275_v37  ;;  %v1884_v36 = vadd.f32 %v1883_v45, %v1568_v24  ;;  %v1898_v49 = vadd.f32 %v1897_v46, %v1569_v29  ;;  %v1857_v50 = vpop.f32.mrf.mxu0  ;;  %v1871_v52 = vpop.f32.mrf.mxu1 }
 0x2a3   :  { %v2654_v53 = vadd.f32 1.0, %v2590_v42  ;;  %v2655_v54 = vadd.f32 1.0, %v2591_v43  ;;  %v1858_v22 = vadd.f32 %v1857_v50, %v1566_v3  ;;  %v1872_v55 = vadd.f32 %v1871_v52, %v1567_v6 }
 0x2a4   :  { %v3993_v57 = vpop.eup %3992  ;;  %v2464_v58 = vunpack.c.l.bf16 %v2415_v47  ;;  %v2465_v59 = vunpack.c.h.bf16 %v2415_v47  ;;  %v2400_v60 = vpack.c.bf16 %v2339_v48, %v2338_v44  ;;  %v2241_v61 = vpack.c.bf16 %v1898_v49, %v1884_v36 }
 0x2a5   :  { %v3995_v62 = vpop.eup %3994  ;;  %v2718_v63 = vpack.c.bf16 %v2655_v54, %v2654_v53  ;;  %v2256_v0 = vpack.c.bf16 %v1872_v55, %v1858_v22 }
 0x2a6   :  { %v3997_v4 = vpop.eup %3996  ;;  %v2559_v5 = vpack.c.bf16 %v3995_v62, %v3993_v57  ;;  %4000 = vtanh.f32 %v2464_v58  ;;  %v2434_v7 = vunpack.c.l.bf16 %v2400_v60  ;;  %v2435_v8 = vunpack.c.h.bf16 %v2400_v60 }
 0x2a7   :  { %v3999_v51 = vpop.eup %3998  ;;  %v2750_v3 = vunpack.c.l.bf16 %v2718_v63  ;;  %v2751_v6 = vunpack.c.h.bf16 %v2718_v63  ;;  %4002 = vtanh.f32 %v2465_v59  ;;  %v2276_v56 = vunpack.c.l.bf16 %v2241_v61 }
 0x2a8   :  { %v2592_v15 = vunpack.c.l.bf16 %v2559_v5  ;;  %v2593_v21 = vunpack.c.h.bf16 %v2559_v5  ;;  %v2574_v9 = vpack.c.bf16 %v3999_v51, %v3997_v4  ;;  %4004 = vtanh.f32 %v2434_v7 }
 0x2a9   :  { %v2814_v10 = vmul.f32 0.5, %v2750_v3  ;;  %v2815_v11 = vmul.f32 0.5, %v2751_v6  ;;  %4006 = vtanh.f32 %v2435_v8  ;;  %v2277_v12 = vunpack.c.h.bf16 %v2241_v61  ;;  %v1885_v13 = vpop.f32.mrf.mxu2  ;;  %v1899_v20 = vpop.f32.mrf.mxu3 }
 0x2aa   :  { %v2656_v14 = vadd.f32 1.0, %v2592_v15  ;;  %v2657_v16 = vadd.f32 1.0, %v2593_v21  ;;  %v2622_v17 = vunpack.c.l.bf16 %v2574_v9  ;;  %v2623_v19 = vunpack.c.h.bf16 %v2574_v9  ;;  %v1911_v60 = vpop.f32.mrf.mxu0  ;;  %v1925_v61 = vpop.f32.mrf.mxu1 }
 0x2ab   :  { %v2878_v23 = vpack.c.bf16 %v2815_v11, %v2814_v10  ;;  %v2340_v25 = vmul.f32 0.5, %v2276_v56  ;;  %v2341_v26 = vmul.f32 0.5, %v2277_v12  ;;  %v2306_v27 = vunpack.c.l.bf16 %v2256_v0 }
 0x2ac   :  { %v4001_v28 = vpop.eup %4000  ;;  %v2719_v30 = vpack.c.bf16 %v2657_v16, %v2656_v14  ;;  %v2686_v31 = vadd.f32 1.0, %v2622_v17  ;;  %v2687_v32 = vadd.f32 1.0, %v2623_v19  ;;  %v2307_v34 = vunpack.c.h.bf16 %v2256_v0 }
 0x2ad   :  { %v4003_v35 = vpop.eup %4002  ;;  %2910 = vst [vmem:[%s4849_s8] sm:$0xff] %v2878_v23  ;;  %v2401_v37 = vpack.c.bf16 %v2341_v26, %v2340_v25  ;;  %v2370_v39 = vmul.f32 0.5, %v2306_v27  ;;  %v1886_v40 = vadd.f32 %v1885_v13, %v1568_v24  ;;  %v1900_v42 = vadd.f32 %v1899_v20, %v1569_v29 }
 0x2ae   :  { %v4005_v43 = vpop.eup %4004  ;;  %v2752_v44 = vunpack.c.l.bf16 %v2719_v30  ;;  %v2753_v45 = vunpack.c.h.bf16 %v2719_v30  ;;  %v2734_v46 = vpack.c.bf16 %v2687_v32, %v2686_v31  ;;  %v2575_v47 = vpack.c.bf16 %v4003_v35, %v4001_v28 }
 0x2af   :  { %v4007_v48 = vpop.eup %4006  ;;  %v2436_v36 = vunpack.c.l.bf16 %v2401_v37  ;;  %v2437_v49 = vunpack.c.h.bf16 %v2401_v37  ;;  %v2371_v50 = vmul.f32 0.5, %v2307_v34  ;;  %v2257_v52 = vpack.c.bf16 %v1900_v42, %v1886_v40 }
 0x2b0   :  { %v2816_v53 = vmul.f32 0.5, %v2752_v44  ;;  %v2817_v54 = vmul.f32 0.5, %v2753_v45  ;;  %v2782_v22 = vunpack.c.l.bf16 %v2734_v46  ;;  %v2783_v55 = vunpack.c.h.bf16 %v2734_v46 }
 0x2b1   :  { %v2624_v57 = vunpack.c.l.bf16 %v2575_v47  ;;  %v2625_v58 = vunpack.c.h.bf16 %v2575_v47  ;;  %v2560_v24 = vpack.c.bf16 %v4007_v48, %v4005_v43  ;;  %4008 = vtanh.f32 %v2436_v36  ;;  %v1939_v5 = vpop.f32.mrf.mxu2  ;;  %v1953_v6 = vpop.f32.mrf.mxu3 }
 0x2b2   :  { %v2879_v38 = vpack.c.bf16 %v2817_v54, %v2816_v53  ;;  %v2846_v29 = vmul.f32 0.5, %v2782_v22  ;;  %v2847_v59 = vmul.f32 0.5, %v2783_v55  ;;  %4010 = vtanh.f32 %v2437_v49  ;;  %v1913_v47 = vpop.f32.mrf.mxu0  ;;  %v1927_v48 = vpop.f32.mrf.mxu1 }
 0x2b3   :  { %v2688_v62 = vadd.f32 1.0, %v2624_v57  ;;  %v2689_v63 = vadd.f32 1.0, %v2625_v58  ;;  %v2594_v0 = vunpack.c.l.bf16 %v2560_v24  ;;  %v2595_v4 = vunpack.c.h.bf16 %v2560_v24 }
 0x2b4   :  { %2911 = vst [vmem:[%s4849_s8 + $0x8] sm:$0xff] %v2879_v38  ;;  %v2894_v7 = vpack.c.bf16 %v2847_v59, %v2846_v29  ;;  %v2416_v8 = vpack.c.bf16 %v2371_v50, %v2370_v39  ;;  %v2308_v51 = vunpack.c.l.bf16 %v2257_v52  ;;  %v2309_v3 = vunpack.c.h.bf16 %v2257_v52 }
 0x2b5   :  { %v2735_v56 = vpack.c.bf16 %v2689_v63, %v2688_v62  ;;  %v2658_v15 = vadd.f32 1.0, %v2594_v0  ;;  %v2659_v21 = vadd.f32 1.0, %v2595_v4  ;;  %v1912_v9 = vadd.f32 %v1911_v60, %v1570_v33 }
 0x2b6   :  { %2926 = vst [vmem:[%s4849_s8 + $0x80] sm:$0xff] %v2894_v7  ;;  %v2466_v10 = vunpack.c.l.bf16 %v2416_v8  ;;  %v2467_v11 = vunpack.c.h.bf16 %v2416_v8  ;;  %v2372_v12 = vmul.f32 0.5, %v2308_v51  ;;  %v2373_v13 = vmul.f32 0.5, %v2309_v3 }
 0x2b7   :  { %v4009_v14 = vpop.eup %4008  ;;  %v2784_v16 = vunpack.c.l.bf16 %v2735_v56  ;;  %v2785_v17 = vunpack.c.h.bf16 %v2735_v56  ;;  %v2720_v19 = vpack.c.bf16 %v2659_v21, %v2658_v15  ;;  %v1926_v20 = vadd.f32 %v1925_v61, %v1571_v41 }
 0x2b8   :  { %v4011_v23 = vpop.eup %4010  ;;  %4012 = vtanh.f32 %v2466_v10  ;;  %v2417_v25 = vpack.c.bf16 %v2373_v13, %v2372_v12  ;;  %v1940_v26 = vadd.f32 %v1939_v5, %v1572_v1  ;;  %v1954_v27 = vadd.f32 %v1953_v6, %v1573_v2 }
 0x2b9   :  { %v2848_v28 = vmul.f32 0.5, %v2784_v16  ;;  %v2849_v30 = vmul.f32 0.5, %v2785_v17  ;;  %v2754_v31 = vunpack.c.l.bf16 %v2720_v19  ;;  %v2755_v32 = vunpack.c.h.bf16 %v2720_v19  ;;  %v1941_v52 = vpop.f32.mrf.mxu2  ;;  %v1955_v58 = vpop.f32.mrf.mxu3 }
 0x2ba   :  { %v2561_v34 = vpack.c.bf16 %v4011_v23, %v4009_v14  ;;  %4014 = vtanh.f32 %v2467_v11  ;;  %v2468_v35 = vunpack.c.l.bf16 %v2417_v25  ;;  %v2469_v37 = vunpack.c.h.bf16 %v2417_v25 }
 0x2bb   :  { %v2895_v39 = vpack.c.bf16 %v2849_v30, %v2848_v28  ;;  %v2818_v40 = vmul.f32 0.5, %v2754_v31  ;;  %v2819_v42 = vmul.f32 0.5, %v2755_v32  ;;  %v2242_v43 = vpack.c.bf16 %v1926_v20, %v1912_v9  ;;  %v1981_v32 = vpop.f32.mrf.mxu1 }
 0x2bc   :  { %v2596_v44 = vunpack.c.l.bf16 %v2561_v34  ;;  %v2597_v45 = vunpack.c.h.bf16 %v2561_v34  ;;  %4016 = vtanh.f32 %v2468_v35  ;;  %v2243_v46 = vpack.c.bf16 %v1954_v27, %v1940_v26  ;;  %v1967_v27 = vpop.f32.mrf.mxu0 }
 0x2bd   :  { %2927 = vst [vmem:[%s4849_s8 + $0x88] sm:$0xff] %v2895_v39  ;;  %v2880_v36 = vpack.c.bf16 %v2819_v42, %v2818_v40  ;;  %4018 = vtanh.f32 %v2469_v37  ;;  %v2278_v49 = vunpack.c.l.bf16 %v2242_v43  ;;  %v2279_v50 = vunpack.c.h.bf16 %v2242_v43 }
 0x2be   :  { %v4013_v53 = vpop.eup %4012  ;;  %v2660_v54 = vadd.f32 1.0, %v2596_v44  ;;  %v2661_v22 = vadd.f32 1.0, %v2597_v45  ;;  %v2280_v55 = vunpack.c.l.bf16 %v2243_v46  ;;  %v2281_v57 = vunpack.c.h.bf16 %v2243_v46 }
 0x2bf   :  { %2912 = vst [vmem:[%s4849_s8 + $0x10] sm:$0xff] %v2880_v36  ;;  %v2342_v24 = vmul.f32 0.5, %v2278_v49  ;;  %v2343_v38 = vmul.f32 0.5, %v2279_v50  ;;  %v1914_v29 = vadd.f32 %v1913_v47, %v1570_v33  ;;  %v1928_v59 = vadd.f32 %v1927_v48, %v1571_v41 }
 0x2c0   :  { %v4015_v60 = vpop.eup %4014  ;;  %v2721_v61 = vpack.c.bf16 %v2661_v22, %v2660_v54  ;;  %v2344_v62 = vmul.f32 0.5, %v2280_v55  ;;  %v2345_v63 = vmul.f32 0.5, %v2281_v57  ;;  %v1942_v0 = vadd.f32 %v1941_v52, %v1572_v1 }
 0x2c1   :  { %v2576_v4 = vpack.c.bf16 %v4015_v60, %v4013_v53  ;;  %v2402_v5 = vpack.c.bf16 %v2343_v38, %v2342_v24  ;;  %v2258_v7 = vpack.c.bf16 %v1928_v59, %v1914_v29  ;;  %v1956_v8 = vadd.f32 %v1955_v58, %v1573_v2  ;;  %v1995_v40 = vpop.f32.mrf.mxu2 }
 0x2c2   :  { %v4017_v51 = vpop.eup %4016  ;;  %v2756_v3 = vunpack.c.l.bf16 %v2721_v61  ;;  %v2757_v6 = vunpack.c.h.bf16 %v2721_v61  ;;  %v2403_v33 = vpack.c.bf16 %v2345_v63, %v2344_v62  ;;  %v1574_v56 = vperm.slane %v4637_v18, 4 }
 0x2c3   :  { %v4019_v41 = vpop.eup %4018  ;;  %v2626_v15 = vunpack.c.l.bf16 %v2576_v4  ;;  %v2627_v21 = vunpack.c.h.bf16 %v2576_v4  ;;  %v2438_v9 = vunpack.c.l.bf16 %v2402_v5  ;;  %v2439_v10 = vunpack.c.h.bf16 %v2402_v5 }
 0x2c4   :  { %v2820_v11 = vmul.f32 0.5, %v2756_v3  ;;  %v2821_v12 = vmul.f32 0.5, %v2757_v6  ;;  %v2577_v1 = vpack.c.bf16 %v4019_v41, %v4017_v51  ;;  %v2440_v13 = vunpack.c.l.bf16 %v2403_v33  ;;  %v2009_v41 = vpop.f32.mrf.mxu3 }
 0x2c5   :  { %v2690_v14 = vadd.f32 1.0, %v2626_v15  ;;  %v2691_v16 = vadd.f32 1.0, %v2627_v21  ;;  %4020 = vtanh.f32 %v2438_v9  ;;  %v2441_v17 = vunpack.c.h.bf16 %v2403_v33  ;;  %v1969_v15 = vpop.f32.mrf.mxu0 }
 0x2c6   :  { %v2881_v2 = vpack.c.bf16 %v2821_v12, %v2820_v11  ;;  %v2628_v19 = vunpack.c.l.bf16 %v2577_v1  ;;  %v2629_v20 = vunpack.c.h.bf16 %v2577_v1  ;;  %4022 = vtanh.f32 %v2439_v10  ;;  %v1983_v11 = vpop.f32.mrf.mxu1 }
 0x2c7   :  { %v2736_v23 = vpack.c.bf16 %v2691_v16, %v2690_v14  ;;  %4024 = vtanh.f32 %v2440_v13  ;;  %v2310_v25 = vunpack.c.l.bf16 %v2258_v7  ;;  %v2311_v26 = vunpack.c.h.bf16 %v2258_v7 }
 0x2c8   :  { %2913 = vst [vmem:[%s4849_s8 + $0x18] sm:$0xff] %v2881_v2  ;;  %v2692_v28 = vadd.f32 1.0, %v2628_v19  ;;  %v2693_v30 = vadd.f32 1.0, %v2629_v20  ;;  %4026 = vtanh.f32 %v2441_v17  ;;  %v2259_v31 = vpack.c.bf16 %v1956_v8, %v1942_v0 }
 0x2c9   :  { %v2786_v34 = vunpack.c.l.bf16 %v2736_v23  ;;  %v2787_v35 = vunpack.c.h.bf16 %v2736_v23  ;;  %v2374_v37 = vmul.f32 0.5, %v2310_v25  ;;  %v2375_v39 = vmul.f32 0.5, %v2311_v26  ;;  %v4699_v14 = vpop.f32.mrf.mxu2 }
 0x2ca   :  { %v2737_v42 = vpack.c.bf16 %v2693_v30, %v2692_v28  ;;  %v2312_v43 = vunpack.c.l.bf16 %v2259_v31  ;;  %v2313_v44 = vunpack.c.h.bf16 %v2259_v31  ;;  %v1968_v45 = vadd.f32 %v1967_v27, %v1574_v56 }
 0x2cb   :  { %v4021_v46 = vpop.eup %4020  ;;  %v2850_v47 = vmul.f32 0.5, %v2786_v34  ;;  %v2851_v48 = vmul.f32 0.5, %v2787_v35  ;;  %v2418_v36 = vpack.c.bf16 %v2375_v39, %v2374_v37  ;;  %v1575_v49 = vperm.slane %v4637_v18, 5 }
 0x2cc   :  { %v4023_v50 = vpop.eup %4022  ;;  %v2788_v52 = vunpack.c.l.bf16 %v2737_v42  ;;  %v2789_v53 = vunpack.c.h.bf16 %v2737_v42  ;;  %v2376_v54 = vmul.f32 0.5, %v2312_v43  ;;  %v2377_v22 = vmul.f32 0.5, %v2313_v44 }
 0x2cd   :  { %v4025_v55 = vpop.eup %4024  ;;  %v2896_v57 = vpack.c.bf16 %v2851_v48, %v2850_v47  ;;  %v2562_v58 = vpack.c.bf16 %v4023_v50, %v4021_v46  ;;  %v2470_v24 = vunpack.c.l.bf16 %v2418_v36  ;;  %v2471_v38 = vunpack.c.h.bf16 %v2418_v36 }
 0x2ce   :  { %v4027_v29 = vpop.eup %4026  ;;  %v2852_v59 = vmul.f32 0.5, %v2788_v52  ;;  %v2853_v60 = vmul.f32 0.5, %v2789_v53  ;;  %v2419_v61 = vpack.c.bf16 %v2377_v22, %v2376_v54  ;;  %v1982_v62 = vadd.f32 %v1981_v32, %v1575_v49 }
 0x2cf   :  { %2928 = vst [vmem:[%s4849_s8 + $0x90] sm:$0xff] %v2896_v57  ;;  %v2598_v63 = vunpack.c.l.bf16 %v2562_v58  ;;  %v2599_v0 = vunpack.c.h.bf16 %v2562_v58  ;;  %v2563_v4 = vpack.c.bf16 %v4027_v29, %v4025_v55  ;;  %4028 = vtanh.f32 %v2470_v24  ;;  %v2023_v24 = vpop.f32.mrf.mxu0 }
 0x2d0   :  { %v2897_v5 = vpack.c.bf16 %v2853_v60, %v2852_v59  ;;  %4030 = vtanh.f32 %v2471_v38  ;;  %v2472_v7 = vunpack.c.l.bf16 %v2419_v61  ;;  %v2473_v8 = vunpack.c.h.bf16 %v2419_v61  ;;  %v2037_v61 = vpop.f32.mrf.mxu1 }
 0x2d1   :  { %v2662_v51 = vadd.f32 1.0, %v2598_v63  ;;  %v2663_v3 = vadd.f32 1.0, %v2599_v0  ;;  %v2600_v6 = vunpack.c.l.bf16 %v2563_v4  ;;  %v2601_v33 = vunpack.c.h.bf16 %v2563_v4  ;;  %v2011_v4 = vpop.f32.mrf.mxu3 }
 0x2d2   :  { %2929 = vst [vmem:[%s4849_s8 + $0x98] sm:$0xff] %v2897_v5  ;;  %4032 = vtanh.f32 %v2472_v7  ;;  %v2244_v21 = vpack.c.bf16 %v1982_v62, %v1968_v45  ;;  %v1576_v9 = vperm.slane %v4637_v18, 6  ;;  %v1577_v10 = vperm.slane %v4637_v18, 7  ;;  %v2051_v5 = vpop.f32.mrf.mxu2 }
 0x2d3   :  { %v2722_v12 = vpack.c.bf16 %v2663_v3, %v2662_v51  ;;  %v2664_v1 = vadd.f32 1.0, %v2600_v6  ;;  %v2665_v13 = vadd.f32 1.0, %v2601_v33  ;;  %4034 = vtanh.f32 %v2473_v8  ;;  %v4716_v3 = vld [vmem:[%s4848_s7 + $0x10] sm:$0xff] }
 0x2d4   :  { %v2282_v16 = vunpack.c.l.bf16 %v2244_v21  ;;  %v2283_v17 = vunpack.c.h.bf16 %v2244_v21  ;;  %v1996_v2 = vadd.f32 %v1995_v40, %v1576_v9  ;;  %v2010_v19 = vadd.f32 %v2009_v41, %v1577_v10 }
 0x2d5   :  { %v4029_v20 = vpop.eup %4028  ;;  %v2758_v23 = vunpack.c.l.bf16 %v2722_v12  ;;  %v2759_v25 = vunpack.c.h.bf16 %v2722_v12  ;;  %v2723_v26 = vpack.c.bf16 %v2665_v13, %v2664_v1  ;;  %v1970_v27 = vadd.f32 %v1969_v15, %v1574_v56 }
 0x2d6   :  { %v4031_v28 = vpop.eup %4030  ;;  %v2346_v30 = vmul.f32 0.5, %v2282_v16  ;;  %v2347_v31 = vmul.f32 0.5, %v2283_v17  ;;  %v2245_v32 = vpack.c.bf16 %v2010_v19, %v1996_v2  ;;  %v1984_v34 = vadd.f32 %v1983_v11, %v1575_v49 }
 0x2d7   :  { %v2822_v35 = vmul.f32 0.5, %v2758_v23  ;;  %v2823_v37 = vmul.f32 0.5, %v2759_v25  ;;  %v2760_v39 = vunpack.c.l.bf16 %v2723_v26  ;;  %v2761_v42 = vunpack.c.h.bf16 %v2723_v26 }
 0x2d8   :  { %v4033_v40 = vpop.eup %4032  ;;  %v2578_v43 = vpack.c.bf16 %v4031_v28, %v4029_v20  ;;  %v2404_v44 = vpack.c.bf16 %v2347_v31, %v2346_v30  ;;  %v2284_v45 = vunpack.c.l.bf16 %v2245_v32  ;;  %v2285_v46 = vunpack.c.h.bf16 %v2245_v32 }
 0x2d9   :  { %v4035_v47 = vpop.eup %4034  ;;  %v2882_v48 = vpack.c.bf16 %v2823_v37, %v2822_v35  ;;  %v2824_v36 = vmul.f32 0.5, %v2760_v39  ;;  %v2825_v50 = vmul.f32 0.5, %v2761_v42  ;;  %v2260_v52 = vpack.c.bf16 %v1984_v34, %v1970_v27  ;;  %v2025_v35 = vpop.f32.mrf.mxu0 }
 0x2da   :  { %v2630_v56 = vunpack.c.l.bf16 %v2578_v43  ;;  %v2631_v53 = vunpack.c.h.bf16 %v2578_v43  ;;  %v2579_v54 = vpack.c.bf16 %v4035_v47, %v4033_v40  ;;  %v2442_v22 = vunpack.c.l.bf16 %v2404_v44  ;;  %v2039_v40 = vpop.f32.mrf.mxu1 }
 0x2db   :  { %2914 = vst [vmem:[%s4849_s8 + $0x20] sm:$0xff] %v2882_v48  ;;  %v2883_v49 = vpack.c.bf16 %v2825_v50, %v2824_v36  ;;  %v2443_v55 = vunpack.c.h.bf16 %v2404_v44  ;;  %v2348_v57 = vmul.f32 0.5, %v2284_v45  ;;  %v2349_v58 = vmul.f32 0.5, %v2285_v46  ;;  %v2065_v48 = vpop.f32.mrf.mxu3  ;;  %v2053_v36 = vpop.f32.mrf.mxu2 }
 0x2dc   :  { %v2694_v38 = vadd.f32 1.0, %v2630_v56  ;;  %v2695_v29 = vadd.f32 1.0, %v2631_v53  ;;  %v2632_v59 = vunpack.c.l.bf16 %v2579_v54  ;;  %v2633_v60 = vunpack.c.h.bf16 %v2579_v54 }
 0x2dd   :  { %2915 = vst [vmem:[%s4849_s8 + $0x28] sm:$0xff] %v2883_v49  ;;  %4036 = vtanh.f32 %v2442_v22  ;;  %v2405_v62 = vpack.c.bf16 %v2349_v58, %v2348_v57  ;;  %v2314_v63 = vunpack.c.l.bf16 %v2260_v52  ;;  %v2315_v0 = vunpack.c.h.bf16 %v2260_v52 }
 0x2de   :  { %v2738_v7 = vpack.c.bf16 %v2695_v29, %v2694_v38  ;;  %v2696_v8 = vadd.f32 1.0, %v2632_v59  ;;  %v2697_v51 = vadd.f32 1.0, %v2633_v60  ;;  %4038 = vtanh.f32 %v2443_v55 }
 0x2df   :  { %v2444_v6 = vunpack.c.l.bf16 %v2405_v62  ;;  %v2445_v33 = vunpack.c.h.bf16 %v2405_v62  ;;  %v2378_v41 = vmul.f32 0.5, %v2314_v63  ;;  %v2379_v15 = vmul.f32 0.5, %v2315_v0 }
 0x2e0   :  { %v2790_v21 = vunpack.c.l.bf16 %v2738_v7  ;;  %v2791_v11 = vunpack.c.h.bf16 %v2738_v7  ;;  %v2739_v12 = vpack.c.bf16 %v2697_v51, %v2696_v8  ;;  %v1998_v1 = vadd.f32 %v4699_v14, %v1576_v9 }
 0x2e1   :  { %4040 = vtanh.f32 %v2444_v6  ;;  %v2420_v13 = vpack.c.bf16 %v2379_v15, %v2378_v41  ;;  %v2012_v16 = vadd.f32 %v2011_v4, %v1577_v10  ;;  %v1578_v17 = vperm.slane %v4716_v3, 0 }
 0x2e2   :  { %v2854_v2 = vmul.f32 0.5, %v2790_v21  ;;  %v2855_v19 = vmul.f32 0.5, %v2791_v11  ;;  %v2792_v20 = vunpack.c.l.bf16 %v2739_v12  ;;  %v2793_v23 = vunpack.c.h.bf16 %v2739_v12 }
 0x2e3   :  { %v4037_v25 = vpop.eup %4036  ;;  %4042 = vtanh.f32 %v2445_v33  ;;  %v2474_v26 = vunpack.c.l.bf16 %v2420_v13  ;;  %v2475_v27 = vunpack.c.h.bf16 %v2420_v13  ;;  %v2261_v28 = vpack.c.bf16 %v2012_v16, %v1998_v1 }
 0x2e4   :  { %v4039_v30 = vpop.eup %4038  ;;  %v2898_v31 = vpack.c.bf16 %v2855_v19, %v2854_v2  ;;  %v2856_v32 = vmul.f32 0.5, %v2792_v20  ;;  %v2857_v9 = vmul.f32 0.5, %v2793_v23  ;;  %v2024_v14 = vadd.f32 %v2023_v24, %v1578_v17 }
 0x2e5   :  { %v2564_v34 = vpack.c.bf16 %v4039_v30, %v4037_v25  ;;  %4044 = vtanh.f32 %v2474_v26  ;;  %v2316_v18 = vunpack.c.l.bf16 %v2261_v28  ;;  %v2317_v10 = vunpack.c.h.bf16 %v2261_v28 }
 0x2e6   :  { %2930 = vst [vmem:[%s4849_s8 + $0xa0] sm:$0xff] %v2898_v31  ;;  %v2899_v37 = vpack.c.bf16 %v2857_v9, %v2856_v32  ;;  %4046 = vtanh.f32 %v2475_v27  ;;  %v1579_v39 = vperm.slane %v4716_v3, 1  ;;  %v1580_v42 = vperm.slane %v4716_v3, 2  ;;  %v2067_v27 = vpop.f32.mrf.mxu3 }
 0x2e7   :  { %v4041_v43 = vpop.eup %4040  ;;  %v2602_v44 = vunpack.c.l.bf16 %v2564_v34  ;;  %v2603_v45 = vunpack.c.h.bf16 %v2564_v34  ;;  %v2380_v46 = vmul.f32 0.5, %v2316_v18  ;;  %v2381_v47 = vmul.f32 0.5, %v2317_v10 }
 0x2e8   :  { %2931 = vst [vmem:[%s4849_s8 + $0xa8] sm:$0xff] %v2899_v37  ;;  %v2038_v50 = vadd.f32 %v2037_v61, %v1579_v39  ;;  %v2052_v52 = vadd.f32 %v2051_v5, %v1580_v42  ;;  %v1581_v56 = vperm.slane %v4716_v3, 3  ;;  %v2026_v53 = vadd.f32 %v2025_v35, %v1578_v17  ;;  %v2079_v35 = vpop.f32.mrf.mxu0 }
 0x2e9   :  { %v4043_v54 = vpop.eup %4042  ;;  %v2666_v22 = vadd.f32 1.0, %v2602_v44  ;;  %v2667_v49 = vadd.f32 1.0, %v2603_v45  ;;  %v2421_v55 = vpack.c.bf16 %v2381_v47, %v2380_v46  ;;  %v2040_v57 = vadd.f32 %v2039_v40, %v1579_v39  ;;  %v2093_v44 = vpop.f32.mrf.mxu1 }
 0x2ea   :  { %v2565_v58 = vpack.c.bf16 %v4043_v54, %v4041_v43  ;;  %v2246_v24 = vpack.c.bf16 %v2038_v50, %v2024_v14  ;;  %v2066_v38 = vadd.f32 %v2065_v48, %v1581_v56  ;;  %v4735_v29 = vadd.f32 %v2053_v36, %v1580_v42 }
 0x2eb   :  { %v4045_v59 = vpop.eup %4044  ;;  %v2724_v60 = vpack.c.bf16 %v2667_v49, %v2666_v22  ;;  %v2476_v62 = vunpack.c.l.bf16 %v2421_v55  ;;  %v2477_v61 = vunpack.c.h.bf16 %v2421_v55  ;;  %v2262_v63 = vpack.c.bf16 %v2040_v57, %v2026_v53 }
 0x2ec   :  { %v4047_v0 = vpop.eup %4046  ;;  %v2604_v4 = vunpack.c.l.bf16 %v2565_v58  ;;  %v2605_v5 = vunpack.c.h.bf16 %v2565_v58  ;;  %v2286_v7 = vunpack.c.l.bf16 %v2246_v24  ;;  %v2287_v8 = vunpack.c.h.bf16 %v2246_v24 }
 0x2ed   :  { %v2762_v51 = vunpack.c.l.bf16 %v2724_v60  ;;  %v2763_v6 = vunpack.c.h.bf16 %v2724_v60  ;;  %v2580_v33 = vpack.c.bf16 %v4047_v0, %v4045_v59  ;;  %4048 = vtanh.f32 %v2476_v62 }
 0x2ee   :  { %v2668_v41 = vadd.f32 1.0, %v2604_v4  ;;  %v2669_v15 = vadd.f32 1.0, %v2605_v5  ;;  %4050 = vtanh.f32 %v2477_v61  ;;  %v2350_v21 = vmul.f32 0.5, %v2286_v7  ;;  %v2107_v7 = vpop.f32.mrf.mxu2 }
 0x2ef   :  { %v2826_v11 = vmul.f32 0.5, %v2762_v51  ;;  %v2827_v12 = vmul.f32 0.5, %v2763_v6  ;;  %v2634_v1 = vunpack.c.l.bf16 %v2580_v33  ;;  %v2635_v13 = vunpack.c.h.bf16 %v2580_v33 }
 0x2f0   :  { %v2725_v16 = vpack.c.bf16 %v2669_v15, %v2668_v41  ;;  %v2351_v17 = vmul.f32 0.5, %v2287_v8  ;;  %v2247_v2 = vpack.c.bf16 %v2066_v38, %v2052_v52  ;;  %v2318_v19 = vunpack.c.l.bf16 %v2262_v63  ;;  %v2121_v8 = vpop.f32.mrf.mxu3 }
 0x2f1   :  { %v2884_v20 = vpack.c.bf16 %v2827_v12, %v2826_v11  ;;  %v2698_v23 = vadd.f32 1.0, %v2634_v1  ;;  %v2699_v25 = vadd.f32 1.0, %v2635_v13  ;;  %v2319_v26 = vunpack.c.h.bf16 %v2262_v63  ;;  %v2081_v11 = vpop.f32.mrf.mxu0 }
 0x2f2   :  { %v2764_v28 = vunpack.c.l.bf16 %v2725_v16  ;;  %v2765_v30 = vunpack.c.h.bf16 %v2725_v16  ;;  %v2406_v31 = vpack.c.bf16 %v2351_v17, %v2350_v21  ;;  %v2288_v32 = vunpack.c.l.bf16 %v2247_v2  ;;  %v2095_v17 = vpop.f32.mrf.mxu1 }
 0x2f3   :  { %v4049_v9 = vpop.eup %4048  ;;  %2916 = vst [vmem:[%s4849_s8 + $0x30] sm:$0xff] %v2884_v20  ;;  %v2740_v14 = vpack.c.bf16 %v2699_v25, %v2698_v23  ;;  %v2289_v34 = vunpack.c.h.bf16 %v2247_v2  ;;  %v2382_v18 = vmul.f32 0.5, %v2318_v19  ;;  %v2383_v10 = vmul.f32 0.5, %v2319_v26 }
 0x2f4   :  { %v4051_v37 = vpop.eup %4050  ;;  %v2828_v39 = vmul.f32 0.5, %v2764_v28  ;;  %v2829_v42 = vmul.f32 0.5, %v2765_v30  ;;  %v2446_v40 = vunpack.c.l.bf16 %v2406_v31  ;;  %v2447_v43 = vunpack.c.h.bf16 %v2406_v31 }
 0x2f5   :  { %v2794_v45 = vunpack.c.l.bf16 %v2740_v14  ;;  %v2795_v46 = vunpack.c.h.bf16 %v2740_v14  ;;  %v2581_v47 = vpack.c.bf16 %v4051_v37, %v4049_v9  ;;  %v2352_v48 = vmul.f32 0.5, %v2288_v32 }
 0x2f6   :  { %v2885_v36 = vpack.c.bf16 %v2829_v42, %v2828_v39  ;;  %4052 = vtanh.f32 %v2446_v40  ;;  %v2353_v50 = vmul.f32 0.5, %v2289_v34  ;;  %v2422_v52 = vpack.c.bf16 %v2383_v10, %v2382_v18 }
 0x2f7   :  { %v2858_v53 = vmul.f32 0.5, %v2794_v45  ;;  %v2859_v54 = vmul.f32 0.5, %v2795_v46  ;;  %v2636_v22 = vunpack.c.l.bf16 %v2581_v47  ;;  %v2637_v49 = vunpack.c.h.bf16 %v2581_v47 }
 0x2f8   :  { %2917 = vst [vmem:[%s4849_s8 + $0x38] sm:$0xff] %v2885_v36  ;;  %4054 = vtanh.f32 %v2447_v43  ;;  %v2407_v55 = vpack.c.bf16 %v2353_v50, %v2352_v48  ;;  %v2478_v57 = vunpack.c.l.bf16 %v2422_v52  ;;  %v2479_v58 = vunpack.c.h.bf16 %v2422_v52 }
 0x2f9   :  { %v2900_v24 = vpack.c.bf16 %v2859_v54, %v2858_v53  ;;  %v2700_v38 = vadd.f32 1.0, %v2636_v22  ;;  %v2701_v59 = vadd.f32 1.0, %v2637_v49  ;;  %v2068_v60 = vadd.f32 %v2067_v27, %v1581_v56 }
 0x2fa   :  { %v2448_v62 = vunpack.c.l.bf16 %v2407_v55  ;;  %v2449_v61 = vunpack.c.h.bf16 %v2407_v55  ;;  %4056 = vtanh.f32 %v2478_v57  ;;  %v1582_v63 = vperm.slane %v4716_v3, 4 }
 0x2fb   :  { %2932 = vst [vmem:[%s4849_s8 + $0xb0] sm:$0xff] %v2900_v24  ;;  %v2741_v0 = vpack.c.bf16 %v2701_v59, %v2700_v38  ;;  %4058 = vtanh.f32 %v2479_v58  ;;  %v2263_v4 = vpack.c.bf16 %v2068_v60, %v4735_v29  ;;  %v1583_v5 = vperm.slane %v4716_v3, 5 }
 0x2fc   :  { %v4053_v51 = vpop.eup %4052  ;;  %4060 = vtanh.f32 %v2448_v62  ;;  %v2080_v56 = vadd.f32 %v2079_v35, %v1582_v63  ;;  %v1584_v6 = vperm.slane %v4716_v3, 6  ;;  %v1585_v33 = vperm.slane %v4716_v3, 7 }
 0x2fd   :  { %v2796_v41 = vunpack.c.l.bf16 %v2741_v0  ;;  %v2797_v15 = vunpack.c.h.bf16 %v2741_v0  ;;  %4062 = vtanh.f32 %v2449_v61  ;;  %v2320_v21 = vunpack.c.l.bf16 %v2263_v4  ;;  %v2109_v61 = vpop.f32.mrf.mxu2 }
 0x2fe   :  { %v4055_v12 = vpop.eup %4054  ;;  %v2321_v1 = vunpack.c.h.bf16 %v2263_v4  ;;  %v2094_v13 = vadd.f32 %v2093_v44, %v1583_v5  ;;  %v2108_v29 = vadd.f32 %v2107_v7, %v1584_v6  ;;  %v2122_v16 = vadd.f32 %v2121_v8, %v1585_v33 }
 0x2ff   :  { %v2860_v2 = vmul.f32 0.5, %v2796_v41  ;;  %v2861_v19 = vmul.f32 0.5, %v2797_v15  ;;  %v2566_v20 = vpack.c.bf16 %v4055_v12, %v4053_v51  ;;  %v2384_v23 = vmul.f32 0.5, %v2320_v21 }
 0x300   :  { %v4057_v25 = vpop.eup %4056  ;;  %v2385_v26 = vmul.f32 0.5, %v2321_v1  ;;  %v2248_v27 = vpack.c.bf16 %v2094_v13, %v2080_v56  ;;  %v2249_v28 = vpack.c.bf16 %v2122_v16, %v2108_v29  ;;  %v2082_v30 = vadd.f32 %v2081_v11, %v1582_v63 }
 0x301   :  { %v4059_v31 = vpop.eup %4058  ;;  %v2901_v32 = vpack.c.bf16 %v2861_v19, %v2860_v2  ;;  %v2606_v9 = vunpack.c.l.bf16 %v2566_v20  ;;  %v2607_v14 = vunpack.c.h.bf16 %v2566_v20  ;;  %v2096_v34 = vadd.f32 %v2095_v17, %v1583_v5  ;;  %v2123_v19 = vpop.f32.mrf.mxu3  ;;  %v4766_v20 = vld [vmem:[%s4848_s7 + $0x18] sm:$0xff] }
 0x302   :  { %v4061_v18 = vpop.eup %4060  ;;  %v2582_v10 = vpack.c.bf16 %v4059_v31, %v4057_v25  ;;  %v2423_v35 = vpack.c.bf16 %v2385_v26, %v2384_v23  ;;  %v2290_v37 = vunpack.c.l.bf16 %v2248_v27  ;;  %v2291_v39 = vunpack.c.h.bf16 %v2248_v27 }
 0x303   :  { %v4063_v42 = vpop.eup %4062  ;;  %2933 = vst [vmem:[%s4849_s8 + $0xb8] sm:$0xff] %v2901_v32  ;;  %v2670_v40 = vadd.f32 1.0, %v2606_v9  ;;  %v2671_v43 = vadd.f32 1.0, %v2607_v14  ;;  %v2292_v44 = vunpack.c.l.bf16 %v2249_v28  ;;  %v2293_v45 = vunpack.c.h.bf16 %v2249_v28  ;;  %v2135_v14 = vpop.f32.mrf.mxu0 }
 0x304   :  { %v2567_v46 = vpack.c.bf16 %v4063_v42, %v4061_v18  ;;  %v2638_v47 = vunpack.c.l.bf16 %v2582_v10  ;;  %v2639_v48 = vunpack.c.h.bf16 %v2582_v10  ;;  %v2480_v36 = vunpack.c.l.bf16 %v2423_v35 }
 0x305   :  { %v2726_v50 = vpack.c.bf16 %v2671_v43, %v2670_v40  ;;  %v2481_v52 = vunpack.c.h.bf16 %v2423_v35  ;;  %v2354_v53 = vmul.f32 0.5, %v2290_v37  ;;  %v2355_v54 = vmul.f32 0.5, %v2291_v39  ;;  %v2149_v37 = vpop.f32.mrf.mxu1 }
 0x306   :  { %v2608_v22 = vunpack.c.l.bf16 %v2567_v46  ;;  %v2609_v49 = vunpack.c.h.bf16 %v2567_v46  ;;  %v2702_v55 = vadd.f32 1.0, %v2638_v47  ;;  %v2703_v57 = vadd.f32 1.0, %v2639_v48 }
 0x307   :  { %v2766_v58 = vunpack.c.l.bf16 %v2726_v50  ;;  %v2767_v24 = vunpack.c.h.bf16 %v2726_v50  ;;  %4064 = vtanh.f32 %v2480_v36  ;;  %v2408_v38 = vpack.c.bf16 %v2355_v54, %v2354_v53 }
 0x308   :  { %v2672_v59 = vadd.f32 1.0, %v2608_v22  ;;  %v2673_v60 = vadd.f32 1.0, %v2609_v49  ;;  %v2742_v62 = vpack.c.bf16 %v2703_v57, %v2702_v55  ;;  %4066 = vtanh.f32 %v2481_v52 }
 0x309   :  { %v2830_v63 = vmul.f32 0.5, %v2766_v58  ;;  %v2831_v0 = vmul.f32 0.5, %v2767_v24  ;;  %v2450_v4 = vunpack.c.l.bf16 %v2408_v38  ;;  %v2451_v5 = vunpack.c.h.bf16 %v2408_v38 }
 0x30a   :  { %v2727_v7 = vpack.c.bf16 %v2673_v60, %v2672_v59  ;;  %v2798_v8 = vunpack.c.l.bf16 %v2742_v62  ;;  %v2799_v51 = vunpack.c.h.bf16 %v2742_v62  ;;  %v2356_v56 = vmul.f32 0.5, %v2292_v44 }
 0x30b   :  { %v2886_v41 = vpack.c.bf16 %v2831_v0, %v2830_v63  ;;  %4068 = vtanh.f32 %v2450_v4  ;;  %v2357_v15 = vmul.f32 0.5, %v2293_v45  ;;  %v2264_v21 = vpack.c.bf16 %v2096_v34, %v2082_v30  ;;  %v2177_v63 = vpop.f32.mrf.mxu3 }
 0x30c   :  { %v2768_v11 = vunpack.c.l.bf16 %v2727_v7  ;;  %v2769_v12 = vunpack.c.h.bf16 %v2727_v7  ;;  %v2862_v1 = vmul.f32 0.5, %v2798_v8  ;;  %v2863_v13 = vmul.f32 0.5, %v2799_v51 }
 0x30d   :  { %v4065_v29 = vpop.eup %4064  ;;  %2918 = vst [vmem:[%s4849_s8 + $0x40] sm:$0xff] %v2886_v41  ;;  %4070 = vtanh.f32 %v2451_v5  ;;  %v2409_v16 = vpack.c.bf16 %v2357_v15, %v2356_v56  ;;  %v2322_v17 = vunpack.c.l.bf16 %v2264_v21  ;;  %v2323_v2 = vunpack.c.h.bf16 %v2264_v21 }
 0x30e   :  { %v4067_v23 = vpop.eup %4066  ;;  %v2832_v25 = vmul.f32 0.5, %v2768_v11  ;;  %v2833_v26 = vmul.f32 0.5, %v2769_v12  ;;  %v2902_v27 = vpack.c.bf16 %v2863_v13, %v2862_v1  ;;  %v2110_v28 = vadd.f32 %v2109_v61, %v1584_v6 }
 0x30f   :  { %v2583_v30 = vpack.c.bf16 %v4067_v23, %v4065_v29  ;;  %v2452_v31 = vunpack.c.l.bf16 %v2409_v16  ;;  %v2453_v32 = vunpack.c.h.bf16 %v2409_v16  ;;  %v2386_v9 = vmul.f32 0.5, %v2322_v17 }
 0x310   :  { %v2887_v34 = vpack.c.bf16 %v2833_v26, %v2832_v25  ;;  %2934 = vst [vmem:[%s4849_s8 + $0xc0] sm:$0xff] %v2902_v27  ;;  %v2387_v18 = vmul.f32 0.5, %v2323_v2  ;;  %v2124_v10 = vadd.f32 %v2123_v19, %v1585_v33  ;;  %v1586_v35 = vperm.slane %v4766_v20, 0  ;;  %v2163_v33 = vpop.f32.mrf.mxu2 }
 0x311   :  { %v4069_v39 = vpop.eup %4068  ;;  %v2640_v42 = vunpack.c.l.bf16 %v2583_v30  ;;  %v2641_v6 = vunpack.c.h.bf16 %v2583_v30  ;;  %4072 = vtanh.f32 %v2452_v31  ;;  %v1587_v40 = vperm.slane %v4766_v20, 1 }
 0x312   :  { %2919 = vst [vmem:[%s4849_s8 + $0x48] sm:$0xff] %v2887_v34  ;;  %4074 = vtanh.f32 %v2453_v32  ;;  %v2424_v43 = vpack.c.bf16 %v2387_v18, %v2386_v9  ;;  %v2265_v44 = vpack.c.bf16 %v2124_v10, %v2110_v28  ;;  %v2136_v3 = vadd.f32 %v2135_v14, %v1586_v35  ;;  %v2137_v32 = vpop.f32.mrf.mxu0 }
 0x313   :  { %v4071_v45 = vpop.eup %4070  ;;  %v2704_v46 = vadd.f32 1.0, %v2640_v42  ;;  %v2705_v47 = vadd.f32 1.0, %v2641_v6  ;;  %v2150_v48 = vadd.f32 %v2149_v37, %v1587_v40  ;;  %v1588_v36 = vperm.slane %v4766_v20, 2 }
 0x314   :  { %v2568_v50 = vpack.c.bf16 %v4071_v45, %v4069_v39  ;;  %v2482_v52 = vunpack.c.l.bf16 %v2424_v43  ;;  %v2483_v53 = vunpack.c.h.bf16 %v2424_v43  ;;  %v2324_v54 = vunpack.c.l.bf16 %v2265_v44 }
 0x315   :  { %v2743_v22 = vpack.c.bf16 %v2705_v47, %v2704_v46  ;;  %v2325_v49 = vunpack.c.h.bf16 %v2265_v44  ;;  %v2250_v55 = vpack.c.bf16 %v2150_v48, %v2136_v3  ;;  %v2164_v57 = vadd.f32 %v2163_v33, %v1588_v36  ;;  %v2151_v3 = vpop.f32.mrf.mxu1  ;;  %v2179_v48 = vpop.f32.mrf.mxu3 }
 0x316   :  { %v2610_v58 = vunpack.c.l.bf16 %v2568_v50  ;;  %v2611_v24 = vunpack.c.h.bf16 %v2568_v50  ;;  %4076 = vtanh.f32 %v2482_v52  ;;  %v2388_v38 = vmul.f32 0.5, %v2324_v54 }
 0x317   :  { %v4073_v59 = vpop.eup %4072  ;;  %v2800_v60 = vunpack.c.l.bf16 %v2743_v22  ;;  %v2801_v62 = vunpack.c.h.bf16 %v2743_v22  ;;  %4078 = vtanh.f32 %v2483_v53  ;;  %v2389_v61 = vmul.f32 0.5, %v2325_v49 }
 0x318   :  { %v4075_v0 = vpop.eup %4074  ;;  %v2674_v4 = vadd.f32 1.0, %v2610_v58  ;;  %v2675_v5 = vadd.f32 1.0, %v2611_v24  ;;  %v2294_v7 = vunpack.c.l.bf16 %v2250_v55  ;;  %v2295_v8 = vunpack.c.h.bf16 %v2250_v55  ;;  %v2165_v47 = vpop.f32.mrf.mxu2 }
 0x319   :  { %v2864_v51 = vmul.f32 0.5, %v2800_v60  ;;  %v2865_v56 = vmul.f32 0.5, %v2801_v62  ;;  %v2569_v41 = vpack.c.bf16 %v4075_v0, %v4073_v59  ;;  %v2425_v15 = vpack.c.bf16 %v2389_v61, %v2388_v38 }
 0x31a   :  { %v2728_v21 = vpack.c.bf16 %v2675_v5, %v2674_v4  ;;  %v2358_v11 = vmul.f32 0.5, %v2294_v7  ;;  %v2359_v12 = vmul.f32 0.5, %v2295_v8  ;;  %v1589_v1 = vperm.slane %v4766_v20, 3 }
 0x31b   :  { %v2903_v13 = vpack.c.bf16 %v2865_v56, %v2864_v51  ;;  %v2612_v29 = vunpack.c.l.bf16 %v2569_v41  ;;  %v2613_v16 = vunpack.c.h.bf16 %v2569_v41  ;;  %v2484_v17 = vunpack.c.l.bf16 %v2425_v15 }
 0x31c   :  { %v4077_v2 = vpop.eup %4076  ;;  %v2770_v19 = vunpack.c.l.bf16 %v2728_v21  ;;  %v2771_v23 = vunpack.c.h.bf16 %v2728_v21  ;;  %v2485_v25 = vunpack.c.h.bf16 %v2425_v15  ;;  %v2410_v26 = vpack.c.bf16 %v2359_v12, %v2358_v11 }
 0x31d   :  { %v4079_v27 = vpop.eup %4078  ;;  %2935 = vst [vmem:[%s4849_s8 + $0xc8] sm:$0xff] %v2903_v13  ;;  %v2676_v28 = vadd.f32 1.0, %v2612_v29  ;;  %v2677_v30 = vadd.f32 1.0, %v2613_v16  ;;  %4080 = vtanh.f32 %v2484_v17  ;;  %v2178_v31 = vadd.f32 %v2177_v63, %v1589_v1  ;;  %v2191_v17 = vpop.f32.mrf.mxu0 }
 0x31e   :  { %v2834_v9 = vmul.f32 0.5, %v2770_v19  ;;  %v2835_v14 = vmul.f32 0.5, %v2771_v23  ;;  %v2584_v34 = vpack.c.bf16 %v4079_v27, %v4077_v2  ;;  %4082 = vtanh.f32 %v2485_v25  ;;  %v2205_v25 = vpop.f32.mrf.mxu1 }
 0x31f   :  { %v2729_v18 = vpack.c.bf16 %v2677_v30, %v2676_v28  ;;  %v2454_v10 = vunpack.c.l.bf16 %v2410_v26  ;;  %v2455_v37 = vunpack.c.h.bf16 %v2410_v26  ;;  %v2251_v39 = vpack.c.bf16 %v2178_v31, %v2164_v57  ;;  %v2233_v31 = vpop.f32.mrf.mxu3 }
 0x320   :  { %v2888_v42 = vpack.c.bf16 %v2835_v14, %v2834_v9  ;;  %v2642_v6 = vunpack.c.l.bf16 %v2584_v34  ;;  %v2643_v43 = vunpack.c.h.bf16 %v2584_v34  ;;  %v2138_v44 = vadd.f32 %v2137_v32, %v1586_v35  ;;  %v2219_v30 = vpop.f32.mrf.mxu2 }
 0x321   :  { %v2772_v33 = vunpack.c.l.bf16 %v2729_v18  ;;  %v2773_v45 = vunpack.c.h.bf16 %v2729_v18  ;;  %4084 = vtanh.f32 %v2454_v10  ;;  %v2296_v46 = vunpack.c.l.bf16 %v2251_v39 }
 0x322   :  { %2920 = vst [vmem:[%s4849_s8 + $0x50] sm:$0xff] %v2888_v42  ;;  %v2706_v50 = vadd.f32 1.0, %v2642_v6  ;;  %v2707_v52 = vadd.f32 1.0, %v2643_v43  ;;  %4086 = vtanh.f32 %v2455_v37  ;;  %v2297_v53 = vunpack.c.h.bf16 %v2251_v39 }
 0x323   :  { %v4081_v54 = vpop.eup %4080  ;;  %v2836_v22 = vmul.f32 0.5, %v2772_v33  ;;  %v2837_v49 = vmul.f32 0.5, %v2773_v45  ;;  %v2360_v55 = vmul.f32 0.5, %v2296_v46  ;;  %v2152_v35 = vadd.f32 %v2151_v3, %v1587_v40 }
 0x324   :  { %v4083_v57 = vpop.eup %4082  ;;  %v2744_v58 = vpack.c.bf16 %v2707_v52, %v2706_v50  ;;  %v2361_v24 = vmul.f32 0.5, %v2297_v53  ;;  %v2166_v38 = vadd.f32 %v2165_v47, %v1588_v36  ;;  %v2180_v59 = vadd.f32 %v2179_v48, %v1589_v1 }
 0x325   :  { %v2889_v60 = vpack.c.bf16 %v2837_v49, %v2836_v22  ;;  %v2585_v62 = vpack.c.bf16 %v4083_v57, %v4081_v54  ;;  %v2266_v61 = vpack.c.bf16 %v2152_v35, %v2138_v44  ;;  %v1590_v63 = vperm.slane %v4766_v20, 4 }
 0x326   :  { %v2802_v0 = vunpack.c.l.bf16 %v2744_v58  ;;  %v2803_v4 = vunpack.c.h.bf16 %v2744_v58  ;;  %v2411_v5 = vpack.c.bf16 %v2361_v24, %v2360_v55  ;;  %v2267_v7 = vpack.c.bf16 %v2180_v59, %v2166_v38 }
 0x327   :  { %v4085_v8 = vpop.eup %4084  ;;  %2921 = vst [vmem:[%s4849_s8 + $0x58] sm:$0xff] %v2889_v60  ;;  %v2644_v40 = vunpack.c.l.bf16 %v2585_v62  ;;  %v2645_v51 = vunpack.c.h.bf16 %v2585_v62  ;;  %v2326_v56 = vunpack.c.l.bf16 %v2266_v61  ;;  %v2327_v41 = vunpack.c.h.bf16 %v2266_v61  ;;  %v2193_v62 = vpop.f32.mrf.mxu0 }
 0x328   :  { %v4087_v36 = vpop.eup %4086  ;;  %v2866_v15 = vmul.f32 0.5, %v2802_v0  ;;  %v2867_v21 = vmul.f32 0.5, %v2803_v4  ;;  %v2456_v11 = vunpack.c.l.bf16 %v2411_v5  ;;  %v2457_v12 = vunpack.c.h.bf16 %v2411_v5  ;;  %v2207_v5 = vpop.f32.mrf.mxu1 }
 0x329   :  { %v2708_v1 = vadd.f32 1.0, %v2644_v40  ;;  %v2709_v13 = vadd.f32 1.0, %v2645_v51  ;;  %v2570_v29 = vpack.c.bf16 %v4087_v36, %v4085_v8  ;;  %v2390_v16 = vmul.f32 0.5, %v2326_v56  ;;  %v2221_v51 = vpop.f32.mrf.mxu2  ;;  %v2235_v56 = vpop.f32.mrf.mxu3 }
 0x32a   :  { %v2904_v2 = vpack.c.bf16 %v2867_v21, %v2866_v15  ;;  %4088 = vtanh.f32 %v2456_v11  ;;  %v2391_v19 = vmul.f32 0.5, %v2327_v41  ;;  %v2328_v23 = vunpack.c.l.bf16 %v2267_v7 }
 0x32b   :  { %v2745_v26 = vpack.c.bf16 %v2709_v13, %v2708_v1  ;;  %v2614_v27 = vunpack.c.l.bf16 %v2570_v29  ;;  %v2615_v28 = vunpack.c.h.bf16 %v2570_v29  ;;  %4090 = vtanh.f32 %v2457_v12 }
 0x32c   :  { %2936 = vst [vmem:[%s4849_s8 + $0xd0] sm:$0xff] %v2904_v2  ;;  %v2426_v32 = vpack.c.bf16 %v2391_v19, %v2390_v16  ;;  %v2329_v9 = vunpack.c.h.bf16 %v2267_v7  ;;  %v2392_v14 = vmul.f32 0.5, %v2328_v23  ;;  %v2192_v34 = vadd.f32 %v2191_v17, %v1590_v63 }
 0x32d   :  { %v2804_v18 = vunpack.c.l.bf16 %v2745_v26  ;;  %v2805_v10 = vunpack.c.h.bf16 %v2745_v26  ;;  %v2678_v37 = vadd.f32 1.0, %v2614_v27  ;;  %v2679_v39 = vadd.f32 1.0, %v2615_v28 }
 0x32e   :  { %v2486_v42 = vunpack.c.l.bf16 %v2426_v32  ;;  %v2487_v6 = vunpack.c.h.bf16 %v2426_v32  ;;  %v2393_v43 = vmul.f32 0.5, %v2329_v9  ;;  %v1591_v44 = vperm.slane %v4766_v20, 5 }
 0x32f   :  { %v2868_v3 = vmul.f32 0.5, %v2804_v18  ;;  %v2869_v33 = vmul.f32 0.5, %v2805_v10  ;;  %v2730_v45 = vpack.c.bf16 %v2679_v39, %v2678_v37  ;;  %v1592_v46 = vperm.slane %v4766_v20, 6 }
 0x330   :  { %v4089_v47 = vpop.eup %4088  ;;  %4092 = vtanh.f32 %v2486_v42  ;;  %v2427_v48 = vpack.c.bf16 %v2393_v43, %v2392_v14  ;;  %v2206_v50 = vadd.f32 %v2205_v25, %v1591_v44  ;;  %v1593_v52 = vperm.slane %v4766_v20, 7 }
 0x331   :  { %v4091_v53 = vpop.eup %4090  ;;  %v2905_v54 = vpack.c.bf16 %v2869_v33, %v2868_v3  ;;  %v2774_v22 = vunpack.c.l.bf16 %v2730_v45  ;;  %v2775_v49 = vunpack.c.h.bf16 %v2730_v45  ;;  %4094 = vtanh.f32 %v2487_v6 }
 0x332   :  { %v2571_v55 = vpack.c.bf16 %v4091_v53, %v4089_v47  ;;  %v2488_v35 = vunpack.c.l.bf16 %v2427_v48  ;;  %v2489_v57 = vunpack.c.h.bf16 %v2427_v48  ;;  %v2252_v58 = vpack.c.bf16 %v2206_v50, %v2192_v34 }
 0x333   :  { %2937 = vst [vmem:[%s4849_s8 + $0xd8] sm:$0xff] %v2905_v54  ;;  %v2838_v24 = vmul.f32 0.5, %v2774_v22  ;;  %v2839_v38 = vmul.f32 0.5, %v2775_v49  ;;  %v2220_v59 = vadd.f32 %v2219_v30, %v1592_v46  ;;  %v2234_v60 = vadd.f32 %v2233_v31, %v1593_v52 }
 0x334   :  { %v2616_v61 = vunpack.c.l.bf16 %v2571_v55  ;;  %v2617_v0 = vunpack.c.h.bf16 %v2571_v55  ;;  %4096 = vtanh.f32 %v2488_v35  ;;  %v2298_v4 = vunpack.c.l.bf16 %v2252_v58 }
 0x335   :  { %v2890_v7 = vpack.c.bf16 %v2839_v38, %v2838_v24  ;;  %4098 = vtanh.f32 %v2489_v57  ;;  %v2299_v8 = vunpack.c.h.bf16 %v2252_v58  ;;  %v2253_v40 = vpack.c.bf16 %v2234_v60, %v2220_v59 }
 0x336   :  { %v4093_v41 = vpop.eup %4092  ;;  %v2680_v36 = vadd.f32 1.0, %v2616_v61  ;;  %v2681_v15 = vadd.f32 1.0, %v2617_v0  ;;  %v2362_v21 = vmul.f32 0.5, %v2298_v4  ;;  %v2194_v11 = vadd.f32 %v2193_v62, %v1590_v63 }
 0x337   :  { %v4095_v12 = vpop.eup %4094  ;;  %2922 = vst [vmem:[%s4849_s8 + $0x60] sm:$0xff] %v2890_v7  ;;  %v2363_v1 = vmul.f32 0.5, %v2299_v8  ;;  %v2300_v13 = vunpack.c.l.bf16 %v2253_v40  ;;  %v2301_v29 = vunpack.c.h.bf16 %v2253_v40  ;;  %v2208_v16 = vadd.f32 %v2207_v5, %v1591_v44 }
 0x338   :  { %v2731_v17 = vpack.c.bf16 %v2681_v15, %v2680_v36  ;;  %v2586_v2 = vpack.c.bf16 %v4095_v12, %v4093_v41  ;;  %v2222_v19 = vadd.f32 %v2221_v51, %v1592_v46  ;;  %v2236_v23 = vadd.f32 %v2235_v56, %v1593_v52 }
 0x339   :  { %v2412_v25 = vpack.c.bf16 %v2363_v1, %v2362_v21  ;;  %v2364_v26 = vmul.f32 0.5, %v2300_v13  ;;  %v2365_v27 = vmul.f32 0.5, %v2301_v29  ;;  %v2268_v28 = vpack.c.bf16 %v2208_v16, %v2194_v11 }
 0x33a   :  { %v4097_v30 = vpop.eup %4096  ;;  %v2776_v20 = vunpack.c.l.bf16 %v2731_v17  ;;  %v2777_v63 = vunpack.c.h.bf16 %v2731_v17  ;;  %v2646_v31 = vunpack.c.l.bf16 %v2586_v2  ;;  %v2647_v32 = vunpack.c.h.bf16 %v2586_v2 }
 0x33b   :  { %v4099_v9 = vpop.eup %4098  ;;  %v2458_v14 = vunpack.c.l.bf16 %v2412_v25  ;;  %v2459_v34 = vunpack.c.h.bf16 %v2412_v25  ;;  %v2413_v18 = vpack.c.bf16 %v2365_v27, %v2364_v26  ;;  %v2330_v10 = vunpack.c.l.bf16 %v2268_v28 }
 0x33c   :  { %v2840_v37 = vmul.f32 0.5, %v2776_v20  ;;  %v2841_v39 = vmul.f32 0.5, %v2777_v63  ;;  %v2710_v42 = vadd.f32 1.0, %v2646_v31  ;;  %v2711_v6 = vadd.f32 1.0, %v2647_v32 }
 0x33d   :  { %v2587_v43 = vpack.c.bf16 %v4099_v9, %v4097_v30  ;;  %4100 = vtanh.f32 %v2458_v14  ;;  %v2460_v44 = vunpack.c.l.bf16 %v2413_v18  ;;  %v2461_v3 = vunpack.c.h.bf16 %v2413_v18 }
 0x33e   :  { %v2891_v33 = vpack.c.bf16 %v2841_v39, %v2840_v37  ;;  %v2746_v45 = vpack.c.bf16 %v2711_v6, %v2710_v42  ;;  %4102 = vtanh.f32 %v2459_v34  ;;  %v2331_v46 = vunpack.c.h.bf16 %v2268_v28 }
 0x33f   :  { %v2648_v47 = vunpack.c.l.bf16 %v2587_v43  ;;  %v2649_v48 = vunpack.c.h.bf16 %v2587_v43  ;;  %4104 = vtanh.f32 %v2460_v44  ;;  %v2394_v50 = vmul.f32 0.5, %v2330_v10 }
 0x340   :  { %2923 = vst [vmem:[%s4849_s8 + $0x68] sm:$0xff] %v2891_v33  ;;  %v2806_v52 = vunpack.c.l.bf16 %v2746_v45  ;;  %v2807_v53 = vunpack.c.h.bf16 %v2746_v45  ;;  %4106 = vtanh.f32 %v2461_v3  ;;  %v2395_v54 = vmul.f32 0.5, %v2331_v46 }
 0x341   :  { %v2712_v22 = vadd.f32 1.0, %v2648_v47  ;;  %v2713_v49 = vadd.f32 1.0, %v2649_v48  ;;  %v2269_v55 = vpack.c.bf16 %v2236_v23, %v2222_v19 }
 0x342   :  { %v2870_v35 = vmul.f32 0.5, %v2806_v52  ;;  %v2871_v57 = vmul.f32 0.5, %v2807_v53  ;;  %v2428_v58 = vpack.c.bf16 %v2395_v54, %v2394_v50 }
 0x343   :  { %v4101_v24 = vpop.eup %4100  ;;  %v2747_v38 = vpack.c.bf16 %v2713_v49, %v2712_v22  ;;  %v2332_v59 = vunpack.c.l.bf16 %v2269_v55  ;;  %v2333_v60 = vunpack.c.h.bf16 %v2269_v55 }
 0x344   :  { %v4103_v62 = vpop.eup %4102  ;;  %v2906_v61 = vpack.c.bf16 %v2871_v57, %v2870_v35  ;;  %v2490_v0 = vunpack.c.l.bf16 %v2428_v58  ;;  %v2491_v4 = vunpack.c.h.bf16 %v2428_v58 }
 0x345   :  { %v4105_v5 = vpop.eup %4104  ;;  %v2808_v7 = vunpack.c.l.bf16 %v2747_v38  ;;  %v2809_v8 = vunpack.c.h.bf16 %v2747_v38  ;;  %v2572_v40 = vpack.c.bf16 %v4103_v62, %v4101_v24  ;;  %v2396_v51 = vmul.f32 0.5, %v2332_v59 }
 0x346   :  { %v4107_v56 = vpop.eup %4106  ;;  %2938 = vst [vmem:[%s4849_s8 + $0xe0] sm:$0xff] %v2906_v61  ;;  %4108 = vtanh.f32 %v2490_v0  ;;  %v2397_v41 = vmul.f32 0.5, %v2333_v60 }
 0x347   :  { %v2872_v36 = vmul.f32 0.5, %v2808_v7  ;;  %v2873_v15 = vmul.f32 0.5, %v2809_v8  ;;  %v2618_v21 = vunpack.c.l.bf16 %v2572_v40  ;;  %v2619_v11 = vunpack.c.h.bf16 %v2572_v40 }
 0x348   :  { %v2573_v12 = vpack.c.bf16 %v4107_v56, %v4105_v5  ;;  %4110 = vtanh.f32 %v2491_v4  ;;  %v2429_v1 = vpack.c.bf16 %v2397_v41, %v2396_v51 }
 0x349   :  { %v2907_v13 = vpack.c.bf16 %v2873_v15, %v2872_v36  ;;  %v2682_v29 = vadd.f32 1.0, %v2618_v21  ;;  %v2683_v16 = vadd.f32 1.0, %v2619_v11 }
 0x34a   :  { %v2620_v17 = vunpack.c.l.bf16 %v2573_v12  ;;  %v2621_v2 = vunpack.c.h.bf16 %v2573_v12  ;;  %v2492_v19 = vunpack.c.l.bf16 %v2429_v1  ;;  %v2493_v23 = vunpack.c.h.bf16 %v2429_v1 }
 0x34b   :  { %2939 = vst [vmem:[%s4849_s8 + $0xe8] sm:$0xff] %v2907_v13  ;;  %v2732_v25 = vpack.c.bf16 %v2683_v16, %v2682_v29 }
 0x34c   :  { %v4109_v26 = vpop.eup %4108  ;;  %v2684_v27 = vadd.f32 1.0, %v2620_v17  ;;  %v2685_v28 = vadd.f32 1.0, %v2621_v2  ;;  %4112 = vtanh.f32 %v2492_v19 }
 0x34d   :  { %v2778_v30 = vunpack.c.l.bf16 %v2732_v25  ;;  %v2779_v20 = vunpack.c.h.bf16 %v2732_v25  ;;  %4114 = vtanh.f32 %v2493_v23 }
 0x34e   :  { %v4111_v63 = vpop.eup %4110  ;;  %v2733_v31 = vpack.c.bf16 %v2685_v28, %v2684_v27 }
 0x34f   :  { %v2842_v32 = vmul.f32 0.5, %v2778_v30  ;;  %v2843_v9 = vmul.f32 0.5, %v2779_v20  ;;  %v2588_v14 = vpack.c.bf16 %v4111_v63, %v4109_v26 }
 0x350   :  { %v2780_v34 = vunpack.c.l.bf16 %v2733_v31  ;;  %v2781_v18 = vunpack.c.h.bf16 %v2733_v31 }
 0x351   :  { %v2892_v10 = vpack.c.bf16 %v2843_v9, %v2842_v32  ;;  %v2650_v37 = vunpack.c.l.bf16 %v2588_v14  ;;  %v2651_v39 = vunpack.c.h.bf16 %v2588_v14 }
 0x352   :  { %v4113_v42 = vpop.eup %4112  ;;  %v2844_v6 = vmul.f32 0.5, %v2780_v34  ;;  %v2845_v43 = vmul.f32 0.5, %v2781_v18 }
 0x353   :  { %v4115_v44 = vpop.eup %4114  ;;  %2924 = vst [vmem:[%s4849_s8 + $0x70] sm:$0xff] %v2892_v10  ;;  %v2714_v3 = vadd.f32 1.0, %v2650_v37  ;;  %v2715_v33 = vadd.f32 1.0, %v2651_v39 }
 0x354   :  { %v2893_v45 = vpack.c.bf16 %v2845_v43, %v2844_v6  ;;  %v2589_v46 = vpack.c.bf16 %v4115_v44, %v4113_v42 }
 0x355   :  { %v2748_v47 = vpack.c.bf16 %v2715_v33, %v2714_v3 }
 0x356   :  { %2925 = vst [vmem:[%s4849_s8 + $0x78] sm:$0xff] %v2893_v45  ;;  %v2652_v48 = vunpack.c.l.bf16 %v2589_v46  ;;  %v2653_v50 = vunpack.c.h.bf16 %v2589_v46 }
 0x357   :  { %v2810_v52 = vunpack.c.l.bf16 %v2748_v47  ;;  %v2811_v53 = vunpack.c.h.bf16 %v2748_v47 }
 0x358   :  { %v2716_v54 = vadd.f32 1.0, %v2652_v48  ;;  %v2717_v22 = vadd.f32 1.0, %v2653_v50 }
 0x359   :  { %v2874_v49 = vmul.f32 0.5, %v2810_v52  ;;  %v2875_v55 = vmul.f32 0.5, %v2811_v53 }
 0x35a   :  { %v2749_v35 = vpack.c.bf16 %v2717_v22, %v2716_v54 }
 0x35b   :  { %v2908_v57 = vpack.c.bf16 %v2875_v55, %v2874_v49 }
 0x35c   :  { %v2812_v58 = vunpack.c.l.bf16 %v2749_v35  ;;  %v2813_v24 = vunpack.c.h.bf16 %v2749_v35 }
 0x35d   :  { %2940 = vst [vmem:[%s4849_s8 + $0xf0] sm:$0xff] %v2908_v57 }
 0x35e   :  { %v2876_v38 = vmul.f32 0.5, %v2812_v58  ;;  %v2877_v59 = vmul.f32 0.5, %v2813_v24 }
 0x360   :  { %v2909_v60 = vpack.c.bf16 %v2877_v59, %v2876_v38 }
 0x362   :  { %2941 = vst [vmem:[%s4849_s8 + $0xf8] sm:$0xff] %v2909_v60 }
 0x363   :  { %2946 = vsyncpa [#allocation3], 1 }
 0x364   :  { %2947 = vsyncpa [#allocation5], 1 }

// kernel: _g_forward_jit.1
= control target key start
LH: loop header
LB: loop body
LE: loop exit
PB: predicated region body
PF: predicated region fallthrough
CT: control target
= control target key end

     0   :  { %13 = vsyncpa [#allocation3], 0  ;;  %s4841_s0 = inlined_call_operand.vmem [shape: f32[16,32], index: 0, kind: input, shape index: {}]   ;;  %s4842_s1 = inlined_call_operand.hbm [shape: bf16[32,512], index: 1, kind: input, shape index: {}]   ;;  %s4843_s2 = inlined_call_operand.vmem [shape: f32[1,512], index: 2, kind: input, shape index: {}]   ;;  %s4844_s3 = inlined_call_operand.hbm [shape: bf16[512,512], index: 3, kind: input, shape index: {}]   ;;  %s4845_s4 = inlined_call_operand.vmem [shape: f32[1,512], index: 4, kind: input, shape index: {}]   ;;  %s4846_s5 = inlined_call_operand.vmem [shape: bf16[512,16], index: 5, kind: input, shape index: {}]   ;;  %s4847_s6 = inlined_call_operand.vmem [shape: bf16[16,4096], index: 6, kind: input, shape index: {}]   ;;  %s4848_s7 = inlined_call_operand.vmem [shape: f32[1,4096], index: 7, kind: input, shape index: {}]   ;;  %s4849_s8 = inlined_call_operand.vmem [shape: bf16[16,4096], index: 8, kind: output, shape index: {}]  }
   0x1   :  { %s21_s29 = sshll.u32 %s4842_s1, 4  ;;  %s22_s29 = int_to_ptr.hbm [resolvable:$true] %s21_s29 }
   0x2   :  { %14 = vsyncpa [#allocation5], 0  ;;  %s4168_s30 = smov [#allocation2]   ;;  %s36_s12 = sshll.u32 %s4844_s3, 4  ;;  %s37_s12 = int_to_ptr.hbm [resolvable:$true] %s36_s12 }
   0x3   :  { %s23_s9 = sshll.u32 %s4168_s30, 4  ;;  %s4169_s13 = smov 256   ;;  %s24_s9 = int_to_ptr.vmem [resolvable:$true] %s23_s9 }
   0x4   :  { %s4170_s14 = smov 16   ;;  %s4171_s15 = smov [#allocation4]  }
   0x5   :  { %29 = dma.hbm_to_vmem [thread:$0]  %s22_s29, 1024, %s24_s9, [#allocation3], %s4169_s13, %s4169_s13, %s4170_s14  }
   0x6   :  { %s38_s16 = sshll.u32 %s4171_s15, 4  ;;  %s39_s16 = int_to_ptr.vmem [resolvable:$true] %s38_s16 }
   0x7   :  { %44 = dma.hbm_to_vmem [thread:$0]  %s37_s12, 16384, %s39_s16, [#allocation5], %s4169_s13, %s4169_s13, %s4170_s14  }
   0x8   :  { %4164 = dma.done.wait [#allocation3], 1024  }
   0x9   :  { %4165 = vsyncadd [#allocation3], 4294966272 }
   0xa   :  { %4166 = dma.done.wait [#allocation5], 16384  }
   0xb   :  { %4167 = vsyncadd [#allocation5], 4294950912  ;;  %v2966_v0 = vld [vmem:[#allocation2 + $0x20] sm:$0xf]  ;;  %v3790_v1 = vld [vmem:[#allocation2 + $0x2c] sm:$0xf0] }
   0xc   :  { %v3788_v2 = vld [vmem:[#allocation2 + $0x24] sm:$0xf]  ;;  %v2967_v3 = vor.u32 %v3790_v1, %v2966_v0  ;;  %v2968_v4 = vld [vmem:[#allocation2 + $0x30] sm:$0xf0]  ;;  %v2974_v5 = vld [vmem:[#allocation2 + $0x28] sm:$0xf] }
   0xd   :  { %v3791_v6 = vld [vmem:[#allocation2 + $0x34] sm:$0xf0]  ;;  %v2971_v7 = vor.u32 %v3788_v2, %v2968_v4  ;;  %v3789_v9 = vld [vmem:[#allocation2 + $0x2c] sm:$0xf]  ;;  %v2976_v10 = vld [vmem:[#allocation2 + $0x38] sm:$0xf0] }
   0xe   :  { %v2975_v8 = vor.u32 %v3791_v6, %v2974_v5  ;;  %v2950_v11 = vld [vmem:[#allocation2] sm:$0xf]  ;;  %133 = vmatpush.bf16.msra.mxu0 %v2967_v3  ;;  %v2979_v12 = vor.u32 %v3789_v9, %v2976_v10  ;;  %v3786_v13 = vld [vmem:[#allocation2 + $0xc] sm:$0xf0]  ;;  %v3784_v14 = vld [vmem:[#allocation2 + $0x4] sm:$0xf] }
   0xf   :  { %v2952_v15 = vld [vmem:[#allocation2 + $0x10] sm:$0xf0]  ;;  %147 = vmatpush.bf16.msra.mxu1 %v2971_v7  ;;  %v2951_v16 = vor.u32 %v3786_v13, %v2950_v11  ;;  %v2958_v18 = vld [vmem:[#allocation2 + $0x8] sm:$0xf]  ;;  %v3787_v19 = vld [vmem:[#allocation2 + $0x14] sm:$0xf0] }
  0x10   :  { %161 = vmatpush.bf16.msra.mxu2 %v2975_v8  ;;  %v2955_v17 = vor.u32 %v3784_v14, %v2952_v15  ;;  %v3785_v20 = vld [vmem:[#allocation2 + $0xc] sm:$0xf]  ;;  %175 = vmatpush.bf16.msra.mxu3 %v2979_v12  ;;  %v2959_v21 = vor.u32 %v3787_v19, %v2958_v18  ;;  %v2960_v22 = vld [vmem:[#allocation2 + $0x18] sm:$0xf0]  ;;  %v62_v23 = vld [vmem:[%s4841_s0] sm:$0xff]  ;;  %vm123_vm0 = vcmask 261120  }
  0x11   :  { %v63_v24 = vld [vmem:[%s4841_s0 + $0x8] sm:$0xff]  ;;  %v2963_v25 = vor.u32 %v3785_v20, %v2960_v22  ;;  %v3098_v27 = vld [vmem:[#allocation4 + $0xe0] sm:$0xf]  ;;  %v3822_v28 = vld [vmem:[#allocation4 + $0xec] sm:$0xf0]  ;;  %vm1786_vm1 = vcmask 130048  }
  0x12   :  { %v64_v26 = vpack.c.bf16 %v63_v24, %v62_v23  ;;  %v3226_v29 = vld [vmem:[#allocation4 + $0x1e0] sm:$0xf]  ;;  %134 = vmatpush.bf16.msra.mxu0 %v2951_v16  ;;  %v3099_v30 = vor.u32 %v3822_v28, %v3098_v27  ;;  %v3854_v31 = vld [vmem:[#allocation4 + $0x1ec] sm:$0xf0] }
  0x13   :  { %v3082_v32 = vld [vmem:[#allocation4 + $0xc0] sm:$0xf]  ;;  %v3818_v33 = vld [vmem:[#allocation4 + $0xcc] sm:$0xf0]  ;;  %148 = vmatpush.bf16.msra.mxu1 %v2955_v17  ;;  %v3227_v34 = vor.u32 %v3854_v31, %v3226_v29 }
  0x14   :  { %162 = vmatpush.bf16.msra.mxu2 %v2959_v21  ;;  %v3210_v35 = vld [vmem:[#allocation4 + $0x1c0] sm:$0xf]  ;;  %v3850_v36 = vld [vmem:[#allocation4 + $0x1cc] sm:$0xf0]  ;;  %176 = vmatpush.bf16.msra.mxu3 %v2963_v25  ;;  %v3083_v38 = vor.u32 %v3818_v33, %v3082_v32 }
  0x15   :  { %v3354_v37 = vld [vmem:[#allocation4 + $0x2e0] sm:$0xf]  ;;  %v3886_v39 = vld [vmem:[#allocation4 + $0x2ec] sm:$0xf0]  ;;  %2980 = vmatmul.msk.bf16.vlgmr.msra.gmra.mxu0 %vm123_vm0, %v64_v26  ;;  %v3211_v42 = vor.u32 %v3850_v36, %v3210_v35 }
  0x16   :  { %973 = vmatpush.bf16.msrb.mxu0 %v3099_v30  ;;  %v3482_v40 = vld [vmem:[#allocation4 + $0x3e0] sm:$0xf]  ;;  %v3918_v41 = vld [vmem:[#allocation4 + $0x3ec] sm:$0xf0]  ;;  %v3355_v43 = vor.u32 %v3886_v39, %v3354_v37  ;;  %2981 = vmatmul.msk.bf16.vlgmr.msra.gmra.mxu1 %vm123_vm0, %v64_v26 }
  0x17   :  { %987 = vmatpush.bf16.msrb.mxu1 %v3227_v34  ;;  %v3483_v44 = vor.u32 %v3918_v41, %v3482_v40  ;;  %v3066_v45 = vld [vmem:[#allocation4 + $0xa0] sm:$0xf]  ;;  %v3814_v46 = vld [vmem:[#allocation4 + $0xac] sm:$0xf0]  ;;  %2982 = vmatmul.msk.bf16.vlgmr.msra.gmra.mxu2 %vm123_vm0, %v64_v26 }
  0x18   :  { %v3194_v47 = vld [vmem:[#allocation4 + $0x1a0] sm:$0xf]  ;;  %v3846_v48 = vld [vmem:[#allocation4 + $0x1ac] sm:$0xf0]  ;;  %2983 = vmatmul.msk.bf16.vlgmr.msra.gmra.mxu3 %vm123_vm0, %v64_v26  ;;  %1001 = vmatpush.bf16.msrb.mxu2 %v3355_v43  ;;  %v3067_v54 = vor.u32 %v3814_v46, %v3066_v45 }
  0x19   :  { %v3338_v49 = vld [vmem:[#allocation4 + $0x2c0] sm:$0xf]  ;;  %v3882_v50 = vld [vmem:[#allocation4 + $0x2cc] sm:$0xf0]  ;;  %1015 = vmatpush.bf16.msrb.mxu3 %v3483_v44  ;;  %v3195_v58 = vor.u32 %v3846_v48, %v3194_v47 }
  0x1a   :  { %v3339_v51 = vor.u32 %v3882_v50, %v3338_v49  ;;  %v3466_v52 = vld [vmem:[#allocation4 + $0x3c0] sm:$0xf]  ;;  %v3914_v53 = vld [vmem:[#allocation4 + $0x3cc] sm:$0xf0]  ;;  %974 = vmatpush.bf16.msrb.mxu0 %v3083_v38  ;;  %v3820_v49 = vld [vmem:[#allocation4 + $0xe4] sm:$0xf] }
  0x1b   :  { %v3467_v55 = vor.u32 %v3914_v53, %v3466_v52  ;;  %v3050_v56 = vld [vmem:[#allocation4 + $0x80] sm:$0xf]  ;;  %v3810_v57 = vld [vmem:[#allocation4 + $0x8c] sm:$0xf0]  ;;  %988 = vmatpush.bf16.msrb.mxu1 %v3211_v42  ;;  %v3100_v50 = vld [vmem:[#allocation4 + $0xf0] sm:$0xf0] }
  0x1c   :  { %v3322_v59 = vld [vmem:[#allocation4 + $0x2a0] sm:$0xf]  ;;  %v3878_v60 = vld [vmem:[#allocation4 + $0x2ac] sm:$0xf0]  ;;  %1002 = vmatpush.bf16.msrb.mxu2 %v3339_v51  ;;  %v3051_v2 = vor.u32 %v3810_v57, %v3050_v56  ;;  %v3852_v51 = vld [vmem:[#allocation4 + $0x1e4] sm:$0xf] }
  0x1d   :  { %v3450_v61 = vld [vmem:[#allocation4 + $0x3a0] sm:$0xf]  ;;  %v3842_v63 = vld [vmem:[#allocation4 + $0x18c] sm:$0xf0]  ;;  %v3323_v1 = vor.u32 %v3878_v60, %v3322_v59  ;;  %1016 = vmatpush.bf16.msrb.mxu3 %v3467_v55  ;;  %v3228_v52 = vld [vmem:[#allocation4 + $0x1f0] sm:$0xf0] }
  0x1e   :  { %v3178_v62 = vld [vmem:[#allocation4 + $0x180] sm:$0xf]  ;;  %v3910_v0 = vld [vmem:[#allocation4 + $0x3ac] sm:$0xf0]  ;;  %975 = vmatpush.bf16.msrb.mxu0 %v3067_v54  ;;  %v3816_v56 = vld [vmem:[#allocation4 + $0xc4] sm:$0xf] }
  0x1f   :  { %v3451_v3 = vor.u32 %v3910_v0, %v3450_v61  ;;  %v3034_v4 = vld [vmem:[#allocation4 + $0x60] sm:$0xf]  ;;  %v3874_v6 = vld [vmem:[#allocation4 + $0x28c] sm:$0xf0]  ;;  %989 = vmatpush.bf16.msrb.mxu1 %v3195_v58  ;;  %v3179_v7 = vor.u32 %v3842_v63, %v3178_v62  ;;  %v3103_v61 = vor.u32 %v3820_v49, %v3100_v50  ;;  %v3884_v63 = vld [vmem:[#allocation4 + $0x2e4] sm:$0xf] }
  0x20   :  { %v3306_v5 = vld [vmem:[#allocation4 + $0x280] sm:$0xf]  ;;  %v3806_v8 = vld [vmem:[#allocation4 + $0x6c] sm:$0xf0]  ;;  %1003 = vmatpush.bf16.msrb.mxu2 %v3323_v1  ;;  %v3356_v0 = vld [vmem:[#allocation4 + $0x2f0] sm:$0xf0]  ;;  %v3231_v1 = vor.u32 %v3852_v51, %v3228_v52 }
  0x21   :  { %v3434_v9 = vld [vmem:[#allocation4 + $0x380] sm:$0xf]  ;;  %v3906_v10 = vld [vmem:[#allocation4 + $0x38c] sm:$0xf0]  ;;  %v3307_v13 = vor.u32 %v3874_v6, %v3306_v5  ;;  %1017 = vmatpush.bf16.msrb.mxu3 %v3451_v3  ;;  %v3035_v14 = vor.u32 %v3806_v8, %v3034_v4  ;;  %v3916_v3 = vld [vmem:[#allocation4 + $0x3e4] sm:$0xf] }
  0x22   :  { %v3162_v11 = vld [vmem:[#allocation4 + $0x160] sm:$0xf]  ;;  %v3838_v12 = vld [vmem:[#allocation4 + $0x16c] sm:$0xf0]  ;;  %976 = vmatpush.bf16.msrb.mxu0 %v3051_v2  ;;  %v3435_v15 = vor.u32 %v3906_v10, %v3434_v9  ;;  %v3084_v2 = vld [vmem:[#allocation4 + $0xd0] sm:$0xf0]  ;;  %v3359_v9 = vor.u32 %v3884_v63, %v3356_v0 }
  0x23   :  { %v3018_v16 = vld [vmem:[#allocation4 + $0x40] sm:$0xf]  ;;  %v3870_v18 = vld [vmem:[#allocation4 + $0x26c] sm:$0xf0]  ;;  %990 = vmatpush.bf16.msrb.mxu1 %v3179_v7  ;;  %v3163_v19 = vor.u32 %v3838_v12, %v3162_v11  ;;  %v3484_v4 = vld [vmem:[#allocation4 + $0x3f0] sm:$0xf0]  ;;  %v3087_v10 = vor.u32 %v3816_v56, %v3084_v2 }
  0x24   :  { %v3290_v17 = vld [vmem:[#allocation4 + $0x260] sm:$0xf]  ;;  %v3802_v20 = vld [vmem:[#allocation4 + $0x4c] sm:$0xf0]  ;;  %1004 = vmatpush.bf16.msrb.mxu2 %v3307_v13  ;;  %v3848_v5 = vld [vmem:[#allocation4 + $0x1c4] sm:$0xf]  ;;  %v3487_v11 = vor.u32 %v3916_v3, %v3484_v4 }
  0x25   :  { %v3418_v21 = vld [vmem:[#allocation4 + $0x360] sm:$0xf]  ;;  %v3902_v22 = vld [vmem:[#allocation4 + $0x36c] sm:$0xf0]  ;;  %v3291_v25 = vor.u32 %v3870_v18, %v3290_v17  ;;  %1018 = vmatpush.bf16.msrb.mxu3 %v3435_v15  ;;  %v3019_v26 = vor.u32 %v3802_v20, %v3018_v16  ;;  %v3212_v6 = vld [vmem:[#allocation4 + $0x1d0] sm:$0xf0] }
  0x26   :  { %v3146_v23 = vld [vmem:[#allocation4 + $0x140] sm:$0xf]  ;;  %v3834_v24 = vld [vmem:[#allocation4 + $0x14c] sm:$0xf0]  ;;  %977 = vmatpush.bf16.msrb.mxu0 %v3035_v14  ;;  %v3419_v27 = vor.u32 %v3902_v22, %v3418_v21  ;;  %v3812_v12 = vld [vmem:[#allocation4 + $0xa4] sm:$0xf]  ;;  %v3215_v15 = vor.u32 %v3848_v5, %v3212_v6 }
  0x27   :  { %v3002_v28 = vld [vmem:[#allocation4 + $0x20] sm:$0xf]  ;;  %v3866_v30 = vld [vmem:[#allocation4 + $0x24c] sm:$0xf0]  ;;  %991 = vmatpush.bf16.msrb.mxu1 %v3163_v19  ;;  %v3147_v31 = vor.u32 %v3834_v24, %v3146_v23  ;;  %v3880_v13 = vld [vmem:[#allocation4 + $0x2c4] sm:$0xf] }
  0x28   :  { %v3274_v29 = vld [vmem:[#allocation4 + $0x240] sm:$0xf]  ;;  %v3798_v32 = vld [vmem:[#allocation4 + $0x2c] sm:$0xf0]  ;;  %1005 = vmatpush.bf16.msrb.mxu2 %v3291_v25  ;;  %v3340_v14 = vld [vmem:[#allocation4 + $0x2d0] sm:$0xf0] }
  0x29   :  { %v3402_v33 = vld [vmem:[#allocation4 + $0x340] sm:$0xf]  ;;  %v3898_v34 = vld [vmem:[#allocation4 + $0x34c] sm:$0xf0]  ;;  %v3275_v37 = vor.u32 %v3866_v30, %v3274_v29  ;;  %1019 = vmatpush.bf16.msrb.mxu3 %v3419_v27  ;;  %v3003_v39 = vor.u32 %v3798_v32, %v3002_v28  ;;  %v3068_v16 = vld [vmem:[#allocation4 + $0xb0] sm:$0xf0]  ;;  %v3343_v21 = vor.u32 %v3880_v13, %v3340_v14 }
  0x2a   :  { %v3130_v35 = vld [vmem:[#allocation4 + $0x120] sm:$0xf]  ;;  %v3830_v36 = vld [vmem:[#allocation4 + $0x12c] sm:$0xf0]  ;;  %978 = vmatpush.bf16.msrb.mxu0 %v3019_v26  ;;  %v3403_v40 = vor.u32 %v3898_v34, %v3402_v33  ;;  %v3912_v17 = vld [vmem:[#allocation4 + $0x3c4] sm:$0xf]  ;;  %v3071_v22 = vor.u32 %v3812_v12, %v3068_v16 }
  0x2b   :  { %v2986_v38 = vld [vmem:[#allocation4] sm:$0xf]  ;;  %v3794_v41 = vld [vmem:[#allocation4 + $0xc] sm:$0xf0]  ;;  %992 = vmatpush.bf16.msrb.mxu1 %v3147_v31  ;;  %v3131_v44 = vor.u32 %v3830_v36, %v3130_v35  ;;  %v3468_v18 = vld [vmem:[#allocation4 + $0x3d0] sm:$0xf0] }
  0x2c   :  { %v3258_v42 = vld [vmem:[#allocation4 + $0x220] sm:$0xf]  ;;  %v3862_v43 = vld [vmem:[#allocation4 + $0x22c] sm:$0xf0]  ;;  %1006 = vmatpush.bf16.msrb.mxu2 %v3275_v37  ;;  %v2987_v54 = vor.u32 %v3794_v41, %v2986_v38  ;;  %v3844_v19 = vld [vmem:[#allocation4 + $0x1a4] sm:$0xf]  ;;  %v3471_v23 = vor.u32 %v3912_v17, %v3468_v18 }
  0x2d   :  { %v3114_v45 = vld [vmem:[#allocation4 + $0x100] sm:$0xf]  ;;  %v3894_v47 = vld [vmem:[#allocation4 + $0x32c] sm:$0xf0]  ;;  %v3259_v53 = vor.u32 %v3862_v43, %v3258_v42  ;;  %1020 = vmatpush.bf16.msrb.mxu3 %v3403_v40  ;;  %v3196_v20 = vld [vmem:[#allocation4 + $0x1b0] sm:$0xf0] }
  0x2e   :  { %v3386_v46 = vld [vmem:[#allocation4 + $0x320] sm:$0xf]  ;;  %v3826_v48 = vld [vmem:[#allocation4 + $0x10c] sm:$0xf0]  ;;  %979 = vmatpush.bf16.msrb.mxu0 %v3003_v39  ;;  %v3199_v24 = vor.u32 %v3844_v19, %v3196_v20  ;;  %v3808_v25 = vld [vmem:[#allocation4 + $0x84] sm:$0xf] }
  0x2f   :  { %v3387_v55 = vor.u32 %v3894_v47, %v3386_v46  ;;  %v3242_v57 = vld [vmem:[#allocation4 + $0x200] sm:$0xf]  ;;  %v3858_v58 = vld [vmem:[#allocation4 + $0x20c] sm:$0xf0]  ;;  %993 = vmatpush.bf16.msrb.mxu1 %v3131_v44  ;;  %v3115_v60 = vor.u32 %v3826_v48, %v3114_v45  ;;  %v3052_v26 = vld [vmem:[#allocation4 + $0x90] sm:$0xf0] }
  0x30   :  { %v3370_v59 = vld [vmem:[#allocation4 + $0x300] sm:$0xf]  ;;  %v3890_v62 = vld [vmem:[#allocation4 + $0x30c] sm:$0xf0]  ;;  %1007 = vmatpush.bf16.msrb.mxu2 %v3259_v53  ;;  %v3243_v7 = vor.u32 %v3858_v58, %v3242_v57  ;;  %v3840_v27 = vld [vmem:[#allocation4 + $0x184] sm:$0xf]  ;;  %v3055_v29 = vor.u32 %v3808_v25, %v3052_v26 }
  0x31   :  { %1021 = vmatpush.bf16.msrb.mxu3 %v3387_v55  ;;  %v3371_v8 = vor.u32 %v3890_v62, %v3370_v59  ;;  %v3180_v28 = vld [vmem:[#allocation4 + $0x190] sm:$0xf0]  ;;  %v3876_v31 = vld [vmem:[#allocation4 + $0x2a4] sm:$0xf] }
  0x32   :  { %980 = vmatpush.bf16.msrb.mxu0 %v2987_v54  ;;  %v3183_v30 = vor.u32 %v3840_v27, %v3180_v28  ;;  %v3324_v32 = vld [vmem:[#allocation4 + $0x2b0] sm:$0xf0]  ;;  %v3908_v33 = vld [vmem:[#allocation4 + $0x3a4] sm:$0xf]  ;;  %v73_v27 = vld [vmem:[%s4843_s2] sm:$0xf] }
  0x33   :  { %994 = vmatpush.bf16.msrb.mxu1 %v3115_v60  ;;  %v3327_v34 = vor.u32 %v3876_v31, %v3324_v32  ;;  %v3452_v35 = vld [vmem:[#allocation4 + $0x3b0] sm:$0xf0]  ;;  %v3804_v37 = vld [vmem:[#allocation4 + $0x64] sm:$0xf]  ;;  %v76_v31 = vperm.slane %v73_v27, 1 }
  0x34   :  { %1008 = vmatpush.bf16.msrb.mxu2 %v3243_v7  ;;  %v3455_v36 = vor.u32 %v3908_v33, %v3452_v35  ;;  %v3036_v38 = vld [vmem:[#allocation4 + $0x70] sm:$0xf0]  ;;  %v3836_v39 = vld [vmem:[#allocation4 + $0x164] sm:$0xf] }
  0x35   :  { %1022 = vmatpush.bf16.msrb.mxu3 %v3371_v8  ;;  %v3039_v40 = vor.u32 %v3804_v37, %v3036_v38  ;;  %v3164_v41 = vld [vmem:[#allocation4 + $0x170] sm:$0xf0]  ;;  %v3872_v43 = vld [vmem:[#allocation4 + $0x284] sm:$0xf] }
  0x36   :  { %1029 = vmatpush.bf16.msra.mxu0 %v3103_v61  ;;  %v3167_v42 = vor.u32 %v3836_v39, %v3164_v41  ;;  %v3308_v44 = vld [vmem:[#allocation4 + $0x290] sm:$0xf0]  ;;  %v3904_v46 = vld [vmem:[#allocation4 + $0x384] sm:$0xf]  ;;  %v3823_v41 = vld [vmem:[#allocation4 + $0xf4] sm:$0xf0] }
  0x37   :  { %1043 = vmatpush.bf16.msra.mxu1 %v3231_v1  ;;  %v3311_v45 = vor.u32 %v3872_v43, %v3308_v44  ;;  %v3436_v47 = vld [vmem:[#allocation4 + $0x390] sm:$0xf0]  ;;  %v3800_v49 = vld [vmem:[#allocation4 + $0x44] sm:$0xf]  ;;  %v77_v43 = vperm.slane %v73_v27, 2 }
  0x38   :  { %1057 = vmatpush.bf16.msra.mxu2 %v3359_v9  ;;  %v3439_v48 = vor.u32 %v3904_v46, %v3436_v47  ;;  %v3020_v50 = vld [vmem:[#allocation4 + $0x50] sm:$0xf0]  ;;  %v3832_v51 = vld [vmem:[#allocation4 + $0x144] sm:$0xf]  ;;  %v3855_v46 = vld [vmem:[#allocation4 + $0x1f4] sm:$0xf0] }
  0x39   :  { %1071 = vmatpush.bf16.msra.mxu3 %v3487_v11  ;;  %v3023_v52 = vor.u32 %v3800_v49, %v3020_v50  ;;  %v3148_v53 = vld [vmem:[#allocation4 + $0x150] sm:$0xf0]  ;;  %v3868_v55 = vld [vmem:[#allocation4 + $0x264] sm:$0xf]  ;;  %v78_v47 = vperm.slane %v73_v27, 3 }
  0x3a   :  { %1030 = vmatpush.bf16.msra.mxu0 %v3087_v10  ;;  %v3151_v54 = vor.u32 %v3832_v51, %v3148_v53  ;;  %v3292_v56 = vld [vmem:[#allocation4 + $0x270] sm:$0xf0]  ;;  %v3900_v57 = vld [vmem:[#allocation4 + $0x364] sm:$0xf]  ;;  %v3090_v53 = vld [vmem:[#allocation4 + $0xc8] sm:$0xf] }
  0x3b   :  { %1044 = vmatpush.bf16.msra.mxu1 %v3215_v15  ;;  %v3295_v58 = vor.u32 %v3868_v55, %v3292_v56  ;;  %v3420_v59 = vld [vmem:[#allocation4 + $0x370] sm:$0xf0]  ;;  %v3796_v61 = vld [vmem:[#allocation4 + $0x24] sm:$0xf] }
  0x3c   :  { %1058 = vmatpush.bf16.msra.mxu2 %v3343_v21  ;;  %v3423_v60 = vor.u32 %v3900_v57, %v3420_v59  ;;  %v3004_v62 = vld [vmem:[#allocation4 + $0x30] sm:$0xf0]  ;;  %v3828_v0 = vld [vmem:[#allocation4 + $0x124] sm:$0xf]  ;;  %v3218_v57 = vld [vmem:[#allocation4 + $0x1c8] sm:$0xf] }
  0x3d   :  { %1072 = vmatpush.bf16.msra.mxu3 %v3471_v23  ;;  %v3007_v63 = vor.u32 %v3796_v61, %v3004_v62  ;;  %v3132_v1 = vld [vmem:[#allocation4 + $0x130] sm:$0xf0]  ;;  %v3864_v3 = vld [vmem:[#allocation4 + $0x244] sm:$0xf] }
  0x3e   :  { %1031 = vmatpush.bf16.msra.mxu0 %v3071_v22  ;;  %v3135_v2 = vor.u32 %v3828_v0, %v3132_v1  ;;  %v3276_v4 = vld [vmem:[#allocation4 + $0x250] sm:$0xf0]  ;;  %v3896_v5 = vld [vmem:[#allocation4 + $0x344] sm:$0xf]  ;;  %v3362_v0 = vld [vmem:[#allocation4 + $0x2e8] sm:$0xf] }
  0x3f   :  { %1045 = vmatpush.bf16.msra.mxu1 %v3199_v24  ;;  %v3279_v6 = vor.u32 %v3864_v3, %v3276_v4  ;;  %v3404_v7 = vld [vmem:[#allocation4 + $0x350] sm:$0xf0]  ;;  %v3792_v9 = vld [vmem:[#allocation4 + $0x4] sm:$0xf]  ;;  %v3887_v1 = vld [vmem:[#allocation4 + $0x2f4] sm:$0xf0] }
  0x40   :  { %1059 = vmatpush.bf16.msra.mxu2 %v3327_v34  ;;  %v3407_v8 = vor.u32 %v3896_v5, %v3404_v7  ;;  %v2988_v10 = vld [vmem:[#allocation4 + $0x10] sm:$0xf0]  ;;  %v3824_v11 = vld [vmem:[#allocation4 + $0x104] sm:$0xf]  ;;  %v3919_v5 = vld [vmem:[#allocation4 + $0x3f4] sm:$0xf0] }
  0x41   :  { %1073 = vmatpush.bf16.msra.mxu3 %v3455_v36  ;;  %v2991_v12 = vor.u32 %v3792_v9, %v2988_v10  ;;  %v3116_v13 = vld [vmem:[#allocation4 + $0x110] sm:$0xf0]  ;;  %v3860_v15 = vld [vmem:[#allocation4 + $0x224] sm:$0xf]  ;;  %v3815_v7 = vld [vmem:[#allocation4 + $0xb4] sm:$0xf0] }
  0x42   :  { %1032 = vmatpush.bf16.msra.mxu0 %v3055_v29  ;;  %v3119_v14 = vor.u32 %v3824_v11, %v3116_v13  ;;  %v3260_v16 = vld [vmem:[#allocation4 + $0x230] sm:$0xf0]  ;;  %v3892_v17 = vld [vmem:[#allocation4 + $0x324] sm:$0xf]  ;;  %v75_v29 = vperm.slane %v73_v27, 0 }
  0x43   :  { %1046 = vmatpush.bf16.msra.mxu1 %v3183_v30  ;;  %v3388_v18 = vld [vmem:[#allocation4 + $0x330] sm:$0xf0]  ;;  %v3263_v19 = vor.u32 %v3860_v15, %v3260_v16  ;;  %v3856_v21 = vld [vmem:[#allocation4 + $0x204] sm:$0xf]  ;;  %v3202_v10 = vld [vmem:[#allocation4 + $0x1a8] sm:$0xf] }
  0x44   :  { %1060 = vmatpush.bf16.msra.mxu2 %v3311_v45  ;;  %v3391_v20 = vor.u32 %v3892_v17, %v3388_v18  ;;  %v3244_v22 = vld [vmem:[#allocation4 + $0x210] sm:$0xf0]  ;;  %v3888_v24 = vld [vmem:[#allocation4 + $0x304] sm:$0xf]  ;;  %v3234_v45 = vld [vmem:[#allocation4 + $0x1e8] sm:$0xf] }
  0x45   :  { %1074 = vmatpush.bf16.msra.mxu3 %v3439_v48  ;;  %v3247_v23 = vor.u32 %v3856_v21, %v3244_v22  ;;  %v3372_v25 = vld [vmem:[#allocation4 + $0x310] sm:$0xf0]  ;;  %v3847_v11 = vld [vmem:[#allocation4 + $0x1b4] sm:$0xf0]  ;;  %v3346_v18 = vld [vmem:[#allocation4 + $0x2c8] sm:$0xf] }
  0x46   :  { %1033 = vmatpush.bf16.msra.mxu0 %v3039_v40  ;;  %v3375_v26 = vor.u32 %v3888_v24, %v3372_v25  ;;  %v3106_v40 = vld [vmem:[#allocation4 + $0xe8] sm:$0xf]  ;;  %v3203_v22 = vor.u32 %v3847_v11, %v3202_v10  ;;  %v3811_v25 = vld [vmem:[#allocation4 + $0x94] sm:$0xf0] }
  0x47   :  { %1047 = vmatpush.bf16.msra.mxu1 %v3167_v42  ;;  %v3107_v50 = vor.u32 %v3823_v41, %v3106_v40  ;;  %v3058_v24 = vld [vmem:[#allocation4 + $0x88] sm:$0xf]  ;;  %v3843_v27 = vld [vmem:[#allocation4 + $0x194] sm:$0xf0] }
  0x48   :  { %1061 = vmatpush.bf16.msra.mxu2 %v3295_v58  ;;  %v3851_v58 = vld [vmem:[#allocation4 + $0x1d4] sm:$0xf0]  ;;  %v2994_v10 = vld [vmem:[#allocation4 + $0x8] sm:$0xf] }
  0x49   :  { %1075 = vmatpush.bf16.msra.mxu3 %v3423_v60  ;;  %v3219_v4 = vor.u32 %v3851_v58, %v3218_v57  ;;  %v3871_v57 = vld [vmem:[#allocation4 + $0x274] sm:$0xf0] }
  0x4a   :  { %1034 = vmatpush.bf16.msra.mxu0 %v3023_v52  ;;  %v3235_v52 = vor.u32 %v3855_v46, %v3234_v45  ;;  %v3442_v46 = vld [vmem:[#allocation4 + $0x388] sm:$0xf]  ;;  %v3795_v11 = vld [vmem:[#allocation4 + $0x14] sm:$0xf0] }
  0x4b   :  { %1048 = vmatpush.bf16.msra.mxu1 %v3151_v54  ;;  %v3819_v54 = vld [vmem:[#allocation4 + $0xd4] sm:$0xf0] }
  0x4c   :  { %1062 = vmatpush.bf16.msra.mxu2 %v3279_v6  ;;  %v3074_v6 = vld [vmem:[#allocation4 + $0xa8] sm:$0xf] }
  0x4d   :  { %1076 = vmatpush.bf16.msra.mxu3 %v3407_v8  ;;  %v3075_v17 = vor.u32 %v3815_v7, %v3074_v6  ;;  %v3410_v6 = vld [vmem:[#allocation4 + $0x348] sm:$0xf] }
  0x4e   :  { %1035 = vmatpush.bf16.msra.mxu0 %v3007_v63  ;;  %v3091_v63 = vor.u32 %v3819_v54, %v3090_v53 }
  0x4f   :  { %1049 = vmatpush.bf16.msra.mxu1 %v3135_v2  ;;  %v3490_v2 = vld [vmem:[#allocation4 + $0x3e8] sm:$0xf] }
  0x50   :  { %1063 = vmatpush.bf16.msra.mxu2 %v3263_v19  ;;  %v3491_v16 = vor.u32 %v3919_v5, %v3490_v2  ;;  %v3883_v19 = vld [vmem:[#allocation4 + $0x2d4] sm:$0xf0] }
  0x51   :  { %1077 = vmatpush.bf16.msra.mxu3 %v3391_v20  ;;  %v3474_v20 = vld [vmem:[#allocation4 + $0x3c8] sm:$0xf]  ;;  %v3867_v5 = vld [vmem:[#allocation4 + $0x254] sm:$0xf0] }
  0x52   :  { %1036 = vmatpush.bf16.msra.mxu0 %v2991_v12 }
  0x53   :  { %1050 = vmatpush.bf16.msra.mxu1 %v3119_v14  ;;  %v3363_v14 = vor.u32 %v3887_v1, %v3362_v0  ;;  %v3138_v0 = vld [vmem:[#allocation4 + $0x128] sm:$0xf]  ;;  %v3831_v1 = vld [vmem:[#allocation4 + $0x134] sm:$0xf0] }
  0x54   :  { %1064 = vmatpush.bf16.msra.mxu2 %v3247_v23  ;;  %v3915_v23 = vld [vmem:[#allocation4 + $0x3d4] sm:$0xf0] }
  0x55   :  { %1078 = vmatpush.bf16.msra.mxu3 %v3375_v26  ;;  %v3186_v26 = vld [vmem:[#allocation4 + $0x188] sm:$0xf] }
  0x92   :  { %v136_v28 = vpop.f32.mrf.mxu0 }
  0x93   :  { %v150_v30 = vpop.f32.mrf.mxu1  ;;  %v137_v32 = vadd.f32 %v136_v28, %v75_v29  ;;  %v3347_v28 = vor.u32 %v3883_v19, %v3346_v18  ;;  %v3853_v18 = vld [vmem:[#allocation4 + $0x1ec] sm:$0xf]  ;;  %v3236_v19 = vld [vmem:[#allocation4 + $0x1f8] sm:$0xf0] }
  0x94   :  { %v151_v33 = vadd.f32 %v150_v30, %v76_v31  ;;  %v3059_v30 = vor.u32 %v3811_v25, %v3058_v24  ;;  %v2995_v24 = vor.u32 %v3795_v11, %v2994_v10  ;;  %v3805_v10 = vld [vmem:[#allocation4 + $0x6c] sm:$0xf]  ;;  %v3044_v11 = vld [vmem:[#allocation4 + $0x78] sm:$0xf0] }
  0x95   :  { %v183_v37 = vmax.f32 %v137_v32, 0.0  ;;  %v3879_v32 = vld [vmem:[#allocation4 + $0x2b4] sm:$0xf0] }
  0x96   :  { %v184_v42 = vmax.f32 %v151_v33, 0.0  ;;  %v3187_v33 = vor.u32 %v3843_v27, %v3186_v26  ;;  %v3394_v26 = vld [vmem:[#allocation4 + $0x328] sm:$0xf]  ;;  %v3895_v27 = vld [vmem:[#allocation4 + $0x334] sm:$0xf0] }
  0x9a   :  { %v164_v34 = vpop.f32.mrf.mxu2  ;;  %v138_v36 = vpop.f32.mrf.mxu0 }
  0x9b   :  { %v178_v35 = vpop.f32.mrf.mxu3  ;;  %v139_v38 = vadd.f32 %v138_v36, %v75_v29  ;;  %v152_v39 = vpop.f32.mrf.mxu1  ;;  %v165_v55 = vadd.f32 %v164_v34, %v77_v43  ;;  %v3475_v29 = vor.u32 %v3915_v23, %v3474_v20  ;;  %v3458_v34 = vld [vmem:[#allocation4 + $0x3a8] sm:$0xf]  ;;  %v3863_v23 = vld [vmem:[#allocation4 + $0x234] sm:$0xf0] }
  0x9c   :  { %v153_v44 = vadd.f32 %v152_v39, %v76_v31  ;;  %v179_v59 = vadd.f32 %v178_v35, %v78_v47  ;;  %v3330_v31 = vld [vmem:[#allocation4 + $0x2a8] sm:$0xf]  ;;  %v3911_v35 = vld [vmem:[#allocation4 + $0x3b4] sm:$0xf0] }
  0x9d   :  { %v187_v48 = vmax.f32 %v139_v38, 0.0  ;;  %v185_v8 = vmax.f32 %v165_v55, 0.0  ;;  %v3042_v36 = vld [vmem:[#allocation4 + $0x68] sm:$0xf]  ;;  %v3839_v39 = vld [vmem:[#allocation4 + $0x174] sm:$0xf0]  ;;  %v3331_v40 = vor.u32 %v3879_v32, %v3330_v31  ;;  %v3459_v41 = vor.u32 %v3911_v35, %v3458_v34 }
  0x9e   :  { %v188_v49 = vmax.f32 %v153_v44, 0.0  ;;  %v186_v12 = vmax.f32 %v179_v59, 0.0  ;;  %v3170_v38 = vld [vmem:[#allocation4 + $0x168] sm:$0xf]  ;;  %v3092_v32 = vld [vmem:[#allocation4 + $0xd8] sm:$0xf0]  ;;  %v3395_v35 = vor.u32 %v3895_v27, %v3394_v26 }
  0x9f   :  { %v4236_v51 = vpack.c.bf16 %v187_v48, %v183_v37  ;;  %v3807_v37 = vld [vmem:[#allocation4 + $0x74] sm:$0xf0]  ;;  %v3171_v45 = vor.u32 %v3839_v39, %v3170_v38  ;;  %v3026_v48 = vld [vmem:[#allocation4 + $0x48] sm:$0xf]  ;;  %v3220_v34 = vld [vmem:[#allocation4 + $0x1d8] sm:$0xf0] }
  0xa0   :  { %v4238_v56 = vpack.c.bf16 %v188_v49, %v184_v42  ;;  %v3314_v42 = vld [vmem:[#allocation4 + $0x288] sm:$0xf]  ;;  %v3043_v44 = vor.u32 %v3807_v37, %v3042_v36  ;;  %v3803_v49 = vld [vmem:[#allocation4 + $0x54] sm:$0xf0]  ;;  %v3833_v26 = vld [vmem:[#allocation4 + $0x14c] sm:$0xf] }
  0xa1   :  { %981 = vmatmul.bf16.vlgmr.msrb.gmra.mxu0 %v4236_v51  ;;  %v3298_v55 = vld [vmem:[#allocation4 + $0x268] sm:$0xf]  ;;  %v3027_v58 = vor.u32 %v3803_v49, %v3026_v48  ;;  %v3859_v37 = vld [vmem:[#allocation4 + $0x214] sm:$0xf0]  ;;  %v3076_v48 = vld [vmem:[#allocation4 + $0xb8] sm:$0xf0] }
  0xa2   :  { %v166_v60 = vpop.f32.mrf.mxu2  ;;  %995 = vmatmul.bf16.vlgmr.msrb.gmra.mxu1 %v4238_v56  ;;  %1085 = vmatpush.bf16.msrb.mxu0 %v3107_v50  ;;  %v3154_v50 = vld [vmem:[#allocation4 + $0x148] sm:$0xf]  ;;  %v3299_v2 = vor.u32 %v3871_v57, %v3298_v55  ;;  %v3891_v39 = vld [vmem:[#allocation4 + $0x314] sm:$0xf0]  ;;  %v3845_v49 = vld [vmem:[#allocation4 + $0x1ac] sm:$0xf] }
  0xa3   :  { %v167_v61 = vadd.f32 %v166_v60, %v77_v43  ;;  %v180_v62 = vpop.f32.mrf.mxu3  ;;  %1099 = vmatpush.bf16.msrb.mxu1 %v3235_v52  ;;  %v3875_v43 = vld [vmem:[#allocation4 + $0x294] sm:$0xf0]  ;;  %v3426_v60 = vld [vmem:[#allocation4 + $0x368] sm:$0xf]  ;;  %v3881_v55 = vld [vmem:[#allocation4 + $0x2cc] sm:$0xf] }
  0xa4   :  { %v181_v3 = vadd.f32 %v180_v62, %v78_v47  ;;  %v3907_v47 = vld [vmem:[#allocation4 + $0x394] sm:$0xf0]  ;;  %v3315_v53 = vor.u32 %v3875_v43, %v3314_v42  ;;  %v3010_v62 = vld [vmem:[#allocation4 + $0x28] sm:$0xf]  ;;  %v3348_v57 = vld [vmem:[#allocation4 + $0x2d8] sm:$0xf0] }
  0xa5   :  { %v189_v9 = vmax.f32 %v167_v61, 0.0  ;;  %v3835_v52 = vld [vmem:[#allocation4 + $0x154] sm:$0xf0]  ;;  %v3443_v54 = vor.u32 %v3907_v47, %v3442_v46  ;;  %v3250_v36 = vld [vmem:[#allocation4 + $0x208] sm:$0xf] }
  0xa6   :  { %v190_v13 = vmax.f32 %v181_v3, 0.0  ;;  %1086 = vmatpush.bf16.msrb.mxu0 %v3091_v63  ;;  %v3155_v59 = vor.u32 %v3835_v52, %v3154_v50  ;;  %v3903_v61 = vld [vmem:[#allocation4 + $0x374] sm:$0xf0]  ;;  %v3378_v38 = vld [vmem:[#allocation4 + $0x308] sm:$0xf]  ;;  %v3251_v47 = vor.u32 %v3859_v37, %v3250_v36 }
  0xa7   :  { %v4242_v15 = vpack.c.bf16 %v189_v9, %v185_v8  ;;  %1100 = vmatpush.bf16.msrb.mxu1 %v3219_v4  ;;  %v3799_v63 = vld [vmem:[#allocation4 + $0x34] sm:$0xf0]  ;;  %v3427_v3 = vor.u32 %v3903_v61, %v3426_v60  ;;  %v3282_v4 = vld [vmem:[#allocation4 + $0x248] sm:$0xf]  ;;  %v3139_v8 = vor.u32 %v3831_v1, %v3138_v0  ;;  %v3813_v46 = vld [vmem:[#allocation4 + $0xac] sm:$0xf]  ;;  %v3379_v52 = vor.u32 %v3891_v39, %v3378_v38 }
  0xa8   :  { %v4244_v21 = vpack.c.bf16 %v190_v13, %v186_v12  ;;  %v3011_v7 = vor.u32 %v3799_v63, %v3010_v62  ;;  %v3899_v9 = vld [vmem:[#allocation4 + $0x354] sm:$0xf0]  ;;  %v3122_v12 = vld [vmem:[#allocation4 + $0x108] sm:$0xf]  ;;  %v3204_v50 = vld [vmem:[#allocation4 + $0x1b8] sm:$0xf0] }
  0xa9   :  { %1009 = vmatmul.bf16.vlgmr.msrb.gmra.mxu2 %v4242_v15  ;;  %v3827_v13 = vld [vmem:[#allocation4 + $0x114] sm:$0xf0]  ;;  %v3411_v20 = vor.u32 %v3899_v9, %v3410_v6  ;;  %v3913_v60 = vld [vmem:[#allocation4 + $0x3cc] sm:$0xf]  ;;  %v3476_v61 = vld [vmem:[#allocation4 + $0x3d8] sm:$0xf0] }
  0xaa   :  { %1023 = vmatmul.bf16.vlgmr.msrb.gmra.mxu3 %v4244_v21  ;;  %1113 = vmatpush.bf16.msrb.mxu2 %v3363_v14  ;;  %v3821_v14 = vld [vmem:[#allocation4 + $0xec] sm:$0xf]  ;;  %v3123_v25 = vor.u32 %v3827_v13, %v3122_v12  ;;  %v3060_v63 = vld [vmem:[#allocation4 + $0x98] sm:$0xf0] }
  0xab   :  { %1127 = vmatpush.bf16.msrb.mxu3 %v3491_v16  ;;  %1087 = vmatpush.bf16.msrb.mxu0 %v3075_v17  ;;  %v3283_v16 = vor.u32 %v3867_v5, %v3282_v4  ;;  %v3108_v17 = vld [vmem:[#allocation4 + $0xf8] sm:$0xf0]  ;;  %v3809_v62 = vld [vmem:[#allocation4 + $0x8c] sm:$0xf] }
  0xac   :  { %1101 = vmatpush.bf16.msrb.mxu1 %v3203_v22  ;;  %v3266_v22 = vld [vmem:[#allocation4 + $0x228] sm:$0xf]  ;;  %v3841_v0 = vld [vmem:[#allocation4 + $0x18c] sm:$0xf]  ;;  %v3188_v1 = vld [vmem:[#allocation4 + $0x198] sm:$0xf0]  ;;  %v3063_v6 = vor.u32 %v3809_v62, %v3060_v63 }
  0xad   :  { %v3267_v31 = vor.u32 %v3863_v23, %v3266_v22  ;;  %v3877_v4 = vld [vmem:[#allocation4 + $0x2ac] sm:$0xf]  ;;  %v3332_v5 = vld [vmem:[#allocation4 + $0x2b8] sm:$0xf0] }
  0xae   :  { %1114 = vmatpush.bf16.msrb.mxu2 %v3347_v28  ;;  %v3111_v28 = vor.u32 %v3821_v14, %v3108_v17  ;;  %v3460_v9 = vld [vmem:[#allocation4 + $0x3b8] sm:$0xf0]  ;;  %v3837_v12 = vld [vmem:[#allocation4 + $0x16c] sm:$0xf]  ;;  %v3335_v14 = vor.u32 %v3877_v4, %v3332_v5 }
  0xaf   :  { %1128 = vmatpush.bf16.msrb.mxu3 %v3475_v29  ;;  %1088 = vmatpush.bf16.msrb.mxu0 %v3059_v30  ;;  %v3239_v29 = vor.u32 %v3853_v18, %v3236_v19  ;;  %v3817_v30 = vld [vmem:[#allocation4 + $0xcc] sm:$0xf]  ;;  %v3172_v13 = vld [vmem:[#allocation4 + $0x178] sm:$0xf0]  ;;  %v3047_v19 = vor.u32 %v3805_v10, %v3044_v11 }
  0xb0   :  { %1102 = vmatpush.bf16.msrb.mxu1 %v3187_v33  ;;  %v3849_v33 = vld [vmem:[#allocation4 + $0x1cc] sm:$0xf]  ;;  %v3095_v42 = vor.u32 %v3817_v30, %v3092_v32  ;;  %v3316_v18 = vld [vmem:[#allocation4 + $0x298] sm:$0xf0] }
  0xb1   :  { %1037 = vmatmul.bf16.vlgmr.msra.gmra.mxu0 %v4236_v51  ;;  %v3223_v43 = vor.u32 %v3849_v33, %v3220_v34  ;;  %v3873_v17 = vld [vmem:[#allocation4 + $0x28c] sm:$0xf]  ;;  %v3444_v23 = vld [vmem:[#allocation4 + $0x398] sm:$0xf0] }
  0xb2   :  { %1115 = vmatpush.bf16.msrb.mxu2 %v3331_v40  ;;  %1051 = vmatmul.bf16.vlgmr.msra.gmra.mxu1 %v4238_v56  ;;  %v3885_v40 = vld [vmem:[#allocation4 + $0x2ec] sm:$0xf]  ;;  %v3156_v27 = vld [vmem:[#allocation4 + $0x158] sm:$0xf0] }
  0xb3   :  { %1129 = vmatpush.bf16.msrb.mxu3 %v3459_v41  ;;  %1089 = vmatpush.bf16.msrb.mxu0 %v3043_v44  ;;  %v3364_v41 = vld [vmem:[#allocation4 + $0x2f8] sm:$0xf0]  ;;  %v3917_v44 = vld [vmem:[#allocation4 + $0x3ec] sm:$0xf]  ;;  %v3159_v33 = vor.u32 %v3833_v26, %v3156_v27  ;;  %v3928_v27 = vld [vmem:[%s4846_s5 + $0x40] sm:$0xff] }
  0xb4   :  { %1103 = vmatpush.bf16.msrb.mxu1 %v3171_v45  ;;  %v3492_v45 = vld [vmem:[#allocation4 + $0x3f8] sm:$0xf0]  ;;  %v3905_v22 = vld [vmem:[#allocation4 + $0x38c] sm:$0xf] }
  0xb5   :  { %v3869_v30 = vld [vmem:[#allocation4 + $0x26c] sm:$0xf]  ;;  %v3012_v37 = vld [vmem:[#allocation4 + $0x38] sm:$0xf0] }
  0xb6   :  { %1116 = vmatpush.bf16.msrb.mxu2 %v3315_v53  ;;  %v3367_v53 = vor.u32 %v3885_v40, %v3364_v41  ;;  %v3901_v34 = vld [vmem:[#allocation4 + $0x36c] sm:$0xf]  ;;  %v3140_v39 = vld [vmem:[#allocation4 + $0x138] sm:$0xf0] }
  0xb7   :  { %1130 = vmatpush.bf16.msrb.mxu3 %v3443_v54  ;;  %1090 = vmatpush.bf16.msrb.mxu0 %v3027_v58  ;;  %v3495_v54 = vor.u32 %v3917_v44, %v3492_v45  ;;  %v3079_v58 = vor.u32 %v3813_v46, %v3076_v48  ;;  %v3797_v36 = vld [vmem:[#allocation4 + $0x2c] sm:$0xf]  ;;  %v3927_v62 = vld [vmem:[%s4846_s5 + $0x38] sm:$0xff] }
  0xb8   :  { %1104 = vmatpush.bf16.msrb.mxu1 %v3155_v59  ;;  %v3207_v59 = vor.u32 %v3845_v49, %v3204_v50  ;;  %v3829_v38 = vld [vmem:[#allocation4 + $0x12c] sm:$0xf]  ;;  %v3015_v44 = vor.u32 %v3797_v36, %v3012_v37  ;;  %v2996_v49 = vld [vmem:[#allocation4 + $0x18] sm:$0xf0] }
  0xb9   :  { %1065 = vmatmul.bf16.vlgmr.msra.gmra.mxu2 %v4242_v15  ;;  %v3143_v45 = vor.u32 %v3829_v38, %v3140_v39  ;;  %v3897_v46 = vld [vmem:[#allocation4 + $0x34c] sm:$0xf]  ;;  %v3380_v4 = vld [vmem:[#allocation4 + $0x318] sm:$0xf0]  ;;  %v3938_v38 = vld [vmem:[%s4846_s5 + $0x90] sm:$0xff] }
  0xba   :  { %1079 = vmatmul.bf16.vlgmr.msra.gmra.mxu3 %v4244_v21  ;;  %1117 = vmatpush.bf16.msrb.mxu2 %v3299_v2  ;;  %v3351_v2 = vor.u32 %v3881_v55, %v3348_v57  ;;  %v3793_v48 = vld [vmem:[#allocation4 + $0xc] sm:$0xf]  ;;  %v3268_v57 = vld [vmem:[#allocation4 + $0x238] sm:$0xf0] }
  0xbb   :  { %1131 = vmatpush.bf16.msrb.mxu3 %v3427_v3  ;;  %1091 = vmatpush.bf16.msrb.mxu0 %v3011_v7  ;;  %v3479_v3 = vor.u32 %v3913_v60, %v3476_v61  ;;  %v3191_v7 = vor.u32 %v3841_v0, %v3188_v1  ;;  %v3825_v50 = vld [vmem:[#allocation4 + $0x10c] sm:$0xf]  ;;  %v3396_v61 = vld [vmem:[#allocation4 + $0x338] sm:$0xf0] }
  0xbc   :  { %1105 = vmatpush.bf16.msrb.mxu1 %v3139_v8  ;;  %v3909_v8 = vld [vmem:[#allocation4 + $0x3ac] sm:$0xf] }
  0xbd   :  { %v3861_v55 = vld [vmem:[#allocation4 + $0x22c] sm:$0xf] }
  0xbe   :  { %1118 = vmatpush.bf16.msrb.mxu2 %v3283_v16  ;;  %v3463_v16 = vor.u32 %v3909_v8, %v3460_v9  ;;  %v3893_v60 = vld [vmem:[#allocation4 + $0x32c] sm:$0xf]  ;;  %v3271_v63 = vor.u32 %v3861_v55, %v3268_v57  ;;  %v3934_v9 = vld [vmem:[%s4846_s5 + $0x70] sm:$0xff] }
  0xbf   :  { %1132 = vmatpush.bf16.msrb.mxu3 %v3411_v20  ;;  %1092 = vmatpush.bf16.msrb.mxu0 %v2995_v24  ;;  %v3175_v20 = vor.u32 %v3837_v12, %v3172_v13  ;;  %v3801_v24 = vld [vmem:[#allocation4 + $0x4c] sm:$0xf]  ;;  %v3399_v0 = vor.u32 %v3893_v60, %v3396_v61  ;;  %v3920_v12 = vld [vmem:[%s4846_s5] sm:$0xff] }
  0xc0   :  { %1106 = vmatpush.bf16.msrb.mxu1 %v3123_v25  ;;  %v3028_v25 = vld [vmem:[#allocation4 + $0x58] sm:$0xf0]  ;;  %v3857_v1 = vld [vmem:[#allocation4 + $0x20c] sm:$0xf]  ;;  %v3932_v13 = vld [vmem:[%s4846_s5 + $0x60] sm:$0xff] }
  0xc1   :  { %v3031_v32 = vor.u32 %v3801_v24, %v3028_v25  ;;  %v3925_v8 = vld [vmem:[%s4846_s5 + $0x28] sm:$0xff] }
  0xc2   :  { %1119 = vmatpush.bf16.msrb.mxu2 %v3267_v31  ;;  %1093 = vmatmul.bf16.vlgmr.msrb.gmra.mxu0 %v4236_v51  ;;  %v3300_v31 = vld [vmem:[#allocation4 + $0x278] sm:$0xf0]  ;;  %v3921_v10 = vld [vmem:[%s4846_s5 + $0x8] sm:$0xff] }
  0xc3   :  { %1141 = vmatpush.bf16.msra.mxu0 %v3111_v28  ;;  %1133 = vmatpush.bf16.msrb.mxu3 %v3395_v35  ;;  %v3319_v28 = vor.u32 %v3873_v17, %v3316_v18  ;;  %v3428_v35 = vld [vmem:[#allocation4 + $0x378] sm:$0xf0]  ;;  %v3303_v40 = vor.u32 %v3869_v30, %v3300_v31  ;;  %v3933_v11 = vld [vmem:[%s4846_s5 + $0x68] sm:$0xff] }
  0xc4   :  { %1155 = vmatpush.bf16.msra.mxu1 %v3239_v29  ;;  %v3447_v29 = vor.u32 %v3905_v22, %v3444_v23  ;;  %v3431_v41 = vor.u32 %v3901_v34, %v3428_v35  ;;  %v4311_v22 = vld [vmem:[%s4845_s4] sm:$0xf]  ;;  %v3929_v23 = vld [vmem:[%s4846_s5 + $0x48] sm:$0xff] }
  0xc5   :  { %1107 = vmatmul.bf16.vlgmr.msrb.gmra.mxu1 %v4238_v56  ;;  %v3941_v24 = vld [vmem:[%s4846_s5 + $0xa8] sm:$0xff]  ;;  %v325_v25 = vperm.slane %v4311_v22, 0 }
  0xc6   :  { %1120 = vmatpush.bf16.msrb.mxu2 %v3251_v47  ;;  %v3412_v47 = vld [vmem:[#allocation4 + $0x358] sm:$0xf0] }
  0xc7   :  { %1142 = vmatpush.bf16.msra.mxu0 %v3095_v42  ;;  %1134 = vmatpush.bf16.msrb.mxu3 %v3379_v52  ;;  %v3865_v42 = vld [vmem:[#allocation4 + $0x24c] sm:$0xf]  ;;  %v3124_v52 = vld [vmem:[#allocation4 + $0x118] sm:$0xf0] }
  0xc8   :  { %1156 = vmatpush.bf16.msra.mxu1 %v3223_v43  ;;  %v3284_v43 = vld [vmem:[#allocation4 + $0x258] sm:$0xf0] }
  0xc9   :  { %1121 = vmatmul.bf16.vlgmr.msrb.gmra.mxu2 %v4242_v15 }
  0xca   :  { %1169 = vmatpush.bf16.msra.mxu2 %v3367_v53  ;;  %1135 = vmatmul.bf16.vlgmr.msrb.gmra.mxu3 %v4244_v21  ;;  %v3287_v53 = vor.u32 %v3865_v42, %v3284_v43 }
  0xcb   :  { %1183 = vmatpush.bf16.msra.mxu3 %v3495_v54  ;;  %1143 = vmatpush.bf16.msra.mxu0 %v3079_v58  ;;  %v3415_v54 = vor.u32 %v3897_v46, %v3412_v47  ;;  %v2999_v58 = vor.u32 %v3793_v48, %v2996_v49  ;;  %v326_v46 = vperm.slane %v4311_v22, 1 }
  0xcc   :  { %1157 = vmatpush.bf16.msra.mxu1 %v3207_v59  ;;  %v3127_v59 = vor.u32 %v3825_v50, %v3124_v52  ;;  %v3936_v52 = vld [vmem:[%s4846_s5 + $0x80] sm:$0xff] }
  0xce   :  { %1170 = vmatpush.bf16.msra.mxu2 %v3351_v2  ;;  %v3252_v2 = vld [vmem:[#allocation4 + $0x218] sm:$0xf0] }
  0xcf   :  { %1184 = vmatpush.bf16.msra.mxu3 %v3479_v3  ;;  %1144 = vmatpush.bf16.msra.mxu0 %v3063_v6  ;;  %v3889_v3 = vld [vmem:[#allocation4 + $0x30c] sm:$0xf]  ;;  %v3255_v5 = vor.u32 %v3857_v1, %v3252_v2 }
  0xd0   :  { %1158 = vmatpush.bf16.msra.mxu1 %v3191_v7  ;;  %v3383_v6 = vor.u32 %v3889_v3, %v3380_v4  ;;  %v3926_v7 = vld [vmem:[%s4846_s5 + $0x30] sm:$0xff] }
  0xd2   :  { %1171 = vmatpush.bf16.msra.mxu2 %v3335_v14  ;;  %v3931_v14 = vld [vmem:[%s4846_s5 + $0x58] sm:$0xff] }
  0xd3   :  { %1185 = vmatpush.bf16.msra.mxu3 %v3463_v16  ;;  %1145 = vmatpush.bf16.msra.mxu0 %v3047_v19  ;;  %v3943_v16 = vld [vmem:[%s4846_s5 + $0xb8] sm:$0xff]  ;;  %v3930_v19 = vld [vmem:[%s4846_s5 + $0x50] sm:$0xff] }
  0xd4   :  { %1159 = vmatpush.bf16.msra.mxu1 %v3175_v20  ;;  %v3942_v20 = vld [vmem:[%s4846_s5 + $0xb0] sm:$0xff] }
  0xd6   :  { %1172 = vmatpush.bf16.msra.mxu2 %v3319_v28  ;;  %v3940_v28 = vld [vmem:[%s4846_s5 + $0xa0] sm:$0xff] }
  0xd7   :  { %1186 = vmatpush.bf16.msra.mxu3 %v3447_v29  ;;  %1146 = vmatpush.bf16.msra.mxu0 %v3031_v32 }
  0xd8   :  { %1160 = vmatpush.bf16.msra.mxu1 %v3159_v33  ;;  %v3939_v33 = vld [vmem:[%s4846_s5 + $0x98] sm:$0xff] }
  0xda   :  { %1173 = vmatpush.bf16.msra.mxu2 %v3303_v40 }
  0xdb   :  { %1187 = vmatpush.bf16.msra.mxu3 %v3431_v41  ;;  %1147 = vmatpush.bf16.msra.mxu0 %v3015_v44 }
  0xdc   :  { %1161 = vmatpush.bf16.msra.mxu1 %v3143_v45  ;;  %v3937_v45 = vld [vmem:[%s4846_s5 + $0x88] sm:$0xff] }
  0xde   :  { %1174 = vmatpush.bf16.msra.mxu2 %v3287_v53  ;;  %v3951_v53 = vld [vmem:[%s4846_s5 + $0xf8] sm:$0xff] }
  0xdf   :  { %1188 = vmatpush.bf16.msra.mxu3 %v3415_v54  ;;  %1148 = vmatpush.bf16.msra.mxu0 %v2999_v58 }
  0xe0   :  { %1162 = vmatpush.bf16.msra.mxu1 %v3127_v59  ;;  %v3950_v59 = vld [vmem:[%s4846_s5 + $0xf0] sm:$0xff] }
  0xe2   :  { %1175 = vmatpush.bf16.msra.mxu2 %v3271_v63  ;;  %1149 = vmatmul.bf16.vlgmr.msra.gmra.mxu0 %v4236_v51  ;;  %v3924_v51 = vld [vmem:[%s4846_s5 + $0x20] sm:$0xff]  ;;  %v3949_v63 = vld [vmem:[%s4846_s5 + $0xe8] sm:$0xff] }
  0xe3   :  { %1465 = vmatpush.bf16.msrb.mxu0 %v3927_v62  ;;  %1189 = vmatpush.bf16.msra.mxu3 %v3399_v0 }
  0xe4   :  { %1163 = vmatmul.bf16.vlgmr.msra.gmra.mxu1 %v4238_v56  ;;  %v3923_v56 = vld [vmem:[%s4846_s5 + $0x18] sm:$0xff] }
  0xe6   :  { %1176 = vmatpush.bf16.msra.mxu2 %v3255_v5 }
  0xe7   :  { %1190 = vmatpush.bf16.msra.mxu3 %v3383_v6  ;;  %1466 = vmatpush.bf16.msrb.mxu0 %v3926_v7  ;;  %v3948_v7 = vld [vmem:[%s4846_s5 + $0xe0] sm:$0xff] }
  0xe9   :  { %1177 = vmatmul.bf16.vlgmr.msra.gmra.mxu2 %v4242_v15  ;;  %v3935_v15 = vld [vmem:[%s4846_s5 + $0x78] sm:$0xff] }
  0xea   :  { %1191 = vmatmul.bf16.vlgmr.msra.gmra.mxu3 %v4244_v21  ;;  %1479 = vmatpush.bf16.msrb.mxu1 %v3935_v15  ;;  %v3922_v21 = vld [vmem:[%s4846_s5 + $0x10] sm:$0xff] }
  0xeb   :  { %1467 = vmatpush.bf16.msrb.mxu0 %v3925_v8  ;;  %1493 = vmatpush.bf16.msrb.mxu2 %v3943_v16  ;;  %v3946_v16 = vld [vmem:[%s4846_s5 + $0xd0] sm:$0xff] }
  0xec   :  { %1507 = vmatpush.bf16.msrb.mxu3 %v3951_v53 }
  0xee   :  { %1480 = vmatpush.bf16.msrb.mxu1 %v3934_v9  ;;  %v3947_v9 = vld [vmem:[%s4846_s5 + $0xd8] sm:$0xff] }
  0xef   :  { %1468 = vmatpush.bf16.msrb.mxu0 %v3924_v51  ;;  %1494 = vmatpush.bf16.msrb.mxu2 %v3942_v20  ;;  %v327_v51 = vperm.slane %v4311_v22, 2  ;;  %v3945_v20 = vld [vmem:[%s4846_s5 + $0xc8] sm:$0xff] }
  0xf0   :  { %1508 = vmatpush.bf16.msrb.mxu3 %v3950_v59  ;;  %v3636_v59 = vld [vmem:[%s4847_s6 + $0x88] sm:$0xf0] }
  0xf2   :  { %1481 = vmatpush.bf16.msrb.mxu1 %v3933_v11 }
  0xf3   :  { %1469 = vmatpush.bf16.msrb.mxu0 %v3923_v56  ;;  %1495 = vmatpush.bf16.msrb.mxu2 %v3941_v24 }
  0xf4   :  { %1509 = vmatpush.bf16.msrb.mxu3 %v3949_v63  ;;  %v3952_v63 = vld [vmem:[%s4847_s6 + $0x4] sm:$0xf] }
  0xf6   :  { %1482 = vmatpush.bf16.msrb.mxu1 %v3932_v13 }
  0xf7   :  { %1470 = vmatpush.bf16.msrb.mxu0 %v3922_v21  ;;  %1496 = vmatpush.bf16.msrb.mxu2 %v3940_v28  ;;  %v3944_v28 = vld [vmem:[%s4846_s5 + $0xc0] sm:$0xff] }
  0xf8   :  { %1510 = vmatpush.bf16.msrb.mxu3 %v3948_v7  ;;  %v3652_v7 = vld [vmem:[%s4847_s6 + $0x98] sm:$0xf0] }
  0xfa   :  { %1483 = vmatpush.bf16.msrb.mxu1 %v3931_v14 }
  0xfb   :  { %1471 = vmatpush.bf16.msrb.mxu0 %v3921_v10  ;;  %1497 = vmatpush.bf16.msrb.mxu2 %v3939_v33 }
  0xfc   :  { %1511 = vmatpush.bf16.msrb.mxu3 %v3947_v9  ;;  %v3644_v9 = vld [vmem:[%s4847_s6 + $0x90] sm:$0xf0] }
  0xfe   :  { %1484 = vmatpush.bf16.msrb.mxu1 %v3930_v19 }
  0xff   :  { %1472 = vmatpush.bf16.msrb.mxu0 %v3920_v12  ;;  %1498 = vmatpush.bf16.msrb.mxu2 %v3938_v38 }
 0x100   :  { %1512 = vmatpush.bf16.msrb.mxu3 %v3946_v16 }
 0x102   :  { %1485 = vmatpush.bf16.msrb.mxu1 %v3929_v23 }
 0x103   :  { %1499 = vmatpush.bf16.msrb.mxu2 %v3937_v45 }
 0x104   :  { %1513 = vmatpush.bf16.msrb.mxu3 %v3945_v20 }
 0x106   :  { %1486 = vmatpush.bf16.msrb.mxu1 %v3928_v27 }
 0x107   :  { %1500 = vmatpush.bf16.msrb.mxu2 %v3936_v52 }
 0x108   :  { %1514 = vmatpush.bf16.msrb.mxu3 %v3944_v28  ;;  %v3957_v28 = vld [vmem:[%s4847_s6 + $0x2c] sm:$0xf] }
 0x11e   :  { %v982_v17 = vpop.f32.mrf.mxu0 }
 0x11f   :  { %v996_v18 = vpop.f32.mrf.mxu1  ;;  %v983_v29 = vadd.f32 %v982_v17, %v325_v25 }
 0x121   :  { %v997_v34 = vadd.f32 %v996_v18, %v983_v29 }
 0x126   :  { %v984_v26 = vpop.f32.mrf.mxu0 }
 0x127   :  { %v998_v30 = vpop.f32.mrf.mxu1  ;;  %v985_v35 = vadd.f32 %v984_v26, %v325_v25 }
 0x129   :  { %v999_v39 = vadd.f32 %v998_v30, %v985_v35  ;;  %v328_v35 = vperm.slane %v4311_v22, 3  ;;  %v3634_v22 = vld [vmem:[%s4847_s6 + $0x8] sm:$0xf] }
 0x12c   :  { %v1010_v31 = vpop.f32.mrf.mxu2 }
 0x12d   :  { %v1024_v32 = vpop.f32.mrf.mxu3  ;;  %v1011_v37 = vadd.f32 %v1010_v31, %v997_v34 }
 0x12e   :  { %v1038_v36 = vpop.f32.mrf.mxu0 }
 0x12f   :  { %v1025_v41 = vadd.f32 %v1024_v32, %v1011_v37  ;;  %v1052_v42 = vpop.f32.mrf.mxu1  ;;  %v1039_v54 = vadd.f32 %v1038_v36, %v326_v46 }
 0x131   :  { %v1197_v49 = vmax.f32 %v1025_v41, 0.0  ;;  %v1053_v60 = vadd.f32 %v1052_v42, %v1039_v54 }
 0x134   :  { %v1012_v40 = vpop.f32.mrf.mxu2 }
 0x135   :  { %v1013_v43 = vadd.f32 %v1012_v40, %v999_v39  ;;  %v1026_v44 = vpop.f32.mrf.mxu3 }
 0x136   :  { %v1040_v48 = vpop.f32.mrf.mxu0 }
 0x137   :  { %v1027_v47 = vadd.f32 %v1026_v44, %v1013_v43  ;;  %v1041_v61 = vadd.f32 %v1040_v48, %v326_v46  ;;  %v1054_v62 = vpop.f32.mrf.mxu1 }
 0x139   :  { %v1201_v50 = vmax.f32 %v1027_v47, 0.0  ;;  %v1055_v2 = vadd.f32 %v1054_v62, %v1041_v61  ;;  %v3626_v61 = vld [vmem:[%s4847_s6] sm:$0xf] }
 0x13a   :  { %v3968_v62 = vld [vmem:[%s4847_s6 + $0x7c] sm:$0xf0] }
 0x13b   :  { %v1205_v55 = vpack.c.bf16 %v1201_v50, %v1197_v49 }
 0x13c   :  { %v1066_v57 = vpop.f32.mrf.mxu2 }
 0x13d   :  { %v1080_v58 = vpop.f32.mrf.mxu3  ;;  %1473 = vmatmul.bf16.vlgmr.msrb.gmra.mxu0 %v1205_v55  ;;  %v1067_v0 = vadd.f32 %v1066_v57, %v1053_v60  ;;  %v3969_v55 = vld [vmem:[%s4847_s6 + $0x84] sm:$0xf0]  ;;  %v3953_v57 = vld [vmem:[%s4847_s6 + $0xc] sm:$0xf] }
 0x13e   :  { %v3639_v60 = vor.u32 %v3953_v57, %v3636_v59  ;;  %v3700_v57 = vld [vmem:[%s4847_s6 + $0xc8] sm:$0xf0]  ;;  %v3976_v59 = vld [vmem:[%s4847_s6 + $0xbc] sm:$0xf0] }
 0x13f   :  { %v1094_v1 = vpop.f32.mrf.mxu0  ;;  %v1081_v4 = vadd.f32 %v1080_v58, %v1067_v0  ;;  %v3635_v58 = vor.u32 %v3969_v55, %v3634_v22  ;;  %v3627_v0 = vor.u32 %v3968_v62, %v3626_v61  ;;  %v3977_v22 = vld [vmem:[%s4847_s6 + $0xc4] sm:$0xf0]  ;;  %v3961_v55 = vld [vmem:[%s4847_s6 + $0x4c] sm:$0xf]  ;;  %v3692_v61 = vld [vmem:[%s4847_s6 + $0xc0] sm:$0xf0] }
 0x140   :  { %v1095_v11 = vadd.f32 %v1094_v1, %v327_v51  ;;  %1839 = vmatpush.bf16.msra.mxu3 %v3639_v60  ;;  %v3628_v1 = vld [vmem:[%s4847_s6 + $0x80] sm:$0xf0] }
 0x141   :  { %v1198_v56 = vmax.f32 %v1081_v4, 0.0  ;;  %1825 = vmatpush.bf16.msra.mxu2 %v3635_v58  ;;  %1797 = vmatpush.bf16.msra.mxu0 %v3627_v0  ;;  %v3971_v4 = vld [vmem:[%s4847_s6 + $0x94] sm:$0xf0]  ;;  %v3690_v58 = vld [vmem:[%s4847_s6 + $0x40] sm:$0xf] }
 0x142   :  { %v1108_v15 = vpop.f32.mrf.mxu1  ;;  %v3960_v60 = vld [vmem:[%s4847_s6 + $0x44] sm:$0xf]  ;;  %v3691_v0 = vor.u32 %v3976_v59, %v3690_v58 }
 0x143   :  { %v1109_v17 = vadd.f32 %v1108_v15, %v1095_v11 }
 0x144   :  { %v1068_v3 = vpop.f32.mrf.mxu2 }
 0x145   :  { %v1069_v5 = vadd.f32 %v1068_v3, %v1055_v2  ;;  %v1082_v6 = vpop.f32.mrf.mxu3  ;;  %v3631_v2 = vor.u32 %v3952_v63, %v3628_v1  ;;  %v3650_v3 = vld [vmem:[%s4847_s6 + $0x18] sm:$0xf]  ;;  %v3703_v63 = vor.u32 %v3961_v55, %v3700_v57  ;;  %v3695_v1 = vor.u32 %v3960_v60, %v3692_v61 }
 0x147   :  { %v1083_v8 = vadd.f32 %v1082_v6, %v1069_v5  ;;  %v1096_v12 = vpop.f32.mrf.mxu0  ;;  %1811 = vmatpush.bf16.msra.mxu1 %v3631_v2  ;;  %v3955_v5 = vld [vmem:[%s4847_s6 + $0x1c] sm:$0xf]  ;;  %v3651_v6 = vor.u32 %v3971_v4, %v3650_v3  ;;  %v3714_v2 = vld [vmem:[%s4847_s6 + $0x58] sm:$0xf] }
 0x148   :  { %v1097_v18 = vadd.f32 %v1096_v12, %v327_v51  ;;  %v3970_v51 = vld [vmem:[%s4847_s6 + $0x8c] sm:$0xf0]  ;;  %v3979_v3 = vld [vmem:[%s4847_s6 + $0xd4] sm:$0xf0]  ;;  %v3963_v4 = vld [vmem:[%s4847_s6 + $0x5c] sm:$0xf] }
 0x149   :  { %v1202_v21 = vmax.f32 %v1083_v8, 0.0  ;;  %v3642_v8 = vld [vmem:[%s4847_s6 + $0x10] sm:$0xf] }
 0x14a   :  { %v1110_v23 = vpop.f32.mrf.mxu1  ;;  %v3643_v15 = vor.u32 %v3970_v51, %v3642_v8  ;;  %v3962_v8 = vld [vmem:[%s4847_s6 + $0x54] sm:$0xf] }
 0x14b   :  { %v1206_v10 = vpack.c.bf16 %v1202_v21, %v1198_v56  ;;  %v1111_v24 = vadd.f32 %v1110_v23, %v1097_v18  ;;  %v3655_v56 = vor.u32 %v3955_v5, %v3652_v7  ;;  %v3954_v21 = vld [vmem:[%s4847_s6 + $0x14] sm:$0xf]  ;;  %v3716_v5 = vld [vmem:[%s4847_s6 + $0xd8] sm:$0xf0]  ;;  %v3978_v7 = vld [vmem:[%s4847_s6 + $0xcc] sm:$0xf0] }
 0x14c   :  { %v1122_v13 = vpop.f32.mrf.mxu2  ;;  %1853 = vmatpush.bf16.msrb.mxu0 %v3643_v15  ;;  %v3708_v51 = vld [vmem:[%s4847_s6 + $0xd0] sm:$0xf0]  ;;  %v3719_v15 = vor.u32 %v3963_v4, %v3716_v5 }
 0x14d   :  { %v1136_v14 = vpop.f32.mrf.mxu3  ;;  %1487 = vmatmul.bf16.vlgmr.msrb.gmra.mxu1 %v1206_v10  ;;  %v1123_v19 = vadd.f32 %v1122_v13, %v1109_v17  ;;  %v3647_v10 = vor.u32 %v3954_v21, %v3644_v9  ;;  %v3711_v9 = vor.u32 %v3962_v8, %v3708_v51 }
 0x14f   :  { %v1137_v26 = vadd.f32 %v1136_v14, %v1123_v19  ;;  %1867 = vmatpush.bf16.msrb.mxu1 %v3647_v10  ;;  %v3730_v10 = vld [vmem:[%s4847_s6 + $0x68] sm:$0xf] }
 0x151   :  { %v1199_v31 = vmax.f32 %v1137_v26, 0.0  ;;  %v3973_v26 = vld [vmem:[%s4847_s6 + $0xa4] sm:$0xf0] }
 0x154   :  { %v1124_v25 = vpop.f32.mrf.mxu2 }
 0x155   :  { %v1125_v27 = vadd.f32 %v1124_v25, %v1111_v24  ;;  %v1138_v29 = vpop.f32.mrf.mxu3  ;;  %v3666_v25 = vld [vmem:[%s4847_s6 + $0x28] sm:$0xf] }
 0x157   :  { %v1139_v30 = vadd.f32 %v1138_v29, %v1125_v27  ;;  %v3668_v29 = vld [vmem:[%s4847_s6 + $0xa8] sm:$0xf0] }
 0x159   :  { %v1203_v32 = vmax.f32 %v1139_v30, 0.0  ;;  %v3658_v30 = vld [vmem:[%s4847_s6 + $0x20] sm:$0xf] }
 0x15b   :  { %v1207_v33 = vpack.c.bf16 %v1203_v32, %v1199_v31 }
 0x15d   :  { %1501 = vmatmul.bf16.vlgmr.msrb.gmra.mxu2 %v1207_v33  ;;  %v3972_v33 = vld [vmem:[%s4847_s6 + $0x9c] sm:$0xf0] }
 0x15e   :  { %1881 = vmatpush.bf16.msrb.mxu2 %v3651_v6  ;;  %v3706_v6 = vld [vmem:[%s4847_s6 + $0x50] sm:$0xf] }
 0x15f   :  { %v1150_v34 = vpop.f32.mrf.mxu0  ;;  %v3707_v21 = vor.u32 %v3978_v7, %v3706_v6 }
 0x160   :  { %v1151_v37 = vadd.f32 %v1150_v34, %v328_v35  ;;  %v3956_v34 = vld [vmem:[%s4847_s6 + $0x24] sm:$0xf] }
 0x161   :  { %v1164_v36 = vpop.f32.mrf.mxu1 }
 0x162   :  { %v1165_v41 = vadd.f32 %v1164_v36, %v1151_v37  ;;  %v3667_v37 = vor.u32 %v3973_v26, %v3666_v25  ;;  %v3746_v25 = vld [vmem:[%s4847_s6 + $0x78] sm:$0xf] }
 0x163   :  { %v3983_v26 = vld [vmem:[%s4847_s6 + $0xf4] sm:$0xf0] }
 0x167   :  { %v1152_v38 = vpop.f32.mrf.mxu0 }
 0x168   :  { %v1153_v42 = vadd.f32 %v1152_v38, %v328_v35  ;;  %v3660_v35 = vld [vmem:[%s4847_s6 + $0xa0] sm:$0xf0]  ;;  %v3671_v38 = vor.u32 %v3957_v28, %v3668_v29  ;;  %v3748_v28 = vld [vmem:[%s4847_s6 + $0xf8] sm:$0xf0]  ;;  %v3738_v29 = vld [vmem:[%s4847_s6 + $0x70] sm:$0xf] }
 0x169   :  { %v1166_v44 = vpop.f32.mrf.mxu1 }
 0x16a   :  { %v1167_v45 = vadd.f32 %v1166_v44, %v1153_v42  ;;  %v3975_v42 = vld [vmem:[%s4847_s6 + $0xb4] sm:$0xf0]  ;;  %v3684_v44 = vld [vmem:[%s4847_s6 + $0xb8] sm:$0xf0] }
 0x16c   :  { %v1178_v39 = vpop.f32.mrf.mxu2 }
 0x16d   :  { %v1192_v40 = vpop.f32.mrf.mxu3  ;;  %v1179_v43 = vadd.f32 %v1178_v39, %v1165_v41  ;;  %v3659_v39 = vor.u32 %v3972_v33, %v3658_v30  ;;  %v3682_v41 = vld [vmem:[%s4847_s6 + $0x38] sm:$0xf]  ;;  %v3982_v30 = vld [vmem:[%s4847_s6 + $0xec] sm:$0xf0]  ;;  %v3747_v33 = vor.u32 %v3983_v26, %v3746_v25 }
 0x16f   :  { %v1193_v47 = vadd.f32 %v1192_v40, %v1179_v43  ;;  %v3663_v40 = vor.u32 %v3956_v34, %v3660_v35  ;;  %v3959_v43 = vld [vmem:[%s4847_s6 + $0x3c] sm:$0xf]  ;;  %v3739_v35 = vor.u32 %v3982_v30, %v3738_v29 }
 0x171   :  { %v1200_v52 = vmax.f32 %v1193_v47, 0.0  ;;  %v3958_v47 = vld [vmem:[%s4847_s6 + $0x34] sm:$0xf] }
 0x174   :  { %v1180_v46 = vpop.f32.mrf.mxu2 }
 0x175   :  { %v1181_v48 = vadd.f32 %v1180_v46, %v1167_v45  ;;  %v1194_v49 = vpop.f32.mrf.mxu3  ;;  %v3674_v45 = vld [vmem:[%s4847_s6 + $0x30] sm:$0xf] }
 0x176   :  { %v3974_v46 = vld [vmem:[%s4847_s6 + $0xac] sm:$0xf0] }
 0x177   :  { %v1195_v50 = vadd.f32 %v1194_v49, %v1181_v48  ;;  %v3676_v48 = vld [vmem:[%s4847_s6 + $0xb0] sm:$0xf0]  ;;  %v3683_v49 = vor.u32 %v3975_v42, %v3682_v41 }
 0x179   :  { %v1204_v53 = vmax.f32 %v1195_v50, 0.0  ;;  %v3687_v50 = vor.u32 %v3959_v43, %v3684_v44 }
 0x17b   :  { %v1208_v54 = vpack.c.bf16 %v1204_v53, %v1200_v52  ;;  %v3675_v52 = vor.u32 %v3974_v46, %v3674_v45  ;;  %v3679_v53 = vor.u32 %v3958_v47, %v3676_v48 }
 0x17d   :  { %1515 = vmatmul.bf16.vlgmr.msrb.gmra.mxu3 %v1208_v54  ;;  %v3698_v54 = vld [vmem:[%s4847_s6 + $0x48] sm:$0xf] }
 0x17e   :  { %1895 = vmatpush.bf16.msrb.mxu3 %v3655_v56  ;;  %v3699_v62 = vor.u32 %v3977_v22, %v3698_v54  ;;  %v3715_v56 = vor.u32 %v3979_v3, %v3714_v2 }
 0x1ba   :  { %v1474_v12 = vpop.f32.mrf.mxu0 }
 0x1c2   :  { %v1476_v17 = vpop.f32.mrf.mxu0 }
 0x1ca   :  { %v1488_v11 = vpop.f32.mrf.mxu1 }
 0x1cb   :  { %v1489_v19 = vadd.f32 %v1488_v11, %v1474_v12  ;;  %v3981_v11 = vld [vmem:[%s4847_s6 + $0xe4] sm:$0xf0]  ;;  %v3965_v12 = vld [vmem:[%s4847_s6 + $0x6c] sm:$0xf] }
 0x1d2   :  { %v1490_v16 = vpop.f32.mrf.mxu1 }
 0x1d3   :  { %v1491_v20 = vadd.f32 %v1490_v16, %v1476_v17  ;;  %v3980_v16 = vld [vmem:[%s4847_s6 + $0xdc] sm:$0xf0]  ;;  %v3964_v17 = vld [vmem:[%s4847_s6 + $0x64] sm:$0xf] }
 0x1e0   :  { %v1502_v13 = vpop.f32.mrf.mxu2 }
 0x1e1   :  { %v1503_v23 = vadd.f32 %v1502_v13, %v1489_v19  ;;  %v3732_v13 = vld [vmem:[%s4847_s6 + $0xe8] sm:$0xf0]  ;;  %v3731_v19 = vor.u32 %v3981_v11, %v3730_v10 }
 0x1e8   :  { %v1504_v18 = vpop.f32.mrf.mxu2 }
 0x1e9   :  { %v1505_v24 = vadd.f32 %v1504_v18, %v1491_v20  ;;  %v3724_v18 = vld [vmem:[%s4847_s6 + $0xe0] sm:$0xf0]  ;;  %v3735_v20 = vor.u32 %v3965_v12, %v3732_v13 }
 0x200   :  { %v1516_v14 = vpop.f32.mrf.mxu3 }
 0x201   :  { %v1517_v31 = vadd.f32 %v1516_v14, %v1503_v23  ;;  %v3722_v14 = vld [vmem:[%s4847_s6 + $0x60] sm:$0xf] }
 0x202   :  { %v3723_v23 = vor.u32 %v3980_v16, %v3722_v14 }
 0x208   :  { %v1518_v27 = vpop.f32.mrf.mxu3 }
 0x209   :  { %v1519_v32 = vadd.f32 %v1518_v27, %v1505_v24  ;;  %v3727_v24 = vor.u32 %v3964_v17, %v3724_v18  ;;  %v3967_v27 = vld [vmem:[%s4847_s6 + $0x7c] sm:$0xf]  ;;  %v4637_v18 = vld [vmem:[%s4848_s7 + $0x8] sm:$0xff] }
 0x20a   :  { %v3751_v34 = vor.u32 %v3967_v27, %v3748_v28 }
 0x20b   :  { %v4437_v36 = vpack.c.bf16 %v1519_v32, %v1517_v31  ;;  %v3966_v31 = vld [vmem:[%s4847_s6 + $0x74] sm:$0xf] }
 0x20c   :  { %v3740_v32 = vld [vmem:[%s4847_s6 + $0xf0] sm:$0xf0] }
 0x20d   :  { %3752 = vmatmul.msk.bf16.vlgmr.msra.gmra.mxu0 %vm1786_vm1, %v4437_v36  ;;  %3753 = vmatmul.msk.bf16.vlgmr.msra.gmra.mxu1 %vm1786_vm1, %v4437_v36 }
 0x20e   :  { %3754 = vmatmul.msk.bf16.vlgmr.msra.gmra.mxu2 %vm1786_vm1, %v4437_v36  ;;  %3755 = vmatmul.msk.bf16.vlgmr.msra.gmra.mxu3 %vm1786_vm1, %v4437_v36 }
 0x20f   :  { %1937 = vmatpush.bf16.msra.mxu2 %v3667_v37  ;;  %1951 = vmatpush.bf16.msra.mxu3 %v3671_v38  ;;  %v3743_v37 = vor.u32 %v3966_v31, %v3740_v32  ;;  %v4626_v38 = vld [vmem:[%s4848_s7] sm:$0xff] }
 0x210   :  { %1909 = vmatpush.bf16.msra.mxu0 %v3659_v39  ;;  %1923 = vmatpush.bf16.msra.mxu1 %v3663_v40  ;;  %v1562_v39 = vperm.slane %v4626_v38, 0  ;;  %v1563_v40 = vperm.slane %v4626_v38, 1  ;;  %v1564_v46 = vperm.slane %v4626_v38, 2  ;;  %v1565_v47 = vperm.slane %v4626_v38, 3 }
 0x211   :  { %v1566_v3 = vperm.slane %v4626_v38, 4  ;;  %v1567_v6 = vperm.slane %v4626_v38, 5  ;;  %v1569_v29 = vperm.slane %v4626_v38, 7 }
 0x21d   :  { %3756 = vmatmul.msk.bf16.vlgmr.msrb.gmra.mxu0 %vm1786_vm1, %v4437_v36  ;;  %3757 = vmatmul.msk.bf16.vlgmr.msrb.gmra.mxu1 %vm1786_vm1, %v4437_v36 }
 0x21e   :  { %3758 = vmatmul.msk.bf16.vlgmr.msrb.gmra.mxu2 %vm1786_vm1, %v4437_v36  ;;  %3759 = vmatmul.msk.bf16.vlgmr.msrb.gmra.mxu3 %vm1786_vm1, %v4437_v36 }
 0x21f   :  { %1993 = vmatpush.bf16.msrb.mxu2 %v3683_v49  ;;  %2007 = vmatpush.bf16.msrb.mxu3 %v3687_v50 }
 0x220   :  { %1965 = vmatpush.bf16.msrb.mxu0 %v3675_v52  ;;  %1979 = vmatpush.bf16.msrb.mxu1 %v3679_v53 }
 0x22d   :  { %3760 = vmatmul.msk.bf16.vlgmr.msra.gmra.mxu0 %vm1786_vm1, %v4437_v36  ;;  %3761 = vmatmul.msk.bf16.vlgmr.msra.gmra.mxu1 %vm1786_vm1, %v4437_v36 }
 0x22e   :  { %3762 = vmatmul.msk.bf16.vlgmr.msra.gmra.mxu2 %vm1786_vm1, %v4437_v36  ;;  %3763 = vmatmul.msk.bf16.vlgmr.msra.gmra.mxu3 %vm1786_vm1, %v4437_v36 }
 0x22f   :  { %2049 = vmatpush.bf16.msra.mxu2 %v3699_v62  ;;  %2063 = vmatpush.bf16.msra.mxu3 %v3703_v63 }
 0x230   :  { %2021 = vmatpush.bf16.msra.mxu0 %v3691_v0  ;;  %2035 = vmatpush.bf16.msra.mxu1 %v3695_v1 }
 0x23d   :  { %3764 = vmatmul.msk.bf16.vlgmr.msrb.gmra.mxu0 %vm1786_vm1, %v4437_v36  ;;  %3765 = vmatmul.msk.bf16.vlgmr.msrb.gmra.mxu1 %vm1786_vm1, %v4437_v36 }
 0x23e   :  { %3766 = vmatmul.msk.bf16.vlgmr.msrb.gmra.mxu2 %vm1786_vm1, %v4437_v36  ;;  %3767 = vmatmul.msk.bf16.vlgmr.msrb.gmra.mxu3 %vm1786_vm1, %v4437_v36 }
 0x23f   :  { %2105 = vmatpush.bf16.msrb.mxu2 %v3715_v56  ;;  %2119 = vmatpush.bf16.msrb.mxu3 %v3719_v15 }
 0x240   :  { %2077 = vmatpush.bf16.msrb.mxu0 %v3707_v21  ;;  %2091 = vmatpush.bf16.msrb.mxu1 %v3711_v9 }
 0x24d   :  { %3768 = vmatmul.msk.bf16.vlgmr.msra.gmra.mxu0 %vm1786_vm1, %v4437_v36  ;;  %3769 = vmatmul.msk.bf16.vlgmr.msra.gmra.mxu1 %vm1786_vm1, %v4437_v36 }
 0x24e   :  { %3770 = vmatmul.msk.bf16.vlgmr.msra.gmra.mxu2 %vm1786_vm1, %v4437_v36  ;;  %3771 = vmatmul.msk.bf16.vlgmr.msra.gmra.mxu3 %vm1786_vm1, %v4437_v36 }
 0x24f   :  { %2161 = vmatpush.bf16.msra.mxu2 %v3731_v19  ;;  %2175 = vmatpush.bf16.msra.mxu3 %v3735_v20 }
 0x250   :  { %2133 = vmatpush.bf16.msra.mxu0 %v3723_v23  ;;  %2147 = vmatpush.bf16.msra.mxu1 %v3727_v24  ;;  %v1568_v24 = vperm.slane %v4626_v38, 6 }
 0x25d   :  { %3772 = vmatmul.msk.bf16.vlgmr.msrb.gmra.mxu0 %vm1786_vm1, %v4437_v36  ;;  %3773 = vmatmul.msk.bf16.vlgmr.msrb.gmra.mxu1 %vm1786_vm1, %v4437_v36 }
 0x25e   :  { %3774 = vmatmul.msk.bf16.vlgmr.msrb.gmra.mxu2 %vm1786_vm1, %v4437_v36  ;;  %3775 = vmatmul.msk.bf16.vlgmr.msrb.gmra.mxu3 %vm1786_vm1, %v4437_v36 }
 0x25f   :  { %2217 = vmatpush.bf16.msrb.mxu2 %v3747_v33  ;;  %2231 = vmatpush.bf16.msrb.mxu3 %v3751_v34  ;;  %v1570_v33 = vperm.slane %v4637_v18, 0 }
 0x260   :  { %2189 = vmatpush.bf16.msrb.mxu0 %v3739_v35  ;;  %2203 = vmatpush.bf16.msrb.mxu1 %v3743_v37 }
 0x26d   :  { %3776 = vmatmul.msk.bf16.vlgmr.msra.gmra.mxu0 %vm1786_vm1, %v4437_v36  ;;  %3777 = vmatmul.msk.bf16.vlgmr.msra.gmra.mxu1 %vm1786_vm1, %v4437_v36 }
 0x26e   :  { %3778 = vmatmul.msk.bf16.vlgmr.msra.gmra.mxu2 %vm1786_vm1, %v4437_v36  ;;  %3779 = vmatmul.msk.bf16.vlgmr.msra.gmra.mxu3 %vm1786_vm1, %v4437_v36 }
 0x27d   :  { %3780 = vmatmul.msk.bf16.vlgmr.msrb.gmra.mxu0 %vm1786_vm1, %v4437_v36  ;;  %3781 = vmatmul.msk.bf16.vlgmr.msrb.gmra.mxu1 %vm1786_vm1, %v4437_v36 }
 0x27e   :  { %3782 = vmatmul.msk.bf16.vlgmr.msrb.gmra.mxu2 %vm1786_vm1, %v4437_v36  ;;  %3783 = vmatmul.msk.bf16.vlgmr.msrb.gmra.mxu3 %vm1786_vm1, %v4437_v36 }
 0x28a   :  { %v1799_v41 = vpop.f32.mrf.mxu0  ;;  %v1813_v42 = vpop.f32.mrf.mxu1 }
 0x28b   :  { %v1800_v43 = vadd.f32 %v1799_v41, %v1562_v39  ;;  %v1814_v44 = vadd.f32 %v1813_v42, %v1563_v40  ;;  %v1571_v41 = vperm.slane %v4637_v18, 1 }
 0x28d   :  { %v2238_v45 = vpack.c.bf16 %v1814_v44, %v1800_v43 }
 0x28f   :  { %v2270_v48 = vunpack.c.l.bf16 %v2238_v45  ;;  %v2271_v36 = vunpack.c.h.bf16 %v2238_v45 }
 0x291   :  { %v2334_v49 = vmul.f32 0.5, %v2270_v48  ;;  %v2335_v50 = vmul.f32 0.5, %v2271_v36  ;;  %v1827_v52 = vpop.f32.mrf.mxu2  ;;  %v1841_v53 = vpop.f32.mrf.mxu3 }
 0x292   :  { %v1828_v54 = vadd.f32 %v1827_v52, %v1564_v46  ;;  %v1842_v22 = vadd.f32 %v1841_v53, %v1565_v47  ;;  %v1801_v55 = vpop.f32.mrf.mxu0  ;;  %v1815_v57 = vpop.f32.mrf.mxu1 }
 0x293   :  { %v2398_v58 = vpack.c.bf16 %v2335_v50, %v2334_v49  ;;  %v1802_v59 = vadd.f32 %v1801_v55, %v1562_v39  ;;  %v1816_v60 = vadd.f32 %v1815_v57, %v1563_v40 }
 0x294   :  { %v2239_v61 = vpack.c.bf16 %v1842_v22, %v1828_v54 }
 0x295   :  { %v2430_v62 = vunpack.c.l.bf16 %v2398_v58  ;;  %v2431_v63 = vunpack.c.h.bf16 %v2398_v58  ;;  %v2254_v0 = vpack.c.bf16 %v1816_v60, %v1802_v59 }
 0x296   :  { %v2272_v1 = vunpack.c.l.bf16 %v2239_v61  ;;  %v2273_v2 = vunpack.c.h.bf16 %v2239_v61 }
 0x297   :  { %3988 = vtanh.f32 %v2430_v62  ;;  %v2302_v4 = vunpack.c.l.bf16 %v2254_v0  ;;  %v2303_v5 = vunpack.c.h.bf16 %v2254_v0 }
 0x298   :  { %3990 = vtanh.f32 %v2431_v63  ;;  %v2336_v7 = vmul.f32 0.5, %v2272_v1  ;;  %v2337_v8 = vmul.f32 0.5, %v2273_v2  ;;  %v1572_v1 = vperm.slane %v4637_v18, 2 }
 0x299   :  { %v2366_v51 = vmul.f32 0.5, %v2302_v4  ;;  %v2367_v56 = vmul.f32 0.5, %v2303_v5  ;;  %v1829_v15 = vpop.f32.mrf.mxu2  ;;  %v1843_v21 = vpop.f32.mrf.mxu3  ;;  %v1573_v2 = vperm.slane %v4637_v18, 3 }
 0x29a   :  { %v2399_v9 = vpack.c.bf16 %v2337_v8, %v2336_v7  ;;  %v1830_v10 = vadd.f32 %v1829_v15, %v1564_v46  ;;  %v1844_v11 = vadd.f32 %v1843_v21, %v1565_v47  ;;  %v1855_v12 = vpop.f32.mrf.mxu0  ;;  %v1869_v13 = vpop.f32.mrf.mxu1 }
 0x29b   :  { %v2414_v14 = vpack.c.bf16 %v2367_v56, %v2366_v51  ;;  %v1856_v16 = vadd.f32 %v1855_v12, %v1566_v3  ;;  %v1870_v17 = vadd.f32 %v1869_v13, %v1567_v6 }
 0x29c   :  { %v2432_v19 = vunpack.c.l.bf16 %v2399_v9  ;;  %v2433_v20 = vunpack.c.h.bf16 %v2399_v9  ;;  %v2255_v23 = vpack.c.bf16 %v1844_v11, %v1830_v10 }
 0x29d   :  { %v3989_v25 = vpop.eup %3988  ;;  %v2462_v26 = vunpack.c.l.bf16 %v2414_v14  ;;  %v2463_v27 = vunpack.c.h.bf16 %v2414_v14  ;;  %v2240_v28 = vpack.c.bf16 %v1870_v17, %v1856_v16 }
 0x29e   :  { %v3991_v30 = vpop.eup %3990  ;;  %3992 = vtanh.f32 %v2432_v19  ;;  %v2304_v31 = vunpack.c.l.bf16 %v2255_v23  ;;  %v2305_v32 = vunpack.c.h.bf16 %v2255_v23 }
 0x29f   :  { %v2558_v34 = vpack.c.bf16 %v3991_v30, %v3989_v25  ;;  %3994 = vtanh.f32 %v2433_v20  ;;  %v2274_v35 = vunpack.c.l.bf16 %v2240_v28  ;;  %v2275_v37 = vunpack.c.h.bf16 %v2240_v28 }
 0x2a0   :  { %3996 = vtanh.f32 %v2462_v26  ;;  %v2368_v39 = vmul.f32 0.5, %v2304_v31  ;;  %v2369_v40 = vmul.f32 0.5, %v2305_v32 }
 0x2a1   :  { %v2590_v42 = vunpack.c.l.bf16 %v2558_v34  ;;  %v2591_v43 = vunpack.c.h.bf16 %v2558_v34  ;;  %3998 = vtanh.f32 %v2463_v27  ;;  %v2338_v44 = vmul.f32 0.5, %v2274_v35  ;;  %v1883_v45 = vpop.f32.mrf.mxu2  ;;  %v1897_v46 = vpop.f32.mrf.mxu3 }
 0x2a2   :  { %v2415_v47 = vpack.c.bf16 %v2369_v40, %v2368_v39  ;;  %v2339_v48 = vmul.f32 0.5, %v2275_v37  ;;  %v1884_v36 = vadd.f32 %v1883_v45, %v1568_v24  ;;  %v1898_v49 = vadd.f32 %v1897_v46, %v1569_v29  ;;  %v1857_v50 = vpop.f32.mrf.mxu0  ;;  %v1871_v52 = vpop.f32.mrf.mxu1 }
 0x2a3   :  { %v2654_v53 = vadd.f32 1.0, %v2590_v42  ;;  %v2655_v54 = vadd.f32 1.0, %v2591_v43  ;;  %v1858_v22 = vadd.f32 %v1857_v50, %v1566_v3  ;;  %v1872_v55 = vadd.f32 %v1871_v52, %v1567_v6 }
 0x2a4   :  { %v3993_v57 = vpop.eup %3992  ;;  %v2464_v58 = vunpack.c.l.bf16 %v2415_v47  ;;  %v2465_v59 = vunpack.c.h.bf16 %v2415_v47  ;;  %v2400_v60 = vpack.c.bf16 %v2339_v48, %v2338_v44  ;;  %v2241_v61 = vpack.c.bf16 %v1898_v49, %v1884_v36 }
 0x2a5   :  { %v3995_v62 = vpop.eup %3994  ;;  %v2718_v63 = vpack.c.bf16 %v2655_v54, %v2654_v53  ;;  %v2256_v0 = vpack.c.bf16 %v1872_v55, %v1858_v22 }
 0x2a6   :  { %v3997_v4 = vpop.eup %3996  ;;  %v2559_v5 = vpack.c.bf16 %v3995_v62, %v3993_v57  ;;  %4000 = vtanh.f32 %v2464_v58  ;;  %v2434_v7 = vunpack.c.l.bf16 %v2400_v60  ;;  %v2435_v8 = vunpack.c.h.bf16 %v2400_v60 }
 0x2a7   :  { %v3999_v51 = vpop.eup %3998  ;;  %v2750_v3 = vunpack.c.l.bf16 %v2718_v63  ;;  %v2751_v6 = vunpack.c.h.bf16 %v2718_v63  ;;  %4002 = vtanh.f32 %v2465_v59  ;;  %v2276_v56 = vunpack.c.l.bf16 %v2241_v61 }
 0x2a8   :  { %v2592_v15 = vunpack.c.l.bf16 %v2559_v5  ;;  %v2593_v21 = vunpack.c.h.bf16 %v2559_v5  ;;  %v2574_v9 = vpack.c.bf16 %v3999_v51, %v3997_v4  ;;  %4004 = vtanh.f32 %v2434_v7 }
 0x2a9   :  { %v2814_v10 = vmul.f32 0.5, %v2750_v3  ;;  %v2815_v11 = vmul.f32 0.5, %v2751_v6  ;;  %4006 = vtanh.f32 %v2435_v8  ;;  %v2277_v12 = vunpack.c.h.bf16 %v2241_v61  ;;  %v1885_v13 = vpop.f32.mrf.mxu2  ;;  %v1899_v20 = vpop.f32.mrf.mxu3 }
 0x2aa   :  { %v2656_v14 = vadd.f32 1.0, %v2592_v15  ;;  %v2657_v16 = vadd.f32 1.0, %v2593_v21  ;;  %v2622_v17 = vunpack.c.l.bf16 %v2574_v9  ;;  %v2623_v19 = vunpack.c.h.bf16 %v2574_v9  ;;  %v1911_v60 = vpop.f32.mrf.mxu0  ;;  %v1925_v61 = vpop.f32.mrf.mxu1 }
 0x2ab   :  { %v2878_v23 = vpack.c.bf16 %v2815_v11, %v2814_v10  ;;  %v2340_v25 = vmul.f32 0.5, %v2276_v56  ;;  %v2341_v26 = vmul.f32 0.5, %v2277_v12  ;;  %v2306_v27 = vunpack.c.l.bf16 %v2256_v0 }
 0x2ac   :  { %v4001_v28 = vpop.eup %4000  ;;  %v2719_v30 = vpack.c.bf16 %v2657_v16, %v2656_v14  ;;  %v2686_v31 = vadd.f32 1.0, %v2622_v17  ;;  %v2687_v32 = vadd.f32 1.0, %v2623_v19  ;;  %v2307_v34 = vunpack.c.h.bf16 %v2256_v0 }
 0x2ad   :  { %v4003_v35 = vpop.eup %4002  ;;  %2910 = vst [vmem:[%s4849_s8] sm:$0xff] %v2878_v23  ;;  %v2401_v37 = vpack.c.bf16 %v2341_v26, %v2340_v25  ;;  %v2370_v39 = vmul.f32 0.5, %v2306_v27  ;;  %v1886_v40 = vadd.f32 %v1885_v13, %v1568_v24  ;;  %v1900_v42 = vadd.f32 %v1899_v20, %v1569_v29 }
 0x2ae   :  { %v4005_v43 = vpop.eup %4004  ;;  %v2752_v44 = vunpack.c.l.bf16 %v2719_v30  ;;  %v2753_v45 = vunpack.c.h.bf16 %v2719_v30  ;;  %v2734_v46 = vpack.c.bf16 %v2687_v32, %v2686_v31  ;;  %v2575_v47 = vpack.c.bf16 %v4003_v35, %v4001_v28 }
 0x2af   :  { %v4007_v48 = vpop.eup %4006  ;;  %v2436_v36 = vunpack.c.l.bf16 %v2401_v37  ;;  %v2437_v49 = vunpack.c.h.bf16 %v2401_v37  ;;  %v2371_v50 = vmul.f32 0.5, %v2307_v34  ;;  %v2257_v52 = vpack.c.bf16 %v1900_v42, %v1886_v40 }
 0x2b0   :  { %v2816_v53 = vmul.f32 0.5, %v2752_v44  ;;  %v2817_v54 = vmul.f32 0.5, %v2753_v45  ;;  %v2782_v22 = vunpack.c.l.bf16 %v2734_v46  ;;  %v2783_v55 = vunpack.c.h.bf16 %v2734_v46 }
 0x2b1   :  { %v2624_v57 = vunpack.c.l.bf16 %v2575_v47  ;;  %v2625_v58 = vunpack.c.h.bf16 %v2575_v47  ;;  %v2560_v24 = vpack.c.bf16 %v4007_v48, %v4005_v43  ;;  %4008 = vtanh.f32 %v2436_v36  ;;  %v1939_v5 = vpop.f32.mrf.mxu2  ;;  %v1953_v6 = vpop.f32.mrf.mxu3 }
 0x2b2   :  { %v2879_v38 = vpack.c.bf16 %v2817_v54, %v2816_v53  ;;  %v2846_v29 = vmul.f32 0.5, %v2782_v22  ;;  %v2847_v59 = vmul.f32 0.5, %v2783_v55  ;;  %4010 = vtanh.f32 %v2437_v49  ;;  %v1913_v47 = vpop.f32.mrf.mxu0  ;;  %v1927_v48 = vpop.f32.mrf.mxu1 }
 0x2b3   :  { %v2688_v62 = vadd.f32 1.0, %v2624_v57  ;;  %v2689_v63 = vadd.f32 1.0, %v2625_v58  ;;  %v2594_v0 = vunpack.c.l.bf16 %v2560_v24  ;;  %v2595_v4 = vunpack.c.h.bf16 %v2560_v24 }
 0x2b4   :  { %2911 = vst [vmem:[%s4849_s8 + $0x8] sm:$0xff] %v2879_v38  ;;  %v2894_v7 = vpack.c.bf16 %v2847_v59, %v2846_v29  ;;  %v2416_v8 = vpack.c.bf16 %v2371_v50, %v2370_v39  ;;  %v2308_v51 = vunpack.c.l.bf16 %v2257_v52  ;;  %v2309_v3 = vunpack.c.h.bf16 %v2257_v52 }
 0x2b5   :  { %v2735_v56 = vpack.c.bf16 %v2689_v63, %v2688_v62  ;;  %v2658_v15 = vadd.f32 1.0, %v2594_v0  ;;  %v2659_v21 = vadd.f32 1.0, %v2595_v4  ;;  %v1912_v9 = vadd.f32 %v1911_v60, %v1570_v33 }
 0x2b6   :  { %2926 = vst [vmem:[%s4849_s8 + $0x80] sm:$0xff] %v2894_v7  ;;  %v2466_v10 = vunpack.c.l.bf16 %v2416_v8  ;;  %v2467_v11 = vunpack.c.h.bf16 %v2416_v8  ;;  %v2372_v12 = vmul.f32 0.5, %v2308_v51  ;;  %v2373_v13 = vmul.f32 0.5, %v2309_v3 }
 0x2b7   :  { %v4009_v14 = vpop.eup %4008  ;;  %v2784_v16 = vunpack.c.l.bf16 %v2735_v56  ;;  %v2785_v17 = vunpack.c.h.bf16 %v2735_v56  ;;  %v2720_v19 = vpack.c.bf16 %v2659_v21, %v2658_v15  ;;  %v1926_v20 = vadd.f32 %v1925_v61, %v1571_v41 }
 0x2b8   :  { %v4011_v23 = vpop.eup %4010  ;;  %4012 = vtanh.f32 %v2466_v10  ;;  %v2417_v25 = vpack.c.bf16 %v2373_v13, %v2372_v12  ;;  %v1940_v26 = vadd.f32 %v1939_v5, %v1572_v1  ;;  %v1954_v27 = vadd.f32 %v1953_v6, %v1573_v2 }
 0x2b9   :  { %v2848_v28 = vmul.f32 0.5, %v2784_v16  ;;  %v2849_v30 = vmul.f32 0.5, %v2785_v17  ;;  %v2754_v31 = vunpack.c.l.bf16 %v2720_v19  ;;  %v2755_v32 = vunpack.c.h.bf16 %v2720_v19  ;;  %v1941_v52 = vpop.f32.mrf.mxu2  ;;  %v1955_v58 = vpop.f32.mrf.mxu3 }
 0x2ba   :  { %v2561_v34 = vpack.c.bf16 %v4011_v23, %v4009_v14  ;;  %4014 = vtanh.f32 %v2467_v11  ;;  %v2468_v35 = vunpack.c.l.bf16 %v2417_v25  ;;  %v2469_v37 = vunpack.c.h.bf16 %v2417_v25 }
 0x2bb   :  { %v2895_v39 = vpack.c.bf16 %v2849_v30, %v2848_v28  ;;  %v2818_v40 = vmul.f32 0.5, %v2754_v31  ;;  %v2819_v42 = vmul.f32 0.5, %v2755_v32  ;;  %v2242_v43 = vpack.c.bf16 %v1926_v20, %v1912_v9  ;;  %v1981_v32 = vpop.f32.mrf.mxu1 }
 0x2bc   :  { %v2596_v44 = vunpack.c.l.bf16 %v2561_v34  ;;  %v2597_v45 = vunpack.c.h.bf16 %v2561_v34  ;;  %4016 = vtanh.f32 %v2468_v35  ;;  %v2243_v46 = vpack.c.bf16 %v1954_v27, %v1940_v26  ;;  %v1967_v27 = vpop.f32.mrf.mxu0 }
 0x2bd   :  { %2927 = vst [vmem:[%s4849_s8 + $0x88] sm:$0xff] %v2895_v39  ;;  %v2880_v36 = vpack.c.bf16 %v2819_v42, %v2818_v40  ;;  %4018 = vtanh.f32 %v2469_v37  ;;  %v2278_v49 = vunpack.c.l.bf16 %v2242_v43  ;;  %v2279_v50 = vunpack.c.h.bf16 %v2242_v43 }
 0x2be   :  { %v4013_v53 = vpop.eup %4012  ;;  %v2660_v54 = vadd.f32 1.0, %v2596_v44  ;;  %v2661_v22 = vadd.f32 1.0, %v2597_v45  ;;  %v2280_v55 = vunpack.c.l.bf16 %v2243_v46  ;;  %v2281_v57 = vunpack.c.h.bf16 %v2243_v46 }
 0x2bf   :  { %2912 = vst [vmem:[%s4849_s8 + $0x10] sm:$0xff] %v2880_v36  ;;  %v2342_v24 = vmul.f32 0.5, %v2278_v49  ;;  %v2343_v38 = vmul.f32 0.5, %v2279_v50  ;;  %v1914_v29 = vadd.f32 %v1913_v47, %v1570_v33  ;;  %v1928_v59 = vadd.f32 %v1927_v48, %v1571_v41 }
 0x2c0   :  { %v4015_v60 = vpop.eup %4014  ;;  %v2721_v61 = vpack.c.bf16 %v2661_v22, %v2660_v54  ;;  %v2344_v62 = vmul.f32 0.5, %v2280_v55  ;;  %v2345_v63 = vmul.f32 0.5, %v2281_v57  ;;  %v1942_v0 = vadd.f32 %v1941_v52, %v1572_v1 }
 0x2c1   :  { %v2576_v4 = vpack.c.bf16 %v4015_v60, %v4013_v53  ;;  %v2402_v5 = vpack.c.bf16 %v2343_v38, %v2342_v24  ;;  %v2258_v7 = vpack.c.bf16 %v1928_v59, %v1914_v29  ;;  %v1956_v8 = vadd.f32 %v1955_v58, %v1573_v2  ;;  %v1995_v40 = vpop.f32.mrf.mxu2 }
 0x2c2   :  { %v4017_v51 = vpop.eup %4016  ;;  %v2756_v3 = vunpack.c.l.bf16 %v2721_v61  ;;  %v2757_v6 = vunpack.c.h.bf16 %v2721_v61  ;;  %v2403_v33 = vpack.c.bf16 %v2345_v63, %v2344_v62  ;;  %v1574_v56 = vperm.slane %v4637_v18, 4 }
 0x2c3   :  { %v4019_v41 = vpop.eup %4018  ;;  %v2626_v15 = vunpack.c.l.bf16 %v2576_v4  ;;  %v2627_v21 = vunpack.c.h.bf16 %v2576_v4  ;;  %v2438_v9 = vunpack.c.l.bf16 %v2402_v5  ;;  %v2439_v10 = vunpack.c.h.bf16 %v2402_v5 }
 0x2c4   :  { %v2820_v11 = vmul.f32 0.5, %v2756_v3  ;;  %v2821_v12 = vmul.f32 0.5, %v2757_v6  ;;  %v2577_v1 = vpack.c.bf16 %v4019_v41, %v4017_v51  ;;  %v2440_v13 = vunpack.c.l.bf16 %v2403_v33  ;;  %v2009_v41 = vpop.f32.mrf.mxu3 }
 0x2c5   :  { %v2690_v14 = vadd.f32 1.0, %v2626_v15  ;;  %v2691_v16 = vadd.f32 1.0, %v2627_v21  ;;  %4020 = vtanh.f32 %v2438_v9  ;;  %v2441_v17 = vunpack.c.h.bf16 %v2403_v33  ;;  %v1969_v15 = vpop.f32.mrf.mxu0 }
 0x2c6   :  { %v2881_v2 = vpack.c.bf16 %v2821_v12, %v2820_v11  ;;  %v2628_v19 = vunpack.c.l.bf16 %v2577_v1  ;;  %v2629_v20 = vunpack.c.h.bf16 %v2577_v1  ;;  %4022 = vtanh.f32 %v2439_v10  ;;  %v1983_v11 = vpop.f32.mrf.mxu1 }
 0x2c7   :  { %v2736_v23 = vpack.c.bf16 %v2691_v16, %v2690_v14  ;;  %4024 = vtanh.f32 %v2440_v13  ;;  %v2310_v25 = vunpack.c.l.bf16 %v2258_v7  ;;  %v2311_v26 = vunpack.c.h.bf16 %v2258_v7 }
 0x2c8   :  { %2913 = vst [vmem:[%s4849_s8 + $0x18] sm:$0xff] %v2881_v2  ;;  %v2692_v28 = vadd.f32 1.0, %v2628_v19  ;;  %v2693_v30 = vadd.f32 1.0, %v2629_v20  ;;  %4026 = vtanh.f32 %v2441_v17  ;;  %v2259_v31 = vpack.c.bf16 %v1956_v8, %v1942_v0 }
 0x2c9   :  { %v2786_v34 = vunpack.c.l.bf16 %v2736_v23  ;;  %v2787_v35 = vunpack.c.h.bf16 %v2736_v23  ;;  %v2374_v37 = vmul.f32 0.5, %v2310_v25  ;;  %v2375_v39 = vmul.f32 0.5, %v2311_v26  ;;  %v4699_v14 = vpop.f32.mrf.mxu2 }
 0x2ca   :  { %v2737_v42 = vpack.c.bf16 %v2693_v30, %v2692_v28  ;;  %v2312_v43 = vunpack.c.l.bf16 %v2259_v31  ;;  %v2313_v44 = vunpack.c.h.bf16 %v2259_v31  ;;  %v1968_v45 = vadd.f32 %v1967_v27, %v1574_v56 }
 0x2cb   :  { %v4021_v46 = vpop.eup %4020  ;;  %v2850_v47 = vmul.f32 0.5, %v2786_v34  ;;  %v2851_v48 = vmul.f32 0.5, %v2787_v35  ;;  %v2418_v36 = vpack.c.bf16 %v2375_v39, %v2374_v37  ;;  %v1575_v49 = vperm.slane %v4637_v18, 5 }
 0x2cc   :  { %v4023_v50 = vpop.eup %4022  ;;  %v2788_v52 = vunpack.c.l.bf16 %v2737_v42  ;;  %v2789_v53 = vunpack.c.h.bf16 %v2737_v42  ;;  %v2376_v54 = vmul.f32 0.5, %v2312_v43  ;;  %v2377_v22 = vmul.f32 0.5, %v2313_v44 }
 0x2cd   :  { %v4025_v55 = vpop.eup %4024  ;;  %v2896_v57 = vpack.c.bf16 %v2851_v48, %v2850_v47  ;;  %v2562_v58 = vpack.c.bf16 %v4023_v50, %v4021_v46  ;;  %v2470_v24 = vunpack.c.l.bf16 %v2418_v36  ;;  %v2471_v38 = vunpack.c.h.bf16 %v2418_v36 }
 0x2ce   :  { %v4027_v29 = vpop.eup %4026  ;;  %v2852_v59 = vmul.f32 0.5, %v2788_v52  ;;  %v2853_v60 = vmul.f32 0.5, %v2789_v53  ;;  %v2419_v61 = vpack.c.bf16 %v2377_v22, %v2376_v54  ;;  %v1982_v62 = vadd.f32 %v1981_v32, %v1575_v49 }
 0x2cf   :  { %2928 = vst [vmem:[%s4849_s8 + $0x90] sm:$0xff] %v2896_v57  ;;  %v2598_v63 = vunpack.c.l.bf16 %v2562_v58  ;;  %v2599_v0 = vunpack.c.h.bf16 %v2562_v58  ;;  %v2563_v4 = vpack.c.bf16 %v4027_v29, %v4025_v55  ;;  %4028 = vtanh.f32 %v2470_v24  ;;  %v2023_v24 = vpop.f32.mrf.mxu0 }
 0x2d0   :  { %v2897_v5 = vpack.c.bf16 %v2853_v60, %v2852_v59  ;;  %4030 = vtanh.f32 %v2471_v38  ;;  %v2472_v7 = vunpack.c.l.bf16 %v2419_v61  ;;  %v2473_v8 = vunpack.c.h.bf16 %v2419_v61  ;;  %v2037_v61 = vpop.f32.mrf.mxu1 }
 0x2d1   :  { %v2662_v51 = vadd.f32 1.0, %v2598_v63  ;;  %v2663_v3 = vadd.f32 1.0, %v2599_v0  ;;  %v2600_v6 = vunpack.c.l.bf16 %v2563_v4  ;;  %v2601_v33 = vunpack.c.h.bf16 %v2563_v4  ;;  %v2011_v4 = vpop.f32.mrf.mxu3 }
 0x2d2   :  { %2929 = vst [vmem:[%s4849_s8 + $0x98] sm:$0xff] %v2897_v5  ;;  %4032 = vtanh.f32 %v2472_v7  ;;  %v2244_v21 = vpack.c.bf16 %v1982_v62, %v1968_v45  ;;  %v1576_v9 = vperm.slane %v4637_v18, 6  ;;  %v1577_v10 = vperm.slane %v4637_v18, 7  ;;  %v2051_v5 = vpop.f32.mrf.mxu2 }
 0x2d3   :  { %v2722_v12 = vpack.c.bf16 %v2663_v3, %v2662_v51  ;;  %v2664_v1 = vadd.f32 1.0, %v2600_v6  ;;  %v2665_v13 = vadd.f32 1.0, %v2601_v33  ;;  %4034 = vtanh.f32 %v2473_v8  ;;  %v4716_v3 = vld [vmem:[%s4848_s7 + $0x10] sm:$0xff] }
 0x2d4   :  { %v2282_v16 = vunpack.c.l.bf16 %v2244_v21  ;;  %v2283_v17 = vunpack.c.h.bf16 %v2244_v21  ;;  %v1996_v2 = vadd.f32 %v1995_v40, %v1576_v9  ;;  %v2010_v19 = vadd.f32 %v2009_v41, %v1577_v10 }
 0x2d5   :  { %v4029_v20 = vpop.eup %4028  ;;  %v2758_v23 = vunpack.c.l.bf16 %v2722_v12  ;;  %v2759_v25 = vunpack.c.h.bf16 %v2722_v12  ;;  %v2723_v26 = vpack.c.bf16 %v2665_v13, %v2664_v1  ;;  %v1970_v27 = vadd.f32 %v1969_v15, %v1574_v56 }
 0x2d6   :  { %v4031_v28 = vpop.eup %4030  ;;  %v2346_v30 = vmul.f32 0.5, %v2282_v16  ;;  %v2347_v31 = vmul.f32 0.5, %v2283_v17  ;;  %v2245_v32 = vpack.c.bf16 %v2010_v19, %v1996_v2  ;;  %v1984_v34 = vadd.f32 %v1983_v11, %v1575_v49 }
 0x2d7   :  { %v2822_v35 = vmul.f32 0.5, %v2758_v23  ;;  %v2823_v37 = vmul.f32 0.5, %v2759_v25  ;;  %v2760_v39 = vunpack.c.l.bf16 %v2723_v26  ;;  %v2761_v42 = vunpack.c.h.bf16 %v2723_v26 }
 0x2d8   :  { %v4033_v40 = vpop.eup %4032  ;;  %v2578_v43 = vpack.c.bf16 %v4031_v28, %v4029_v20  ;;  %v2404_v44 = vpack.c.bf16 %v2347_v31, %v2346_v30  ;;  %v2284_v45 = vunpack.c.l.bf16 %v2245_v32  ;;  %v2285_v46 = vunpack.c.h.bf16 %v2245_v32 }
 0x2d9   :  { %v4035_v47 = vpop.eup %4034  ;;  %v2882_v48 = vpack.c.bf16 %v2823_v37, %v2822_v35  ;;  %v2824_v36 = vmul.f32 0.5, %v2760_v39  ;;  %v2825_v50 = vmul.f32 0.5, %v2761_v42  ;;  %v2260_v52 = vpack.c.bf16 %v1984_v34, %v1970_v27  ;;  %v2025_v35 = vpop.f32.mrf.mxu0 }
 0x2da   :  { %v2630_v56 = vunpack.c.l.bf16 %v2578_v43  ;;  %v2631_v53 = vunpack.c.h.bf16 %v2578_v43  ;;  %v2579_v54 = vpack.c.bf16 %v4035_v47, %v4033_v40  ;;  %v2442_v22 = vunpack.c.l.bf16 %v2404_v44  ;;  %v2039_v40 = vpop.f32.mrf.mxu1 }
 0x2db   :  { %2914 = vst [vmem:[%s4849_s8 + $0x20] sm:$0xff] %v2882_v48  ;;  %v2883_v49 = vpack.c.bf16 %v2825_v50, %v2824_v36  ;;  %v2443_v55 = vunpack.c.h.bf16 %v2404_v44  ;;  %v2348_v57 = vmul.f32 0.5, %v2284_v45  ;;  %v2349_v58 = vmul.f32 0.5, %v2285_v46  ;;  %v2065_v48 = vpop.f32.mrf.mxu3  ;;  %v2053_v36 = vpop.f32.mrf.mxu2 }
 0x2dc   :  { %v2694_v38 = vadd.f32 1.0, %v2630_v56  ;;  %v2695_v29 = vadd.f32 1.0, %v2631_v53  ;;  %v2632_v59 = vunpack.c.l.bf16 %v2579_v54  ;;  %v2633_v60 = vunpack.c.h.bf16 %v2579_v54 }
 0x2dd   :  { %2915 = vst [vmem:[%s4849_s8 + $0x28] sm:$0xff] %v2883_v49  ;;  %4036 = vtanh.f32 %v2442_v22  ;;  %v2405_v62 = vpack.c.bf16 %v2349_v58, %v2348_v57  ;;  %v2314_v63 = vunpack.c.l.bf16 %v2260_v52  ;;  %v2315_v0 = vunpack.c.h.bf16 %v2260_v52 }
 0x2de   :  { %v2738_v7 = vpack.c.bf16 %v2695_v29, %v2694_v38  ;;  %v2696_v8 = vadd.f32 1.0, %v2632_v59  ;;  %v2697_v51 = vadd.f32 1.0, %v2633_v60  ;;  %4038 = vtanh.f32 %v2443_v55 }
 0x2df   :  { %v2444_v6 = vunpack.c.l.bf16 %v2405_v62  ;;  %v2445_v33 = vunpack.c.h.bf16 %v2405_v62  ;;  %v2378_v41 = vmul.f32 0.5, %v2314_v63  ;;  %v2379_v15 = vmul.f32 0.5, %v2315_v0 }
 0x2e0   :  { %v2790_v21 = vunpack.c.l.bf16 %v2738_v7  ;;  %v2791_v11 = vunpack.c.h.bf16 %v2738_v7  ;;  %v2739_v12 = vpack.c.bf16 %v2697_v51, %v2696_v8  ;;  %v1998_v1 = vadd.f32 %v4699_v14, %v1576_v9 }
 0x2e1   :  { %4040 = vtanh.f32 %v2444_v6  ;;  %v2420_v13 = vpack.c.bf16 %v2379_v15, %v2378_v41  ;;  %v2012_v16 = vadd.f32 %v2011_v4, %v1577_v10  ;;  %v1578_v17 = vperm.slane %v4716_v3, 0 }
 0x2e2   :  { %v2854_v2 = vmul.f32 0.5, %v2790_v21  ;;  %v2855_v19 = vmul.f32 0.5, %v2791_v11  ;;  %v2792_v20 = vunpack.c.l.bf16 %v2739_v12  ;;  %v2793_v23 = vunpack.c.h.bf16 %v2739_v12 }
 0x2e3   :  { %v4037_v25 = vpop.eup %4036  ;;  %4042 = vtanh.f32 %v2445_v33  ;;  %v2474_v26 = vunpack.c.l.bf16 %v2420_v13  ;;  %v2475_v27 = vunpack.c.h.bf16 %v2420_v13  ;;  %v2261_v28 = vpack.c.bf16 %v2012_v16, %v1998_v1 }
 0x2e4   :  { %v4039_v30 = vpop.eup %4038  ;;  %v2898_v31 = vpack.c.bf16 %v2855_v19, %v2854_v2  ;;  %v2856_v32 = vmul.f32 0.5, %v2792_v20  ;;  %v2857_v9 = vmul.f32 0.5, %v2793_v23  ;;  %v2024_v14 = vadd.f32 %v2023_v24, %v1578_v17 }
 0x2e5   :  { %v2564_v34 = vpack.c.bf16 %v4039_v30, %v4037_v25  ;;  %4044 = vtanh.f32 %v2474_v26  ;;  %v2316_v18 = vunpack.c.l.bf16 %v2261_v28  ;;  %v2317_v10 = vunpack.c.h.bf16 %v2261_v28 }
 0x2e6   :  { %2930 = vst [vmem:[%s4849_s8 + $0xa0] sm:$0xff] %v2898_v31  ;;  %v2899_v37 = vpack.c.bf16 %v2857_v9, %v2856_v32  ;;  %4046 = vtanh.f32 %v2475_v27  ;;  %v1579_v39 = vperm.slane %v4716_v3, 1  ;;  %v1580_v42 = vperm.slane %v4716_v3, 2  ;;  %v2067_v27 = vpop.f32.mrf.mxu3 }
 0x2e7   :  { %v4041_v43 = vpop.eup %4040  ;;  %v2602_v44 = vunpack.c.l.bf16 %v2564_v34  ;;  %v2603_v45 = vunpack.c.h.bf16 %v2564_v34  ;;  %v2380_v46 = vmul.f32 0.5, %v2316_v18  ;;  %v2381_v47 = vmul.f32 0.5, %v2317_v10 }
 0x2e8   :  { %2931 = vst [vmem:[%s4849_s8 + $0xa8] sm:$0xff] %v2899_v37  ;;  %v2038_v50 = vadd.f32 %v2037_v61, %v1579_v39  ;;  %v2052_v52 = vadd.f32 %v2051_v5, %v1580_v42  ;;  %v1581_v56 = vperm.slane %v4716_v3, 3  ;;  %v2026_v53 = vadd.f32 %v2025_v35, %v1578_v17  ;;  %v2079_v35 = vpop.f32.mrf.mxu0 }
 0x2e9   :  { %v4043_v54 = vpop.eup %4042  ;;  %v2666_v22 = vadd.f32 1.0, %v2602_v44  ;;  %v2667_v49 = vadd.f32 1.0, %v2603_v45  ;;  %v2421_v55 = vpack.c.bf16 %v2381_v47, %v2380_v46  ;;  %v2040_v57 = vadd.f32 %v2039_v40, %v1579_v39  ;;  %v2093_v44 = vpop.f32.mrf.mxu1 }
 0x2ea   :  { %v2565_v58 = vpack.c.bf16 %v4043_v54, %v4041_v43  ;;  %v2246_v24 = vpack.c.bf16 %v2038_v50, %v2024_v14  ;;  %v2066_v38 = vadd.f32 %v2065_v48, %v1581_v56  ;;  %v4735_v29 = vadd.f32 %v2053_v36, %v1580_v42 }
 0x2eb   :  { %v4045_v59 = vpop.eup %4044  ;;  %v2724_v60 = vpack.c.bf16 %v2667_v49, %v2666_v22  ;;  %v2476_v62 = vunpack.c.l.bf16 %v2421_v55  ;;  %v2477_v61 = vunpack.c.h.bf16 %v2421_v55  ;;  %v2262_v63 = vpack.c.bf16 %v2040_v57, %v2026_v53 }
 0x2ec   :  { %v4047_v0 = vpop.eup %4046  ;;  %v2604_v4 = vunpack.c.l.bf16 %v2565_v58  ;;  %v2605_v5 = vunpack.c.h.bf16 %v2565_v58  ;;  %v2286_v7 = vunpack.c.l.bf16 %v2246_v24  ;;  %v2287_v8 = vunpack.c.h.bf16 %v2246_v24 }
 0x2ed   :  { %v2762_v51 = vunpack.c.l.bf16 %v2724_v60  ;;  %v2763_v6 = vunpack.c.h.bf16 %v2724_v60  ;;  %v2580_v33 = vpack.c.bf16 %v4047_v0, %v4045_v59  ;;  %4048 = vtanh.f32 %v2476_v62 }
 0x2ee   :  { %v2668_v41 = vadd.f32 1.0, %v2604_v4  ;;  %v2669_v15 = vadd.f32 1.0, %v2605_v5  ;;  %4050 = vtanh.f32 %v2477_v61  ;;  %v2350_v21 = vmul.f32 0.5, %v2286_v7  ;;  %v2107_v7 = vpop.f32.mrf.mxu2 }
 0x2ef   :  { %v2826_v11 = vmul.f32 0.5, %v2762_v51  ;;  %v2827_v12 = vmul.f32 0.5, %v2763_v6  ;;  %v2634_v1 = vunpack.c.l.bf16 %v2580_v33  ;;  %v2635_v13 = vunpack.c.h.bf16 %v2580_v33 }
 0x2f0   :  { %v2725_v16 = vpack.c.bf16 %v2669_v15, %v2668_v41  ;;  %v2351_v17 = vmul.f32 0.5, %v2287_v8  ;;  %v2247_v2 = vpack.c.bf16 %v2066_v38, %v2052_v52  ;;  %v2318_v19 = vunpack.c.l.bf16 %v2262_v63  ;;  %v2121_v8 = vpop.f32.mrf.mxu3 }
 0x2f1   :  { %v2884_v20 = vpack.c.bf16 %v2827_v12, %v2826_v11  ;;  %v2698_v23 = vadd.f32 1.0, %v2634_v1  ;;  %v2699_v25 = vadd.f32 1.0, %v2635_v13  ;;  %v2319_v26 = vunpack.c.h.bf16 %v2262_v63  ;;  %v2081_v11 = vpop.f32.mrf.mxu0 }
 0x2f2   :  { %v2764_v28 = vunpack.c.l.bf16 %v2725_v16  ;;  %v2765_v30 = vunpack.c.h.bf16 %v2725_v16  ;;  %v2406_v31 = vpack.c.bf16 %v2351_v17, %v2350_v21  ;;  %v2288_v32 = vunpack.c.l.bf16 %v2247_v2  ;;  %v2095_v17 = vpop.f32.mrf.mxu1 }
 0x2f3   :  { %v4049_v9 = vpop.eup %4048  ;;  %2916 = vst [vmem:[%s4849_s8 + $0x30] sm:$0xff] %v2884_v20  ;;  %v2740_v14 = vpack.c.bf16 %v2699_v25, %v2698_v23  ;;  %v2289_v34 = vunpack.c.h.bf16 %v2247_v2  ;;  %v2382_v18 = vmul.f32 0.5, %v2318_v19  ;;  %v2383_v10 = vmul.f32 0.5, %v2319_v26 }
 0x2f4   :  { %v4051_v37 = vpop.eup %4050  ;;  %v2828_v39 = vmul.f32 0.5, %v2764_v28  ;;  %v2829_v42 = vmul.f32 0.5, %v2765_v30  ;;  %v2446_v40 = vunpack.c.l.bf16 %v2406_v31  ;;  %v2447_v43 = vunpack.c.h.bf16 %v2406_v31 }
 0x2f5   :  { %v2794_v45 = vunpack.c.l.bf16 %v2740_v14  ;;  %v2795_v46 = vunpack.c.h.bf16 %v2740_v14  ;;  %v2581_v47 = vpack.c.bf16 %v4051_v37, %v4049_v9  ;;  %v2352_v48 = vmul.f32 0.5, %v2288_v32 }
 0x2f6   :  { %v2885_v36 = vpack.c.bf16 %v2829_v42, %v2828_v39  ;;  %4052 = vtanh.f32 %v2446_v40  ;;  %v2353_v50 = vmul.f32 0.5, %v2289_v34  ;;  %v2422_v52 = vpack.c.bf16 %v2383_v10, %v2382_v18 }
 0x2f7   :  { %v2858_v53 = vmul.f32 0.5, %v2794_v45  ;;  %v2859_v54 = vmul.f32 0.5, %v2795_v46  ;;  %v2636_v22 = vunpack.c.l.bf16 %v2581_v47  ;;  %v2637_v49 = vunpack.c.h.bf16 %v2581_v47 }
 0x2f8   :  { %2917 = vst [vmem:[%s4849_s8 + $0x38] sm:$0xff] %v2885_v36  ;;  %4054 = vtanh.f32 %v2447_v43  ;;  %v2407_v55 = vpack.c.bf16 %v2353_v50, %v2352_v48  ;;  %v2478_v57 = vunpack.c.l.bf16 %v2422_v52  ;;  %v2479_v58 = vunpack.c.h.bf16 %v2422_v52 }
 0x2f9   :  { %v2900_v24 = vpack.c.bf16 %v2859_v54, %v2858_v53  ;;  %v2700_v38 = vadd.f32 1.0, %v2636_v22  ;;  %v2701_v59 = vadd.f32 1.0, %v2637_v49  ;;  %v2068_v60 = vadd.f32 %v2067_v27, %v1581_v56 }
 0x2fa   :  { %v2448_v62 = vunpack.c.l.bf16 %v2407_v55  ;;  %v2449_v61 = vunpack.c.h.bf16 %v2407_v55  ;;  %4056 = vtanh.f32 %v2478_v57  ;;  %v1582_v63 = vperm.slane %v4716_v3, 4 }
 0x2fb   :  { %2932 = vst [vmem:[%s4849_s8 + $0xb0] sm:$0xff] %v2900_v24  ;;  %v2741_v0 = vpack.c.bf16 %v2701_v59, %v2700_v38  ;;  %4058 = vtanh.f32 %v2479_v58  ;;  %v2263_v4 = vpack.c.bf16 %v2068_v60, %v4735_v29  ;;  %v1583_v5 = vperm.slane %v4716_v3, 5 }
 0x2fc   :  { %v4053_v51 = vpop.eup %4052  ;;  %4060 = vtanh.f32 %v2448_v62  ;;  %v2080_v56 = vadd.f32 %v2079_v35, %v1582_v63  ;;  %v1584_v6 = vperm.slane %v4716_v3, 6  ;;  %v1585_v33 = vperm.slane %v4716_v3, 7 }
 0x2fd   :  { %v2796_v41 = vunpack.c.l.bf16 %v2741_v0  ;;  %v2797_v15 = vunpack.c.h.bf16 %v2741_v0  ;;  %4062 = vtanh.f32 %v2449_v61  ;;  %v2320_v21 = vunpack.c.l.bf16 %v2263_v4  ;;  %v2109_v61 = vpop.f32.mrf.mxu2 }
 0x2fe   :  { %v4055_v12 = vpop.eup %4054  ;;  %v2321_v1 = vunpack.c.h.bf16 %v2263_v4  ;;  %v2094_v13 = vadd.f32 %v2093_v44, %v1583_v5  ;;  %v2108_v29 = vadd.f32 %v2107_v7, %v1584_v6  ;;  %v2122_v16 = vadd.f32 %v2121_v8, %v1585_v33 }
 0x2ff   :  { %v2860_v2 = vmul.f32 0.5, %v2796_v41  ;;  %v2861_v19 = vmul.f32 0.5, %v2797_v15  ;;  %v2566_v20 = vpack.c.bf16 %v4055_v12, %v4053_v51  ;;  %v2384_v23 = vmul.f32 0.5, %v2320_v21 }
 0x300   :  { %v4057_v25 = vpop.eup %4056  ;;  %v2385_v26 = vmul.f32 0.5, %v2321_v1  ;;  %v2248_v27 = vpack.c.bf16 %v2094_v13, %v2080_v56  ;;  %v2249_v28 = vpack.c.bf16 %v2122_v16, %v2108_v29  ;;  %v2082_v30 = vadd.f32 %v2081_v11, %v1582_v63 }
 0x301   :  { %v4059_v31 = vpop.eup %4058  ;;  %v2901_v32 = vpack.c.bf16 %v2861_v19, %v2860_v2  ;;  %v2606_v9 = vunpack.c.l.bf16 %v2566_v20  ;;  %v2607_v14 = vunpack.c.h.bf16 %v2566_v20  ;;  %v2096_v34 = vadd.f32 %v2095_v17, %v1583_v5  ;;  %v2123_v19 = vpop.f32.mrf.mxu3  ;;  %v4766_v20 = vld [vmem:[%s4848_s7 + $0x18] sm:$0xff] }
 0x302   :  { %v4061_v18 = vpop.eup %4060  ;;  %v2582_v10 = vpack.c.bf16 %v4059_v31, %v4057_v25  ;;  %v2423_v35 = vpack.c.bf16 %v2385_v26, %v2384_v23  ;;  %v2290_v37 = vunpack.c.l.bf16 %v2248_v27  ;;  %v2291_v39 = vunpack.c.h.bf16 %v2248_v27 }
 0x303   :  { %v4063_v42 = vpop.eup %4062  ;;  %2933 = vst [vmem:[%s4849_s8 + $0xb8] sm:$0xff] %v2901_v32  ;;  %v2670_v40 = vadd.f32 1.0, %v2606_v9  ;;  %v2671_v43 = vadd.f32 1.0, %v2607_v14  ;;  %v2292_v44 = vunpack.c.l.bf16 %v2249_v28  ;;  %v2293_v45 = vunpack.c.h.bf16 %v2249_v28  ;;  %v2135_v14 = vpop.f32.mrf.mxu0 }
 0x304   :  { %v2567_v46 = vpack.c.bf16 %v4063_v42, %v4061_v18  ;;  %v2638_v47 = vunpack.c.l.bf16 %v2582_v10  ;;  %v2639_v48 = vunpack.c.h.bf16 %v2582_v10  ;;  %v2480_v36 = vunpack.c.l.bf16 %v2423_v35 }
 0x305   :  { %v2726_v50 = vpack.c.bf16 %v2671_v43, %v2670_v40  ;;  %v2481_v52 = vunpack.c.h.bf16 %v2423_v35  ;;  %v2354_v53 = vmul.f32 0.5, %v2290_v37  ;;  %v2355_v54 = vmul.f32 0.5, %v2291_v39  ;;  %v2149_v37 = vpop.f32.mrf.mxu1 }
 0x306   :  { %v2608_v22 = vunpack.c.l.bf16 %v2567_v46  ;;  %v2609_v49 = vunpack.c.h.bf16 %v2567_v46  ;;  %v2702_v55 = vadd.f32 1.0, %v2638_v47  ;;  %v2703_v57 = vadd.f32 1.0, %v2639_v48 }
 0x307   :  { %v2766_v58 = vunpack.c.l.bf16 %v2726_v50  ;;  %v2767_v24 = vunpack.c.h.bf16 %v2726_v50  ;;  %4064 = vtanh.f32 %v2480_v36  ;;  %v2408_v38 = vpack.c.bf16 %v2355_v54, %v2354_v53 }
 0x308   :  { %v2672_v59 = vadd.f32 1.0, %v2608_v22  ;;  %v2673_v60 = vadd.f32 1.0, %v2609_v49  ;;  %v2742_v62 = vpack.c.bf16 %v2703_v57, %v2702_v55  ;;  %4066 = vtanh.f32 %v2481_v52 }
 0x309   :  { %v2830_v63 = vmul.f32 0.5, %v2766_v58  ;;  %v2831_v0 = vmul.f32 0.5, %v2767_v24  ;;  %v2450_v4 = vunpack.c.l.bf16 %v2408_v38  ;;  %v2451_v5 = vunpack.c.h.bf16 %v2408_v38 }
 0x30a   :  { %v2727_v7 = vpack.c.bf16 %v2673_v60, %v2672_v59  ;;  %v2798_v8 = vunpack.c.l.bf16 %v2742_v62  ;;  %v2799_v51 = vunpack.c.h.bf16 %v2742_v62  ;;  %v2356_v56 = vmul.f32 0.5, %v2292_v44 }
 0x30b   :  { %v2886_v41 = vpack.c.bf16 %v2831_v0, %v2830_v63  ;;  %4068 = vtanh.f32 %v2450_v4  ;;  %v2357_v15 = vmul.f32 0.5, %v2293_v45  ;;  %v2264_v21 = vpack.c.bf16 %v2096_v34, %v2082_v30  ;;  %v2177_v63 = vpop.f32.mrf.mxu3 }
 0x30c   :  { %v2768_v11 = vunpack.c.l.bf16 %v2727_v7  ;;  %v2769_v12 = vunpack.c.h.bf16 %v2727_v7  ;;  %v2862_v1 = vmul.f32 0.5, %v2798_v8  ;;  %v2863_v13 = vmul.f32 0.5, %v2799_v51 }
 0x30d   :  { %v4065_v29 = vpop.eup %4064  ;;  %2918 = vst [vmem:[%s4849_s8 + $0x40] sm:$0xff] %v2886_v41  ;;  %4070 = vtanh.f32 %v2451_v5  ;;  %v2409_v16 = vpack.c.bf16 %v2357_v15, %v2356_v56  ;;  %v2322_v17 = vunpack.c.l.bf16 %v2264_v21  ;;  %v2323_v2 = vunpack.c.h.bf16 %v2264_v21 }
 0x30e   :  { %v4067_v23 = vpop.eup %4066  ;;  %v2832_v25 = vmul.f32 0.5, %v2768_v11  ;;  %v2833_v26 = vmul.f32 0.5, %v2769_v12  ;;  %v2902_v27 = vpack.c.bf16 %v2863_v13, %v2862_v1  ;;  %v2110_v28 = vadd.f32 %v2109_v61, %v1584_v6 }
 0x30f   :  { %v2583_v30 = vpack.c.bf16 %v4067_v23, %v4065_v29  ;;  %v2452_v31 = vunpack.c.l.bf16 %v2409_v16  ;;  %v2453_v32 = vunpack.c.h.bf16 %v2409_v16  ;;  %v2386_v9 = vmul.f32 0.5, %v2322_v17 }
 0x310   :  { %v2887_v34 = vpack.c.bf16 %v2833_v26, %v2832_v25  ;;  %2934 = vst [vmem:[%s4849_s8 + $0xc0] sm:$0xff] %v2902_v27  ;;  %v2387_v18 = vmul.f32 0.5, %v2323_v2  ;;  %v2124_v10 = vadd.f32 %v2123_v19, %v1585_v33  ;;  %v1586_v35 = vperm.slane %v4766_v20, 0  ;;  %v2163_v33 = vpop.f32.mrf.mxu2 }
 0x311   :  { %v4069_v39 = vpop.eup %4068  ;;  %v2640_v42 = vunpack.c.l.bf16 %v2583_v30  ;;  %v2641_v6 = vunpack.c.h.bf16 %v2583_v30  ;;  %4072 = vtanh.f32 %v2452_v31  ;;  %v1587_v40 = vperm.slane %v4766_v20, 1 }
 0x312   :  { %2919 = vst [vmem:[%s4849_s8 + $0x48] sm:$0xff] %v2887_v34  ;;  %4074 = vtanh.f32 %v2453_v32  ;;  %v2424_v43 = vpack.c.bf16 %v2387_v18, %v2386_v9  ;;  %v2265_v44 = vpack.c.bf16 %v2124_v10, %v2110_v28  ;;  %v2136_v3 = vadd.f32 %v2135_v14, %v1586_v35  ;;  %v2137_v32 = vpop.f32.mrf.mxu0 }
 0x313   :  { %v4071_v45 = vpop.eup %4070  ;;  %v2704_v46 = vadd.f32 1.0, %v2640_v42  ;;  %v2705_v47 = vadd.f32 1.0, %v2641_v6  ;;  %v2150_v48 = vadd.f32 %v2149_v37, %v1587_v40  ;;  %v1588_v36 = vperm.slane %v4766_v20, 2 }
 0x314   :  { %v2568_v50 = vpack.c.bf16 %v4071_v45, %v4069_v39  ;;  %v2482_v52 = vunpack.c.l.bf16 %v2424_v43  ;;  %v2483_v53 = vunpack.c.h.bf16 %v2424_v43  ;;  %v2324_v54 = vunpack.c.l.bf16 %v2265_v44 }
 0x315   :  { %v2743_v22 = vpack.c.bf16 %v2705_v47, %v2704_v46  ;;  %v2325_v49 = vunpack.c.h.bf16 %v2265_v44  ;;  %v2250_v55 = vpack.c.bf16 %v2150_v48, %v2136_v3  ;;  %v2164_v57 = vadd.f32 %v2163_v33, %v1588_v36  ;;  %v2151_v3 = vpop.f32.mrf.mxu1  ;;  %v2179_v48 = vpop.f32.mrf.mxu3 }
 0x316   :  { %v2610_v58 = vunpack.c.l.bf16 %v2568_v50  ;;  %v2611_v24 = vunpack.c.h.bf16 %v2568_v50  ;;  %4076 = vtanh.f32 %v2482_v52  ;;  %v2388_v38 = vmul.f32 0.5, %v2324_v54 }
 0x317   :  { %v4073_v59 = vpop.eup %4072  ;;  %v2800_v60 = vunpack.c.l.bf16 %v2743_v22  ;;  %v2801_v62 = vunpack.c.h.bf16 %v2743_v22  ;;  %4078 = vtanh.f32 %v2483_v53  ;;  %v2389_v61 = vmul.f32 0.5, %v2325_v49 }
 0x318   :  { %v4075_v0 = vpop.eup %4074  ;;  %v2674_v4 = vadd.f32 1.0, %v2610_v58  ;;  %v2675_v5 = vadd.f32 1.0, %v2611_v24  ;;  %v2294_v7 = vunpack.c.l.bf16 %v2250_v55  ;;  %v2295_v8 = vunpack.c.h.bf16 %v2250_v55  ;;  %v2165_v47 = vpop.f32.mrf.mxu2 }
 0x319   :  { %v2864_v51 = vmul.f32 0.5, %v2800_v60  ;;  %v2865_v56 = vmul.f32 0.5, %v2801_v62  ;;  %v2569_v41 = vpack.c.bf16 %v4075_v0, %v4073_v59  ;;  %v2425_v15 = vpack.c.bf16 %v2389_v61, %v2388_v38 }
 0x31a   :  { %v2728_v21 = vpack.c.bf16 %v2675_v5, %v2674_v4  ;;  %v2358_v11 = vmul.f32 0.5, %v2294_v7  ;;  %v2359_v12 = vmul.f32 0.5, %v2295_v8  ;;  %v1589_v1 = vperm.slane %v4766_v20, 3 }
 0x31b   :  { %v2903_v13 = vpack.c.bf16 %v2865_v56, %v2864_v51  ;;  %v2612_v29 = vunpack.c.l.bf16 %v2569_v41  ;;  %v2613_v16 = vunpack.c.h.bf16 %v2569_v41  ;;  %v2484_v17 = vunpack.c.l.bf16 %v2425_v15 }
 0x31c   :  { %v4077_v2 = vpop.eup %4076  ;;  %v2770_v19 = vunpack.c.l.bf16 %v2728_v21  ;;  %v2771_v23 = vunpack.c.h.bf16 %v2728_v21  ;;  %v2485_v25 = vunpack.c.h.bf16 %v2425_v15  ;;  %v2410_v26 = vpack.c.bf16 %v2359_v12, %v2358_v11 }
 0x31d   :  { %v4079_v27 = vpop.eup %4078  ;;  %2935 = vst [vmem:[%s4849_s8 + $0xc8] sm:$0xff] %v2903_v13  ;;  %v2676_v28 = vadd.f32 1.0, %v2612_v29  ;;  %v2677_v30 = vadd.f32 1.0, %v2613_v16  ;;  %4080 = vtanh.f32 %v2484_v17  ;;  %v2178_v31 = vadd.f32 %v2177_v63, %v1589_v1  ;;  %v2191_v17 = vpop.f32.mrf.mxu0 }
 0x31e   :  { %v2834_v9 = vmul.f32 0.5, %v2770_v19  ;;  %v2835_v14 = vmul.f32 0.5, %v2771_v23  ;;  %v2584_v34 = vpack.c.bf16 %v4079_v27, %v4077_v2  ;;  %4082 = vtanh.f32 %v2485_v25  ;;  %v2205_v25 = vpop.f32.mrf.mxu1 }
 0x31f   :  { %v2729_v18 = vpack.c.bf16 %v2677_v30, %v2676_v28  ;;  %v2454_v10 = vunpack.c.l.bf16 %v2410_v26  ;;  %v2455_v37 = vunpack.c.h.bf16 %v2410_v26  ;;  %v2251_v39 = vpack.c.bf16 %v2178_v31, %v2164_v57  ;;  %v2233_v31 = vpop.f32.mrf.mxu3 }
 0x320   :  { %v2888_v42 = vpack.c.bf16 %v2835_v14, %v2834_v9  ;;  %v2642_v6 = vunpack.c.l.bf16 %v2584_v34  ;;  %v2643_v43 = vunpack.c.h.bf16 %v2584_v34  ;;  %v2138_v44 = vadd.f32 %v2137_v32, %v1586_v35  ;;  %v2219_v30 = vpop.f32.mrf.mxu2 }
 0x321   :  { %v2772_v33 = vunpack.c.l.bf16 %v2729_v18  ;;  %v2773_v45 = vunpack.c.h.bf16 %v2729_v18  ;;  %4084 = vtanh.f32 %v2454_v10  ;;  %v2296_v46 = vunpack.c.l.bf16 %v2251_v39 }
 0x322   :  { %2920 = vst [vmem:[%s4849_s8 + $0x50] sm:$0xff] %v2888_v42  ;;  %v2706_v50 = vadd.f32 1.0, %v2642_v6  ;;  %v2707_v52 = vadd.f32 1.0, %v2643_v43  ;;  %4086 = vtanh.f32 %v2455_v37  ;;  %v2297_v53 = vunpack.c.h.bf16 %v2251_v39 }
 0x323   :  { %v4081_v54 = vpop.eup %4080  ;;  %v2836_v22 = vmul.f32 0.5, %v2772_v33  ;;  %v2837_v49 = vmul.f32 0.5, %v2773_v45  ;;  %v2360_v55 = vmul.f32 0.5, %v2296_v46  ;;  %v2152_v35 = vadd.f32 %v2151_v3, %v1587_v40 }
 0x324   :  { %v4083_v57 = vpop.eup %4082  ;;  %v2744_v58 = vpack.c.bf16 %v2707_v52, %v2706_v50  ;;  %v2361_v24 = vmul.f32 0.5, %v2297_v53  ;;  %v2166_v38 = vadd.f32 %v2165_v47, %v1588_v36  ;;  %v2180_v59 = vadd.f32 %v2179_v48, %v1589_v1 }
 0x325   :  { %v2889_v60 = vpack.c.bf16 %v2837_v49, %v2836_v22  ;;  %v2585_v62 = vpack.c.bf16 %v4083_v57, %v4081_v54  ;;  %v2266_v61 = vpack.c.bf16 %v2152_v35, %v2138_v44  ;;  %v1590_v63 = vperm.slane %v4766_v20, 4 }
 0x326   :  { %v2802_v0 = vunpack.c.l.bf16 %v2744_v58  ;;  %v2803_v4 = vunpack.c.h.bf16 %v2744_v58  ;;  %v2411_v5 = vpack.c.bf16 %v2361_v24, %v2360_v55  ;;  %v2267_v7 = vpack.c.bf16 %v2180_v59, %v2166_v38 }
 0x327   :  { %v4085_v8 = vpop.eup %4084  ;;  %2921 = vst [vmem:[%s4849_s8 + $0x58] sm:$0xff] %v2889_v60  ;;  %v2644_v40 = vunpack.c.l.bf16 %v2585_v62  ;;  %v2645_v51 = vunpack.c.h.bf16 %v2585_v62  ;;  %v2326_v56 = vunpack.c.l.bf16 %v2266_v61  ;;  %v2327_v41 = vunpack.c.h.bf16 %v2266_v61  ;;  %v2193_v62 = vpop.f32.mrf.mxu0 }
 0x328   :  { %v4087_v36 = vpop.eup %4086  ;;  %v2866_v15 = vmul.f32 0.5, %v2802_v0  ;;  %v2867_v21 = vmul.f32 0.5, %v2803_v4  ;;  %v2456_v11 = vunpack.c.l.bf16 %v2411_v5  ;;  %v2457_v12 = vunpack.c.h.bf16 %v2411_v5  ;;  %v2207_v5 = vpop.f32.mrf.mxu1 }
 0x329   :  { %v2708_v1 = vadd.f32 1.0, %v2644_v40  ;;  %v2709_v13 = vadd.f32 1.0, %v2645_v51  ;;  %v2570_v29 = vpack.c.bf16 %v4087_v36, %v4085_v8  ;;  %v2390_v16 = vmul.f32 0.5, %v2326_v56  ;;  %v2221_v51 = vpop.f32.mrf.mxu2  ;;  %v2235_v56 = vpop.f32.mrf.mxu3 }
 0x32a   :  { %v2904_v2 = vpack.c.bf16 %v2867_v21, %v2866_v15  ;;  %4088 = vtanh.f32 %v2456_v11  ;;  %v2391_v19 = vmul.f32 0.5, %v2327_v41  ;;  %v2328_v23 = vunpack.c.l.bf16 %v2267_v7 }
 0x32b   :  { %v2745_v26 = vpack.c.bf16 %v2709_v13, %v2708_v1  ;;  %v2614_v27 = vunpack.c.l.bf16 %v2570_v29  ;;  %v2615_v28 = vunpack.c.h.bf16 %v2570_v29  ;;  %4090 = vtanh.f32 %v2457_v12 }
 0x32c   :  { %2936 = vst [vmem:[%s4849_s8 + $0xd0] sm:$0xff] %v2904_v2  ;;  %v2426_v32 = vpack.c.bf16 %v2391_v19, %v2390_v16  ;;  %v2329_v9 = vunpack.c.h.bf16 %v2267_v7  ;;  %v2392_v14 = vmul.f32 0.5, %v2328_v23  ;;  %v2192_v34 = vadd.f32 %v2191_v17, %v1590_v63 }
 0x32d   :  { %v2804_v18 = vunpack.c.l.bf16 %v2745_v26  ;;  %v2805_v10 = vunpack.c.h.bf16 %v2745_v26  ;;  %v2678_v37 = vadd.f32 1.0, %v2614_v27  ;;  %v2679_v39 = vadd.f32 1.0, %v2615_v28 }
 0x32e   :  { %v2486_v42 = vunpack.c.l.bf16 %v2426_v32  ;;  %v2487_v6 = vunpack.c.h.bf16 %v2426_v32  ;;  %v2393_v43 = vmul.f32 0.5, %v2329_v9  ;;  %v1591_v44 = vperm.slane %v4766_v20, 5 }
 0x32f   :  { %v2868_v3 = vmul.f32 0.5, %v2804_v18  ;;  %v2869_v33 = vmul.f32 0.5, %v2805_v10  ;;  %v2730_v45 = vpack.c.bf16 %v2679_v39, %v2678_v37  ;;  %v1592_v46 = vperm.slane %v4766_v20, 6 }
 0x330   :  { %v4089_v47 = vpop.eup %4088  ;;  %4092 = vtanh.f32 %v2486_v42  ;;  %v2427_v48 = vpack.c.bf16 %v2393_v43, %v2392_v14  ;;  %v2206_v50 = vadd.f32 %v2205_v25, %v1591_v44  ;;  %v1593_v52 = vperm.slane %v4766_v20, 7 }
 0x331   :  { %v4091_v53 = vpop.eup %4090  ;;  %v2905_v54 = vpack.c.bf16 %v2869_v33, %v2868_v3  ;;  %v2774_v22 = vunpack.c.l.bf16 %v2730_v45  ;;  %v2775_v49 = vunpack.c.h.bf16 %v2730_v45  ;;  %4094 = vtanh.f32 %v2487_v6 }
 0x332   :  { %v2571_v55 = vpack.c.bf16 %v4091_v53, %v4089_v47  ;;  %v2488_v35 = vunpack.c.l.bf16 %v2427_v48  ;;  %v2489_v57 = vunpack.c.h.bf16 %v2427_v48  ;;  %v2252_v58 = vpack.c.bf16 %v2206_v50, %v2192_v34 }
 0x333   :  { %2937 = vst [vmem:[%s4849_s8 + $0xd8] sm:$0xff] %v2905_v54  ;;  %v2838_v24 = vmul.f32 0.5, %v2774_v22  ;;  %v2839_v38 = vmul.f32 0.5, %v2775_v49  ;;  %v2220_v59 = vadd.f32 %v2219_v30, %v1592_v46  ;;  %v2234_v60 = vadd.f32 %v2233_v31, %v1593_v52 }
 0x334   :  { %v2616_v61 = vunpack.c.l.bf16 %v2571_v55  ;;  %v2617_v0 = vunpack.c.h.bf16 %v2571_v55  ;;  %4096 = vtanh.f32 %v2488_v35  ;;  %v2298_v4 = vunpack.c.l.bf16 %v2252_v58 }
 0x335   :  { %v2890_v7 = vpack.c.bf16 %v2839_v38, %v2838_v24  ;;  %4098 = vtanh.f32 %v2489_v57  ;;  %v2299_v8 = vunpack.c.h.bf16 %v2252_v58  ;;  %v2253_v40 = vpack.c.bf16 %v2234_v60, %v2220_v59 }
 0x336   :  { %v4093_v41 = vpop.eup %4092  ;;  %v2680_v36 = vadd.f32 1.0, %v2616_v61  ;;  %v2681_v15 = vadd.f32 1.0, %v2617_v0  ;;  %v2362_v21 = vmul.f32 0.5, %v2298_v4  ;;  %v2194_v11 = vadd.f32 %v2193_v62, %v1590_v63 }
 0x337   :  { %v4095_v12 = vpop.eup %4094  ;;  %2922 = vst [vmem:[%s4849_s8 + $0x60] sm:$0xff] %v2890_v7  ;;  %v2363_v1 = vmul.f32 0.5, %v2299_v8  ;;  %v2300_v13 = vunpack.c.l.bf16 %v2253_v40  ;;  %v2301_v29 = vunpack.c.h.bf16 %v2253_v40  ;;  %v2208_v16 = vadd.f32 %v2207_v5, %v1591_v44 }
 0x338   :  { %v2731_v17 = vpack.c.bf16 %v2681_v15, %v2680_v36  ;;  %v2586_v2 = vpack.c.bf16 %v4095_v12, %v4093_v41  ;;  %v2222_v19 = vadd.f32 %v2221_v51, %v1592_v46  ;;  %v2236_v23 = vadd.f32 %v2235_v56, %v1593_v52 }
 0x339   :  { %v2412_v25 = vpack.c.bf16 %v2363_v1, %v2362_v21  ;;  %v2364_v26 = vmul.f32 0.5, %v2300_v13  ;;  %v2365_v27 = vmul.f32 0.5, %v2301_v29  ;;  %v2268_v28 = vpack.c.bf16 %v2208_v16, %v2194_v11 }
 0x33a   :  { %v4097_v30 = vpop.eup %4096  ;;  %v2776_v20 = vunpack.c.l.bf16 %v2731_v17  ;;  %v2777_v63 = vunpack.c.h.bf16 %v2731_v17  ;;  %v2646_v31 = vunpack.c.l.bf16 %v2586_v2  ;;  %v2647_v32 = vunpack.c.h.bf16 %v2586_v2 }
 0x33b   :  { %v4099_v9 = vpop.eup %4098  ;;  %v2458_v14 = vunpack.c.l.bf16 %v2412_v25  ;;  %v2459_v34 = vunpack.c.h.bf16 %v2412_v25  ;;  %v2413_v18 = vpack.c.bf16 %v2365_v27, %v2364_v26  ;;  %v2330_v10 = vunpack.c.l.bf16 %v2268_v28 }
 0x33c   :  { %v2840_v37 = vmul.f32 0.5, %v2776_v20  ;;  %v2841_v39 = vmul.f32 0.5, %v2777_v63  ;;  %v2710_v42 = vadd.f32 1.0, %v2646_v31  ;;  %v2711_v6 = vadd.f32 1.0, %v2647_v32 }
 0x33d   :  { %v2587_v43 = vpack.c.bf16 %v4099_v9, %v4097_v30  ;;  %4100 = vtanh.f32 %v2458_v14  ;;  %v2460_v44 = vunpack.c.l.bf16 %v2413_v18  ;;  %v2461_v3 = vunpack.c.h.bf16 %v2413_v18 }
 0x33e   :  { %v2891_v33 = vpack.c.bf16 %v2841_v39, %v2840_v37  ;;  %v2746_v45 = vpack.c.bf16 %v2711_v6, %v2710_v42  ;;  %4102 = vtanh.f32 %v2459_v34  ;;  %v2331_v46 = vunpack.c.h.bf16 %v2268_v28 }
 0x33f   :  { %v2648_v47 = vunpack.c.l.bf16 %v2587_v43  ;;  %v2649_v48 = vunpack.c.h.bf16 %v2587_v43  ;;  %4104 = vtanh.f32 %v2460_v44  ;;  %v2394_v50 = vmul.f32 0.5, %v2330_v10 }
 0x340   :  { %2923 = vst [vmem:[%s4849_s8 + $0x68] sm:$0xff] %v2891_v33  ;;  %v2806_v52 = vunpack.c.l.bf16 %v2746_v45  ;;  %v2807_v53 = vunpack.c.h.bf16 %v2746_v45  ;;  %4106 = vtanh.f32 %v2461_v3  ;;  %v2395_v54 = vmul.f32 0.5, %v2331_v46 }
 0x341   :  { %v2712_v22 = vadd.f32 1.0, %v2648_v47  ;;  %v2713_v49 = vadd.f32 1.0, %v2649_v48  ;;  %v2269_v55 = vpack.c.bf16 %v2236_v23, %v2222_v19 }
 0x342   :  { %v2870_v35 = vmul.f32 0.5, %v2806_v52  ;;  %v2871_v57 = vmul.f32 0.5, %v2807_v53  ;;  %v2428_v58 = vpack.c.bf16 %v2395_v54, %v2394_v50 }
 0x343   :  { %v4101_v24 = vpop.eup %4100  ;;  %v2747_v38 = vpack.c.bf16 %v2713_v49, %v2712_v22  ;;  %v2332_v59 = vunpack.c.l.bf16 %v2269_v55  ;;  %v2333_v60 = vunpack.c.h.bf16 %v2269_v55 }
 0x344   :  { %v4103_v62 = vpop.eup %4102  ;;  %v2906_v61 = vpack.c.bf16 %v2871_v57, %v2870_v35  ;;  %v2490_v0 = vunpack.c.l.bf16 %v2428_v58  ;;  %v2491_v4 = vunpack.c.h.bf16 %v2428_v58 }
 0x345   :  { %v4105_v5 = vpop.eup %4104  ;;  %v2808_v7 = vunpack.c.l.bf16 %v2747_v38  ;;  %v2809_v8 = vunpack.c.h.bf16 %v2747_v38  ;;  %v2572_v40 = vpack.c.bf16 %v4103_v62, %v4101_v24  ;;  %v2396_v51 = vmul.f32 0.5, %v2332_v59 }
 0x346   :  { %v4107_v56 = vpop.eup %4106  ;;  %2938 = vst [vmem:[%s4849_s8 + $0xe0] sm:$0xff] %v2906_v61  ;;  %4108 = vtanh.f32 %v2490_v0  ;;  %v2397_v41 = vmul.f32 0.5, %v2333_v60 }
 0x347   :  { %v2872_v36 = vmul.f32 0.5, %v2808_v7  ;;  %v2873_v15 = vmul.f32 0.5, %v2809_v8  ;;  %v2618_v21 = vunpack.c.l.bf16 %v2572_v40  ;;  %v2619_v11 = vunpack.c.h.bf16 %v2572_v40 }
 0x348   :  { %v2573_v12 = vpack.c.bf16 %v4107_v56, %v4105_v5  ;;  %4110 = vtanh.f32 %v2491_v4  ;;  %v2429_v1 = vpack.c.bf16 %v2397_v41, %v2396_v51 }
 0x349   :  { %v2907_v13 = vpack.c.bf16 %v2873_v15, %v2872_v36  ;;  %v2682_v29 = vadd.f32 1.0, %v2618_v21  ;;  %v2683_v16 = vadd.f32 1.0, %v2619_v11 }
 0x34a   :  { %v2620_v17 = vunpack.c.l.bf16 %v2573_v12  ;;  %v2621_v2 = vunpack.c.h.bf16 %v2573_v12  ;;  %v2492_v19 = vunpack.c.l.bf16 %v2429_v1  ;;  %v2493_v23 = vunpack.c.h.bf16 %v2429_v1 }
 0x34b   :  { %2939 = vst [vmem:[%s4849_s8 + $0xe8] sm:$0xff] %v2907_v13  ;;  %v2732_v25 = vpack.c.bf16 %v2683_v16, %v2682_v29 }
 0x34c   :  { %v4109_v26 = vpop.eup %4108  ;;  %v2684_v27 = vadd.f32 1.0, %v2620_v17  ;;  %v2685_v28 = vadd.f32 1.0, %v2621_v2  ;;  %4112 = vtanh.f32 %v2492_v19 }
 0x34d   :  { %v2778_v30 = vunpack.c.l.bf16 %v2732_v25  ;;  %v2779_v20 = vunpack.c.h.bf16 %v2732_v25  ;;  %4114 = vtanh.f32 %v2493_v23 }
 0x34e   :  { %v4111_v63 = vpop.eup %4110  ;;  %v2733_v31 = vpack.c.bf16 %v2685_v28, %v2684_v27 }
 0x34f   :  { %v2842_v32 = vmul.f32 0.5, %v2778_v30  ;;  %v2843_v9 = vmul.f32 0.5, %v2779_v20  ;;  %v2588_v14 = vpack.c.bf16 %v4111_v63, %v4109_v26 }
 0x350   :  { %v2780_v34 = vunpack.c.l.bf16 %v2733_v31  ;;  %v2781_v18 = vunpack.c.h.bf16 %v2733_v31 }
 0x351   :  { %v2892_v10 = vpack.c.bf16 %v2843_v9, %v2842_v32  ;;  %v2650_v37 = vunpack.c.l.bf16 %v2588_v14  ;;  %v2651_v39 = vunpack.c.h.bf16 %v2588_v14 }
 0x352   :  { %v4113_v42 = vpop.eup %4112  ;;  %v2844_v6 = vmul.f32 0.5, %v2780_v34  ;;  %v2845_v43 = vmul.f32 0.5, %v2781_v18 }
 0x353   :  { %v4115_v44 = vpop.eup %4114  ;;  %2924 = vst [vmem:[%s4849_s8 + $0x70] sm:$0xff] %v2892_v10  ;;  %v2714_v3 = vadd.f32 1.0, %v2650_v37  ;;  %v2715_v33 = vadd.f32 1.0, %v2651_v39 }
 0x354   :  { %v2893_v45 = vpack.c.bf16 %v2845_v43, %v2844_v6  ;;  %v2589_v46 = vpack.c.bf16 %v4115_v44, %v4113_v42 }
 0x355   :  { %v2748_v47 = vpack.c.bf16 %v2715_v33, %v2714_v3 }
 0x356   :  { %2925 = vst [vmem:[%s4849_s8 + $0x78] sm:$0xff] %v2893_v45  ;;  %v2652_v48 = vunpack.c.l.bf16 %v2589_v46  ;;  %v2653_v50 = vunpack.c.h.bf16 %v2589_v46 }
 0x357   :  { %v2810_v52 = vunpack.c.l.bf16 %v2748_v47  ;;  %v2811_v53 = vunpack.c.h.bf16 %v2748_v47 }
 0x358   :  { %v2716_v54 = vadd.f32 1.0, %v2652_v48  ;;  %v2717_v22 = vadd.f32 1.0, %v2653_v50 }
 0x359   :  { %v2874_v49 = vmul.f32 0.5, %v2810_v52  ;;  %v2875_v55 = vmul.f32 0.5, %v2811_v53 }
 0x35a   :  { %v2749_v35 = vpack.c.bf16 %v2717_v22, %v2716_v54 }
 0x35b   :  { %v2908_v57 = vpack.c.bf16 %v2875_v55, %v2874_v49 }
 0x35c   :  { %v2812_v58 = vunpack.c.l.bf16 %v2749_v35  ;;  %v2813_v24 = vunpack.c.h.bf16 %v2749_v35 }
 0x35d   :  { %2940 = vst [vmem:[%s4849_s8 + $0xf0] sm:$0xff] %v2908_v57 }
 0x35e   :  { %v2876_v38 = vmul.f32 0.5, %v2812_v58  ;;  %v2877_v59 = vmul.f32 0.5, %v2813_v24 }
 0x360   :  { %v2909_v60 = vpack.c.bf16 %v2877_v59, %v2876_v38 }
 0x362   :  { %2941 = vst [vmem:[%s4849_s8 + $0xf8] sm:$0xff] %v2909_v60 }
 0x363   :  { %2946 = vsyncpa [#allocation3], 1 }
 0x364   :  { %2947 = vsyncpa [#allocation5], 1 }

</bundles_post_ra>
